<compile_context>
chip_gen: v5e
topology: v5e:2x2
jax: 0.10.0
libtpu: 0.0.40
codegen_flags: <defaults>
</compile_context>

<pallas_src>
import functools

import jax
import jax.numpy as jnp
from jax.experimental import pallas as pl
from jax.experimental.pallas import tpu as pltpu


RNN_RESIDUAL = True
TIME_CHUNK = 16      # GRU time steps per grid iteration. TODO(synk): sweep {8,16,32}.
ROW_TILE = 512       # row tile for the pointwise (Conv1d k=1) matmuls.
LANE = 128
SUBLANE = 8


def _round_up(n, m):
    return ((n + m - 1) // m) * m


def _resident_spec(shape, index_map):
    """BlockSpec for a constant-index (weight/bias) block.

    Requests single buffering so the resident copy is not double-buffered (halves its
    VMEM footprint, which matters under v7x's 64 MiB VMEM). Falls back to the default
    pipelined spec when the installed Pallas does not expose pipeline_mode."""
    if hasattr(pl, "Buffered"):
        try:
            return pl.BlockSpec(shape, index_map, pipeline_mode=pl.Buffered(1))
        except TypeError:
            pass
    return pl.BlockSpec(shape, index_map)


# ---------------------- pointwise Conv1d (k=1) == per-frame linear ---------------------- #

def _linear_kernel(x_ref, w_ref, b_ref, o_ref, *, relu):
    y = jnp.dot(x_ref[...].astype(jnp.bfloat16), w_ref[...],
                preferred_element_type=jnp.float32) + b_ref[...]
    if relu:
        y = jnp.maximum(y, 0.0)
    o_ref[...] = y


def pointwise_linear(x2d, w_t, b_row, *, relu, tm=ROW_TILE):
    """(M, Din) @ (Din, Dout) + b, row-tiled so VMEM stays bounded at large T*B.

    x2d: (M, Din) f32; w_t: (Din, Dout) bf16; b_row: (1, Dout) f32. Returns (M, Dout) f32.
    """
    M, Din = x2d.shape
    Dout = w_t.shape[1]
    tm = min(tm, M)
    m_pad = pl.cdiv(M, tm) * tm
    if m_pad != M:
        x2d = jnp.pad(x2d, ((0, m_pad - M), (0, 0)))
    y = pl.pallas_call(
        functools.partial(_linear_kernel, relu=relu),
        out_shape=jax.ShapeDtypeStruct((m_pad, Dout), jnp.float32),
        grid_spec=pltpu.PrefetchScalarGridSpec(
            num_scalar_prefetch=0,
            grid=(m_pad // tm,),
            in_specs=[
                pl.BlockSpec((tm, Din), lambda i: (i, 0)),
                _resident_spec((Din, Dout), lambda i: (0, 0)),   # weight resident
                _resident_spec((1, Dout), lambda i: (0, 0)),     # bias resident
            ],
            out_specs=pl.BlockSpec((tm, Dout), lambda i: (i, 0)),
        ),
        compiler_params=pltpu.CompilerParams(dimension_semantics=("parallel",)),
    )(x2d, w_t, b_row)
    return y[:M] if m_pad != M else y


# ---------------------------------------- GRU ---------------------------------------- #

def _gru_kernel(x_ref, len_ref, w_ih_ref, b_ih_ref, w_hh_ref, b_hh_ref,
                o_ref, gi_ref, h_ref, *, tc, hp, residual):
    c = pl.program_id(1)          # time-chunk index (axis 0 is the batch split)

    @pl.when(c == 0)
    def _():
        h_ref[...] = jnp.zeros_like(h_ref)

    bh = h_ref.shape[0]
    din = x_ref.shape[-1]

    # Fused input projection for the whole chunk: one (tc*bh, din) @ (din, 3hp) MXU
    # matmul into a VMEM scratch -- gi never touches HBM.
    x2 = x_ref[...].reshape(tc * bh, din)
    gi = jnp.dot(x2.astype(jnp.bfloat16), w_ih_ref[...],
                 preferred_element_type=jnp.float32) + b_ih_ref[...]
    gi_ref[...] = gi.reshape(tc, bh, 3 * hp)

    w_hh = w_hh_ref[...]          # (hp, 3hp) bf16, VMEM-resident across the sequence
    b_hh = b_hh_ref[...]          # (1, 3hp)  f32
    lens = len_ref[...]           # (bh, 1)   int32
    t0 = c * tc

    def step(i, h):
        gi_t = gi_ref[i]                                              # (bh, 3hp)
        # single fused hidden matmul for all three gates (PyTorch gate order [r | z | n])
        gh = jnp.dot(h.astype(jnp.bfloat16), w_hh,
                     preferred_element_type=jnp.float32) + b_hh
        r = jax.nn.sigmoid(gi_t[:, :hp] + gh[:, :hp])
        z = jax.nn.sigmoid(gi_t[:, hp:2 * hp] + gh[:, hp:2 * hp])
        n = jnp.tanh(gi_t[:, 2 * hp:] + r * gh[:, 2 * hp:])
        h_new = (1.0 - z) * n + z * h

        # pack_padded/pad_packed semantics: frames at t >= length are zero after
        # pad_packed_sequence, and the residual term PyTorch adds is the pad_packed
        # (i.e. already masked) input, so masking the sum matches the reference.
        m = (t0 + i < lens).astype(jnp.float32)                       # (bh, 1)
        if residual:
            out = h_new + x_ref[i]
        else:
            out = h_new
        o_ref[i] = out * m
        # TODO(synk): h keeps integrating padded tail frames (pack_padded would freeze
        # it); returned outputs are unaffected (right padding + mask), h_n not exposed.
        return h_new

    h_ref[...] = jax.lax.fori_loop(0, tc, step, h_ref[...], unroll=True)


def gru_layer(x_tm, lens_col, p, *, residual, tc=TIME_CHUNK):
    """One PyTorch-style GRU layer (pack_padded semantics) on a time-major (T, B, Din)
    padded batch, with the length-masked residual add fused into the output store."""
    T, Bp, Din = x_tm.shape
    Hp = p["w_hh_t"].shape[0]

    tc = min(tc, T)
    t_pad = pl.cdiv(T, tc) * tc
    if t_pad != T:
        x_tm = jnp.pad(x_tm, ((0, t_pad - T), (0, 0), (0, 0)))

    # v7x has 2 TensorCores: batch halves are independent recurrences, so shard them
    # over a leading 'parallel' grid axis (no-op on 1-TC chips / small batches).
    bsplit = 2 if (Bp >= 16 and Bp % 16 == 0) else 1
    bh = Bp // bsplit

    kernel = functools.partial(_gru_kernel, tc=tc, hp=Hp, residual=residual)
    out = pl.pallas_call(
        kernel,
        out_shape=jax.ShapeDtypeStruct((t_pad, Bp, Hp), jnp.float32),
        grid_spec=pltpu.PrefetchScalarGridSpec(
            num_scalar_prefetch=0,
            grid=(bsplit, t_pad // tc),
            in_specs=[
                pl.BlockSpec((tc, bh, Din), lambda s, c: (c, s, 0)),   # layer input (time-major)
                _resident_spec((bh, 1), lambda s, c: (s, 0)),          # lengths (mask built in-kernel)
                _resident_spec((Din, 3 * Hp), lambda s, c: (0, 0)),    # W_ih^T  (bf16, resident)
                _resident_spec((1, 3 * Hp), lambda s, c: (0, 0)),      # b_ih
                _resident_spec((Hp, 3 * Hp), lambda s, c: (0, 0)),     # W_hh^T  (bf16, resident)
                _resident_spec((1, 3 * Hp), lambda s, c: (0, 0)),      # b_hh
            ],
            out_specs=pl.BlockSpec((tc, bh, Hp), lambda s, c: (c, s, 0)),
            scratch_shapes=[
                pltpu.VMEM((tc, bh, 3 * Hp), jnp.float32),             # per-chunk input projection
                pltpu.VMEM((bh, Hp), jnp.float32),                     # hidden-state carry
            ],
        ),
        compiler_params=pltpu.CompilerParams(
            dimension_semantics=("parallel", "arbitrary"),
            vmem_limit_bytes=32 * 1024 * 1024,   # explicit budget (v5e scoped default is 16 MiB)
        ),
    )(x_tm, lens_col, p["w_ih_t"], p["b_ih"], p["w_hh_t"], p["b_hh"])
    return out[:T] if t_pad != T else out


# ------------------------------------- APC forward ------------------------------------- #

def apc_forward(params, inputs, lengths, *, hidden, mel_dim):
    """inputs: (B, T, mel_dim) f32; lengths: (B,) int (right-padded sequences, as required
    by pack_padded_sequence). Returns (predicted_mel, internal_reps) like the PyTorch model."""
    B, T, _ = inputs.shape

    # Pad batch to a sublane multiple (padded rows get length 0 -> zero outputs) and go
    # time-major once; everything below stays time-major until the final transpose back.
    Bp = max(SUBLANE, _round_up(B, SUBLANE))
    x = jnp.pad(inputs, ((0, Bp - B), (0, 0), (0, 0))) if Bp != B else inputs
    lens = lengths.astype(jnp.int32)
    if Bp != B:
        lens = jnp.pad(lens, (0, Bp - B))
    lens_col = lens.reshape(Bp, 1)
    x_tm = jnp.transpose(x, (1, 0, 2))                       # (T, Bp, mel) -- single layout change

    # Prenet: Conv1d(k=1) + ReLU on the flattened (T*Bp, .) slab.
    h = x_tm.reshape(T * Bp, -1)
    for lyr in params["prenet"]:
        h = pointwise_linear(h, lyr["w_t"], lyr["b"], relu=True)
        # TODO(synk): Prenet dropout is identity at inference (feature extraction).
    Hp = h.shape[-1]
    rnn_in = h.reshape(T, Bp, Hp)

    internal_tm = [rnn_in]                                   # unmasked Prenet output (as in PyTorch)

    rnn_out = rnn_in
    for lyr in params["rnns"]:
        residual = RNN_RESIDUAL and rnn_in.shape[-1] == lyr["w_hh_t"].shape[0]
        rnn_out = gru_layer(rnn_in, lens_col, lyr, residual=residual)
        # TODO(synk): rnn_dropout is identity at inference.
        internal_tm.append(rnn_out)
        rnn_in = rnn_out

    # Postnet: Conv1d(k=1), no activation.
    mel_tm = pointwise_linear(rnn_out.reshape(T * Bp, Hp),
                              params["post"]["w_t"], params["post"]["b"], relu=False)
    mel_tm = mel_tm.reshape(T, Bp, -1)

    predicted_mel = jnp.transpose(mel_tm[:, :B, :mel_dim], (1, 0, 2))
    # TODO(synk): this stack+transpose copies every layer activation once more; callers
    # that accept a tuple of time-major (T, B, H) arrays should consume internal_tm directly.
    internal_reps = jnp.transpose(jnp.stack(internal_tm)[:, :, :B, :hidden], (0, 2, 1, 3))
    return predicted_mel, internal_reps


# ------------------------------------ parameters ------------------------------------ #

def init_params(key, mel_dim, prenet_num_layers, hidden, rnn_num_layers):
    """PyTorch-shaped weights (Conv1d (Dout, Din), GRU (3H, Din)/(3H, H), biases (3H,))."""
    def nxt():
        nonlocal key
        key, sub = jax.random.split(key)
        return sub

    raw = {"prenet": [], "rnns": [], "mel_dim": mel_dim, "hidden": hidden}
    in_sizes = [mel_dim] + [hidden] * (prenet_num_layers - 1)
    for din in in_sizes:
        w = 0.1 * jax.random.normal(nxt(), (hidden, din), jnp.float32)
        b = 0.05 * jax.random.normal(nxt(), (hidden,), jnp.float32)
        raw["prenet"].append((w, b))
    for _ in range(rnn_num_layers):
        w_ih = 0.1 * jax.random.normal(nxt(), (3 * hidden, hidden), jnp.float32)
        w_hh = 0.1 * jax.random.normal(nxt(), (3 * hidden, hidden), jnp.float32)
        b_ih = 0.05 * jax.random.normal(nxt(), (3 * hidden,), jnp.float32)
        b_hh = 0.05 * jax.random.normal(nxt(), (3 * hidden,), jnp.float32)
        raw["rnns"].append((w_ih, w_hh, b_ih, b_hh))
    raw["post_w"] = 0.1 * jax.random.normal(nxt(), (mel_dim, hidden), jnp.float32)
    raw["post_b"] = 0.05 * jax.random.normal(nxt(), (mel_dim,), jnp.float32)
    return raw


def _pad_to(a, axis, size):
    if a.shape[axis] == size:
        return a
    pad = [(0, 0)] * a.ndim
    pad[axis] = (0, size - a.shape[axis])
    return jnp.pad(a, pad)


def _pad_gate_cols(a, h, hp):
    """Pad the per-gate column blocks of a (..., 3h) GRU weight/bias to (..., 3hp),
    keeping the PyTorch [r | z | n] gate layout lane-aligned."""
    gates = [_pad_to(a[..., g * h:(g + 1) * h], -1, hp) for g in range(3)]
    return jnp.concatenate(gates, axis=-1)


def prepare_params(raw):
    """One-time weight layout work: transpose for (M,K)@(K,N), zero-pad hidden / mel
    output dims to lane multiples (gate-aware for the GRU), cast matmul weights to bf16
    (f32 accumulation happens in-kernel), keep biases in f32."""
    hidden, mel_dim = raw["hidden"], raw["mel_dim"]
    hp = _round_up(hidden, LANE)
    mel_p = _round_up(mel_dim, LANE)

    prep = {"prenet": [], "rnns": []}

    for idx, (w, b) in enumerate(raw["prenet"]):
        w_t = w.T                                            # (Din, hidden)
        din_p = w_t.shape[0] if idx == 0 else hp             # first layer consumes raw mel
        w_t = _pad_to(_pad_to(w_t, 0, din_p), 1, hp)
        prep["prenet"].append({"w_t": w_t.astype(jnp.bfloat16),
                               "b": _pad_to(b.reshape(1, -1), 1, hp)})

    for (w_ih, w_hh, b_ih, b_hh) in raw["rnns"]:
        w_ih_t = _pad_to(_pad_gate_cols(w_ih.T, hidden, hp), 0, hp)   # (hp, 3hp)
        w_hh_t = _pad_to(_pad_gate_cols(w_hh.T, hidden, hp), 0, hp)   # (hp, 3hp)
        prep["rnns"].append({
            "w_ih_t": w_ih_t.astype(jnp.bfloat16),
            "w_hh_t": w_hh_t.astype(jnp.bfloat16),
            "b_ih": _pad_gate_cols(b_ih.reshape(1, -1), hidden, hp),  # (1, 3hp) f32
            "b_hh": _pad_gate_cols(b_hh.reshape(1, -1), hidden, hp),  # (1, 3hp) f32
        })

    post_w_t = _pad_to(_pad_to(raw["post_w"].T, 0, hp), 1, mel_p)     # (hp, mel_p)
    prep["post"] = {"w_t": post_w_t.astype(jnp.bfloat16),
                    "b": _pad_to(raw["post_b"].reshape(1, -1), 1, mel_p)}
    return prep


# ----------------------------------------- main ----------------------------------------- #

if __name__ == "__main__":
    B, T, MEL, HID = 2, 8, 16, 32
    PRENET_LAYERS, RNN_LAYERS = 2, 3

    key = jax.random.PRNGKey(0)
    key, pkey, xkey = jax.random.split(key, 3)

    params = prepare_params(init_params(pkey, MEL, PRENET_LAYERS, HID, RNN_LAYERS))
    inputs = jax.random.normal(xkey, (B, T, MEL), jnp.float32)
    lengths = jnp.array([8, 5], dtype=jnp.int32)   # right-padded (pack_padded_sequence order)

    fwd = jax.jit(functools.partial(apc_forward, hidden=HID, mel_dim=MEL))
    predicted_mel, internal_reps = fwd(params, inputs, lengths)
    jax.block_until_ready((predicted_mel, internal_reps))

    assert predicted_mel.shape == (B, T, MEL)
    assert internal_reps.shape == (RNN_LAYERS + 1, B, T, HID)
    assert bool(jnp.all(jnp.isfinite(predicted_mel)))
    assert bool(jnp.all(jnp.isfinite(internal_reps)))
    print("KERNEL_OK")
</pallas_src>

<mosaic_0001>
module attributes {stable_mosaic.version = 11 : i64} {
  func.func @_linear_kernel(%arg0: i32, %arg1: memref<64x16xf32, #tpu.memory_space<vmem>>, %arg2: memref<16x128xbf16, #tpu.memory_space<vmem>>, %arg3: memref<1x128xf32, #tpu.memory_space<vmem>>, %arg4: memref<64x128xf32, #tpu.memory_space<vmem>>) attributes {dimension_semantics = [#tpu.dimension_semantics<parallel>], iteration_bounds = array<i64: 1>, scalar_prefetch = 0 : i64, scratch_operands = 0 : i64, tpu.core_type = #tpu.core_type<tc>, window_params = [{transform_indices = @transform_0, window_bounds = array<i64: 64, 16>}, {pipeline_mode = #tpu.pipeline_mode<synchronous>, transform_indices = @transform_1, window_bounds = array<i64: 16, 128>}, {pipeline_mode = #tpu.pipeline_mode<synchronous>, transform_indices = @transform_2, window_bounds = array<i64: 1, 128>}, {transform_indices = @transform_3, window_bounds = array<i64: 64, 128>}]} {
    %c0 = arith.constant 0 : index
    %c0_0 = arith.constant 0 : index
    %0 = vector.load %arg1[%c0, %c0_0] : memref<64x16xf32, #tpu.memory_space<vmem>>, vector<64x16xf32>
    %1 = arith.truncf %0 : vector<64x16xf32> to vector<64x16xbf16>
    %c0_1 = arith.constant 0 : index
    %c0_2 = arith.constant 0 : index
    %2 = vector.load %arg2[%c0_1, %c0_2] : memref<16x128xbf16, #tpu.memory_space<vmem>>, vector<16x128xbf16>
    %cst = arith.constant dense<0.000000e+00> : vector<64x128xf32>
    %3 = tpu.matmul %1, %2, %cst {dimension_numbers = #tpu.dot_dimension_numbers<[1], [0], [0], [1], [0, 0, 1, 1], [], []>} : vector<64x16xbf16>, vector<16x128xbf16>, vector<64x128xf32> -> vector<64x128xf32>
    %c0_3 = arith.constant 0 : index
    %c0_4 = arith.constant 0 : index
    %4 = vector.load %arg3[%c0_3, %c0_4] : memref<1x128xf32, #tpu.memory_space<vmem>>, vector<1x128xf32>
    %5 = vector.broadcast %4 : vector<1x128xf32> to vector<64x128xf32>
    %6 = arith.addf %3, %5 : vector<64x128xf32>
    %cst_5 = arith.constant 0.000000e+00 : f32
    %7 = vector.broadcast %cst_5 : f32 to vector<64x128xf32>
    %8 = arith.maximumf %6, %7 : vector<64x128xf32>
    %c0_6 = arith.constant 0 : index
    %c0_7 = arith.constant 0 : index
    %9 = vector.load %arg4[%c0_6, %c0_7] : memref<64x128xf32, #tpu.memory_space<vmem>>, vector<64x128xf32>
    tpu.vector_store %arg4[%c0_6, %c0_7], %8 {strides = array<i32>} : memref<64x128xf32, #tpu.memory_space<vmem>>, vector<64x128xf32>,
    return
  }
  func.func @transform_0(%arg0: i32) -> (i32, i32) {
    %c0_i32 = arith.constant 0 : i32
    %c0_i32_0 = arith.constant 0 : i32
    return %arg0, %c0_i32 : i32, i32
  }
  func.func @transform_1(%arg0: i32) -> (i32, i32) {
    %c0_i32 = arith.constant 0 : i32
    %c0_i32_0 = arith.constant 0 : i32
    %c0_i32_1 = arith.constant 0 : i32
    return %c0_i32, %c0_i32_0 : i32, i32
  }
  func.func @transform_2(%arg0: i32) -> (i32, i32) {
    %c0_i32 = arith.constant 0 : i32
    %c0_i32_0 = arith.constant 0 : i32
    %c0_i32_1 = arith.constant 0 : i32
    return %c0_i32, %c0_i32_0 : i32, i32
  }
  func.func @transform_3(%arg0: i32) -> (i32, i32) {
    %c0_i32 = arith.constant 0 : i32
    %c0_i32_0 = arith.constant 0 : i32
    return %arg0, %c0_i32 : i32, i32
  }
}

module attributes {stable_mosaic.version = 11 : i64} {
  func.func @_linear_kernel(%arg0: i32, %arg1: memref<64x128xf32, #tpu.memory_space<vmem>>, %arg2: memref<128x128xbf16, #tpu.memory_space<vmem>>, %arg3: memref<1x128xf32, #tpu.memory_space<vmem>>, %arg4: memref<64x128xf32, #tpu.memory_space<vmem>>) attributes {dimension_semantics = [#tpu.dimension_semantics<parallel>], iteration_bounds = array<i64: 1>, scalar_prefetch = 0 : i64, scratch_operands = 0 : i64, tpu.core_type = #tpu.core_type<tc>, window_params = [{transform_indices = @transform_0, window_bounds = array<i64: 64, 128>}, {pipeline_mode = #tpu.pipeline_mode<synchronous>, transform_indices = @transform_1, window_bounds = array<i64: 128, 128>}, {pipeline_mode = #tpu.pipeline_mode<synchronous>, transform_indices = @transform_2, window_bounds = array<i64: 1, 128>}, {transform_indices = @transform_3, window_bounds = array<i64: 64, 128>}]} {
    %c0 = arith.constant 0 : index
    %c0_0 = arith.constant 0 : index
    %0 = vector.load %arg1[%c0, %c0_0] : memref<64x128xf32, #tpu.memory_space<vmem>>, vector<64x128xf32>
    %1 = arith.truncf %0 : vector<64x128xf32> to vector<64x128xbf16>
    %c0_1 = arith.constant 0 : index
    %c0_2 = arith.constant 0 : index
    %2 = vector.load %arg2[%c0_1, %c0_2] : memref<128x128xbf16, #tpu.memory_space<vmem>>, vector<128x128xbf16>
    %cst = arith.constant dense<0.000000e+00> : vector<64x128xf32>
    %3 = tpu.matmul %1, %2, %cst {dimension_numbers = #tpu.dot_dimension_numbers<[1], [0], [0], [1], [0, 0, 1, 1], [], []>} : vector<64x128xbf16>, vector<128x128xbf16>, vector<64x128xf32> -> vector<64x128xf32>
    %c0_3 = arith.constant 0 : index
    %c0_4 = arith.constant 0 : index
    %4 = vector.load %arg3[%c0_3, %c0_4] : memref<1x128xf32, #tpu.memory_space<vmem>>, vector<1x128xf32>
    %5 = vector.broadcast %4 : vector<1x128xf32> to vector<64x128xf32>
    %6 = arith.addf %3, %5 : vector<64x128xf32>
    %cst_5 = arith.constant 0.000000e+00 : f32
    %7 = vector.broadcast %cst_5 : f32 to vector<64x128xf32>
    %8 = arith.maximumf %6, %7 : vector<64x128xf32>
    %c0_6 = arith.constant 0 : index
    %c0_7 = arith.constant 0 : index
    %9 = vector.load %arg4[%c0_6, %c0_7] : memref<64x128xf32, #tpu.memory_space<vmem>>, vector<64x128xf32>
    tpu.vector_store %arg4[%c0_6, %c0_7], %8 {strides = array<i32>} : memref<64x128xf32, #tpu.memory_space<vmem>>, vector<64x128xf32>,
    return
  }
  func.func @transform_0(%arg0: i32) -> (i32, i32) {
    %c0_i32 = arith.constant 0 : i32
    %c0_i32_0 = arith.constant 0 : i32
    return %arg0, %c0_i32 : i32, i32
  }
  func.func @transform_1(%arg0: i32) -> (i32, i32) {
    %c0_i32 = arith.constant 0 : i32
    %c0_i32_0 = arith.constant 0 : i32
    %c0_i32_1 = arith.constant 0 : i32
    return %c0_i32, %c0_i32_0 : i32, i32
  }
  func.func @transform_2(%arg0: i32) -> (i32, i32) {
    %c0_i32 = arith.constant 0 : i32
    %c0_i32_0 = arith.constant 0 : i32
    %c0_i32_1 = arith.constant 0 : i32
    return %c0_i32, %c0_i32_0 : i32, i32
  }
  func.func @transform_3(%arg0: i32) -> (i32, i32) {
    %c0_i32 = arith.constant 0 : i32
    %c0_i32_0 = arith.constant 0 : i32
    return %arg0, %c0_i32 : i32, i32
  }
}

module attributes {stable_mosaic.version = 11 : i64} {
  func.func @_gru_kernel(%arg0: i32, %arg1: i32, %arg2: memref<8x8x128xf32, #tpu.memory_space<vmem>>, %arg3: memref<8x1xi32, #tpu.memory_space<vmem>>, %arg4: memref<128x384xbf16, #tpu.memory_space<vmem>>, %arg5: memref<1x384xf32, #tpu.memory_space<vmem>>, %arg6: memref<128x384xbf16, #tpu.memory_space<vmem>>, %arg7: memref<1x384xf32, #tpu.memory_space<vmem>>, %arg8: memref<8x8x128xf32, #tpu.memory_space<vmem>>, %arg9: memref<8x8x384xf32, #tpu.memory_space<vmem>>, %arg10: memref<8x128xf32, #tpu.memory_space<vmem>>) attributes {dimension_semantics = [#tpu.dimension_semantics<parallel>, #tpu.dimension_semantics<arbitrary>], iteration_bounds = array<i64: 1, 1>, scalar_prefetch = 0 : i64, scratch_operands = 2 : i64, tpu.core_type = #tpu.core_type<tc>, window_params = [{transform_indices = @transform_0, window_bounds = array<i64: 8, 8, 128>}, {pipeline_mode = #tpu.pipeline_mode<synchronous>, transform_indices = @transform_1, window_bounds = array<i64: 8, 1>}, {pipeline_mode = #tpu.pipeline_mode<synchronous>, transform_indices = @transform_2, window_bounds = array<i64: 128, 384>}, {pipeline_mode = #tpu.pipeline_mode<synchronous>, transform_indices = @transform_3, window_bounds = array<i64: 1, 384>}, {pipeline_mode = #tpu.pipeline_mode<synchronous>, transform_indices = @transform_4, window_bounds = array<i64: 128, 384>}, {pipeline_mode = #tpu.pipeline_mode<synchronous>, transform_indices = @transform_5, window_bounds = array<i64: 1, 384>}, {transform_indices = @transform_6, window_bounds = array<i64: 8, 8, 128>}]} {
    %c0_i32 = arith.constant 0 : i32
    %0 = arith.cmpi eq, %arg1, %c0_i32 : i32
    %1 = arith.extui %0 : i1 to i32
    %c0_i32_0 = arith.constant 0 : i32
    %2 = arith.cmpi ne, %1, %c0_i32_0 : i32
    scf.if %2 {
      %cst_102 = arith.constant 0.000000e+00 : f32
      %403 = vector.broadcast %cst_102 : f32 to vector<8x128xf32>
      %c0_103 = arith.constant 0 : index
      %c0_104 = arith.constant 0 : index
      %404 = vector.load %arg10[%c0_103, %c0_104] : memref<8x128xf32, #tpu.memory_space<vmem>>, vector<8x128xf32>
      tpu.vector_store %arg10[%c0_103, %c0_104], %403 {strides = array<i32>} : memref<8x128xf32, #tpu.memory_space<vmem>>, vector<8x128xf32>,
    } else {
    }
    %c0 = arith.constant 0 : index
    %c0_1 = arith.constant 0 : index
    %c0_2 = arith.constant 0 : index
    %3 = vector.load %arg2[%c0, %c0_1, %c0_2] : memref<8x8x128xf32, #tpu.memory_space<vmem>>, vector<8x8x128xf32>
    %4 = vector.shape_cast %3 : vector<8x8x128xf32> to vector<64x128xf32>
    %5 = arith.truncf %4 : vector<64x128xf32> to vector<64x128xbf16>
    %c0_3 = arith.constant 0 : index
    %c0_4 = arith.constant 0 : index
    %6 = vector.load %arg4[%c0_3, %c0_4] : memref<128x384xbf16, #tpu.memory_space<vmem>>, vector<128x384xbf16>
    %cst = arith.constant dense<0.000000e+00> : vector<64x384xf32>
    %7 = tpu.matmul %5, %6, %cst {dimension_numbers = #tpu.dot_dimension_numbers<[1], [0], [0], [1], [0, 0, 1, 1], [], []>} : vector<64x128xbf16>, vector<128x384xbf16>, vector<64x384xf32> -> vector<64x384xf32>
    %c0_5 = arith.constant 0 : index
    %c0_6 = arith.constant 0 : index
    %8 = vector.load %arg5[%c0_5, %c0_6] : memref<1x384xf32, #tpu.memory_space<vmem>>, vector<1x384xf32>
    %9 = vector.broadcast %8 : vector<1x384xf32> to vector<64x384xf32>
    %10 = arith.addf %7, %9 : vector<64x384xf32>
    %11 = vector.shape_cast %10 : vector<64x384xf32> to vector<8x8x384xf32>
    %c0_7 = arith.constant 0 : index
    %c0_8 = arith.constant 0 : index
    %c0_9 = arith.constant 0 : index
    %12 = vector.load %arg9[%c0_7, %c0_8, %c0_9] : memref<8x8x384xf32, #tpu.memory_space<vmem>>, vector<8x8x384xf32>
    tpu.vector_store %arg9[%c0_7, %c0_8, %c0_9], %11 {strides = array<i32>} : memref<8x8x384xf32, #tpu.memory_space<vmem>>, vector<8x8x384xf32>,
    %c0_10 = arith.constant 0 : index
    %c0_11 = arith.constant 0 : index
    %13 = vector.load %arg6[%c0_10, %c0_11] : memref<128x384xbf16, #tpu.memory_space<vmem>>, vector<128x384xbf16>
    %c0_12 = arith.constant 0 : index
    %c0_13 = arith.constant 0 : index
    %14 = vector.load %arg7[%c0_12, %c0_13] : memref<1x384xf32, #tpu.memory_space<vmem>>, vector<1x384xf32>
    %c0_14 = arith.constant 0 : index
    %c0_15 = arith.constant 0 : index
    %15 = vector.load %arg3[%c0_14, %c0_15] : memref<8x1xi32, #tpu.memory_space<vmem>>, vector<8x1xi32>
    %c8_i32 = arith.constant 8 : i32
    %16 = arith.muli %arg1, %c8_i32 : i32
    %c0_16 = arith.constant 0 : index
    %c0_17 = arith.constant 0 : index
    %17 = vector.load %arg10[%c0_16, %c0_17] : memref<8x128xf32, #tpu.memory_space<vmem>>, vector<8x128xf32>
    %c0_i32_18 = arith.constant 0 : i32
    %18 = arith.index_cast %c0_i32_18 : i32 to index
    %c0_19 = arith.constant 0 : index
    %c0_20 = arith.constant 0 : index
    %19 = vector.load %arg9[%18, %c0_19, %c0_20] : memref<8x8x384xf32, #tpu.memory_space<vmem>>, vector<1x8x384xf32>
    %20 = vector.shape_cast %19 : vector<1x8x384xf32> to vector<8x384xf32>
    %21 = arith.truncf %17 : vector<8x128xf32> to vector<8x128xbf16>
    %cst_21 = arith.constant dense<0.000000e+00> : vector<8x384xf32>
    %22 = tpu.matmul %21, %13, %cst_21 {dimension_numbers = #tpu.dot_dimension_numbers<[1], [0], [0], [1], [0, 0, 1, 1], [], []>} : vector<8x128xbf16>, vector<128x384xbf16>, vector<8x384xf32> -> vector<8x384xf32>
    %23 = vector.broadcast %14 : vector<1x384xf32> to vector<8x384xf32>
    %24 = arith.addf %22, %23 : vector<8x384xf32>
    %25 = vector.extract_strided_slice %20 {offsets = [0, 0], sizes = [8, 128], strides = [1, 1]} : vector<8x384xf32> to vector<8x128xf32>
    %26 = vector.extract_strided_slice %24 {offsets = [0, 0], sizes = [8, 128], strides = [1, 1]} : vector<8x384xf32> to vector<8x128xf32>
    %27 = arith.addf %25, %26 : vector<8x128xf32>
    %28 = arith.negf %27 : vector<8x128xf32>
    %29 = math.exp %28 : vector<8x128xf32>
    %cst_22 = arith.constant 1.000000e+00 : f32
    %30 = vector.broadcast %cst_22 : f32 to vector<8x128xf32>
    %31 = arith.addf %30, %29 : vector<8x128xf32>
    %32 = arith.divf %30, %31 : vector<8x128xf32>
    %33 = vector.extract_strided_slice %20 {offsets = [0, 128], sizes = [8, 128], strides = [1, 1]} : vector<8x384xf32> to vector<8x128xf32>
    %34 = vector.extract_strided_slice %24 {offsets = [0, 128], sizes = [8, 128], strides = [1, 1]} : vector<8x384xf32> to vector<8x128xf32>
    %35 = arith.addf %33, %34 : vector<8x128xf32>
    %36 = arith.negf %35 : vector<8x128xf32>
    %37 = math.exp %36 : vector<8x128xf32>
    %cst_23 = arith.constant 1.000000e+00 : f32
    %38 = vector.broadcast %cst_23 : f32 to vector<8x128xf32>
    %39 = arith.addf %38, %37 : vector<8x128xf32>
    %40 = arith.divf %38, %39 : vector<8x128xf32>
    %41 = vector.extract_strided_slice %20 {offsets = [0, 256], sizes = [8, 128], strides = [1, 1]} : vector<8x384xf32> to vector<8x128xf32>
    %42 = vector.extract_strided_slice %24 {offsets = [0, 256], sizes = [8, 128], strides = [1, 1]} : vector<8x384xf32> to vector<8x128xf32>
    %43 = arith.mulf %32, %42 : vector<8x128xf32>
    %44 = arith.addf %41, %43 : vector<8x128xf32>
    %45 = math.tanh %44 : vector<8x128xf32>
    %cst_24 = arith.constant 1.000000e+00 : f32
    %46 = vector.broadcast %cst_24 : f32 to vector<8x128xf32>
    %47 = arith.subf %46, %40 : vector<8x128xf32>
    %48 = arith.mulf %47, %45 : vector<8x128xf32>
    %49 = arith.mulf %40, %17 : vector<8x128xf32>
    %50 = arith.addf %48, %49 : vector<8x128xf32>
    %51 = arith.addi %16, %c0_i32_18 : i32
    %52 = vector.broadcast %51 : i32 to vector<8x1xi32>
    %53 = arith.cmpi slt, %52, %15 : vector<8x1xi32>
    %54 = arith.extui %53 : vector<8x1xi1> to vector<8x1xi32>
    %55 = arith.sitofp %54 : vector<8x1xi32> to vector<8x1xf32>
    %56 = arith.index_cast %c0_i32_18 : i32 to index
    %c0_25 = arith.constant 0 : index
    %c0_26 = arith.constant 0 : index
    %57 = vector.load %arg2[%56, %c0_25, %c0_26] : memref<8x8x128xf32, #tpu.memory_space<vmem>>, vector<1x8x128xf32>
    %58 = vector.shape_cast %57 : vector<1x8x128xf32> to vector<8x128xf32>
    %59 = arith.addf %50, %58 : vector<8x128xf32>
    %60 = vector.broadcast %55 : vector<8x1xf32> to vector<8x128xf32>
    %61 = arith.mulf %59, %60 : vector<8x128xf32>
    %62 = arith.index_cast %c0_i32_18 : i32 to index
    %c0_27 = arith.constant 0 : index
    %c0_28 = arith.constant 0 : index
    %63 = vector.load %arg8[%62, %c0_27, %c0_28] : memref<8x8x128xf32, #tpu.memory_space<vmem>>, vector<1x8x128xf32>
    %64 = vector.shape_cast %63 : vector<1x8x128xf32> to vector<8x128xf32>
    %65 = vector.shape_cast %61 : vector<8x128xf32> to vector<1x8x128xf32>
    tpu.vector_store %arg8[%62, %c0_27, %c0_28], %65 {strides = array<i32>} : memref<8x8x128xf32, #tpu.memory_space<vmem>>, vector<1x8x128xf32>,
    %c1_i32 = arith.constant 1 : i32
    %66 = arith.index_cast %c1_i32 : i32 to index
    %c0_29 = arith.constant 0 : index
    %c0_30 = arith.constant 0 : index
    %67 = vector.load %arg9[%66, %c0_29, %c0_30] : memref<8x8x384xf32, #tpu.memory_space<vmem>>, vector<1x8x384xf32>
    %68 = vector.shape_cast %67 : vector<1x8x384xf32> to vector<8x384xf32>
    %69 = arith.truncf %50 : vector<8x128xf32> to vector<8x128xbf16>
    %cst_31 = arith.constant dense<0.000000e+00> : vector<8x384xf32>
    %70 = tpu.matmul %69, %13, %cst_31 {dimension_numbers = #tpu.dot_dimension_numbers<[1], [0], [0], [1], [0, 0, 1, 1], [], []>} : vector<8x128xbf16>, vector<128x384xbf16>, vector<8x384xf32> -> vector<8x384xf32>
    %71 = vector.broadcast %14 : vector<1x384xf32> to vector<8x384xf32>
    %72 = arith.addf %70, %71 : vector<8x384xf32>
    %73 = vector.extract_strided_slice %68 {offsets = [0, 0], sizes = [8, 128], strides = [1, 1]} : vector<8x384xf32> to vector<8x128xf32>
    %74 = vector.extract_strided_slice %72 {offsets = [0, 0], sizes = [8, 128], strides = [1, 1]} : vector<8x384xf32> to vector<8x128xf32>
    %75 = arith.addf %73, %74 : vector<8x128xf32>
    %76 = arith.negf %75 : vector<8x128xf32>
    %77 = math.exp %76 : vector<8x128xf32>
    %cst_32 = arith.constant 1.000000e+00 : f32
    %78 = vector.broadcast %cst_32 : f32 to vector<8x128xf32>
    %79 = arith.addf %78, %77 : vector<8x128xf32>
    %80 = arith.divf %78, %79 : vector<8x128xf32>
    %81 = vector.extract_strided_slice %68 {offsets = [0, 128], sizes = [8, 128], strides = [1, 1]} : vector<8x384xf32> to vector<8x128xf32>
    %82 = vector.extract_strided_slice %72 {offsets = [0, 128], sizes = [8, 128], strides = [1, 1]} : vector<8x384xf32> to vector<8x128xf32>
    %83 = arith.addf %81, %82 : vector<8x128xf32>
    %84 = arith.negf %83 : vector<8x128xf32>
    %85 = math.exp %84 : vector<8x128xf32>
    %cst_33 = arith.constant 1.000000e+00 : f32
    %86 = vector.broadcast %cst_33 : f32 to vector<8x128xf32>
    %87 = arith.addf %86, %85 : vector<8x128xf32>
    %88 = arith.divf %86, %87 : vector<8x128xf32>
    %89 = vector.extract_strided_slice %68 {offsets = [0, 256], sizes = [8, 128], strides = [1, 1]} : vector<8x384xf32> to vector<8x128xf32>
    %90 = vector.extract_strided_slice %72 {offsets = [0, 256], sizes = [8, 128], strides = [1, 1]} : vector<8x384xf32> to vector<8x128xf32>
    %91 = arith.mulf %80, %90 : vector<8x128xf32>
    %92 = arith.addf %89, %91 : vector<8x128xf32>
    %93 = math.tanh %92 : vector<8x128xf32>
    %cst_34 = arith.constant 1.000000e+00 : f32
    %94 = vector.broadcast %cst_34 : f32 to vector<8x128xf32>
    %95 = arith.subf %94, %88 : vector<8x128xf32>
    %96 = arith.mulf %95, %93 : vector<8x128xf32>
    %97 = arith.mulf %88, %50 : vector<8x128xf32>
    %98 = arith.addf %96, %97 : vector<8x128xf32>
    %99 = arith.addi %16, %c1_i32 : i32
    %100 = vector.broadcast %99 : i32 to vector<8x1xi32>
    %101 = arith.cmpi slt, %100, %15 : vector<8x1xi32>
    %102 = arith.extui %101 : vector<8x1xi1> to vector<8x1xi32>
    %103 = arith.sitofp %102 : vector<8x1xi32> to vector<8x1xf32>
    %104 = arith.index_cast %c1_i32 : i32 to index
    %c0_35 = arith.constant 0 : index
    %c0_36 = arith.constant 0 : index
    %105 = vector.load %arg2[%104, %c0_35, %c0_36] : memref<8x8x128xf32, #tpu.memory_space<vmem>>, vector<1x8x128xf32>
    %106 = vector.shape_cast %105 : vector<1x8x128xf32> to vector<8x128xf32>
    %107 = arith.addf %98, %106 : vector<8x128xf32>
    %108 = vector.broadcast %103 : vector<8x1xf32> to vector<8x128xf32>
    %109 = arith.mulf %107, %108 : vector<8x128xf32>
    %110 = arith.index_cast %c1_i32 : i32 to index
    %c0_37 = arith.constant 0 : index
    %c0_38 = arith.constant 0 : index
    %111 = vector.load %arg8[%110, %c0_37, %c0_38] : memref<8x8x128xf32, #tpu.memory_space<vmem>>, vector<1x8x128xf32>
    %112 = vector.shape_cast %111 : vector<1x8x128xf32> to vector<8x128xf32>
    %113 = vector.shape_cast %109 : vector<8x128xf32> to vector<1x8x128xf32>
    tpu.vector_store %arg8[%110, %c0_37, %c0_38], %113 {strides = array<i32>} : memref<8x8x128xf32, #tpu.memory_space<vmem>>, vector<1x8x128xf32>,
    %c2_i32 = arith.constant 2 : i32
    %114 = arith.index_cast %c2_i32 : i32 to index
    %c0_39 = arith.constant 0 : index
    %c0_40 = arith.constant 0 : index
    %115 = vector.load %arg9[%114, %c0_39, %c0_40] : memref<8x8x384xf32, #tpu.memory_space<vmem>>, vector<1x8x384xf32>
    %116 = vector.shape_cast %115 : vector<1x8x384xf32> to vector<8x384xf32>
    %117 = arith.truncf %98 : vector<8x128xf32> to vector<8x128xbf16>
    %cst_41 = arith.constant dense<0.000000e+00> : vector<8x384xf32>
    %118 = tpu.matmul %117, %13, %cst_41 {dimension_numbers = #tpu.dot_dimension_numbers<[1], [0], [0], [1], [0, 0, 1, 1], [], []>} : vector<8x128xbf16>, vector<128x384xbf16>, vector<8x384xf32> -> vector<8x384xf32>
    %119 = vector.broadcast %14 : vector<1x384xf32> to vector<8x384xf32>
    %120 = arith.addf %118, %119 : vector<8x384xf32>
    %121 = vector.extract_strided_slice %116 {offsets = [0, 0], sizes = [8, 128], strides = [1, 1]} : vector<8x384xf32> to vector<8x128xf32>
    %122 = vector.extract_strided_slice %120 {offsets = [0, 0], sizes = [8, 128], strides = [1, 1]} : vector<8x384xf32> to vector<8x128xf32>
    %123 = arith.addf %121, %122 : vector<8x128xf32>
    %124 = arith.negf %123 : vector<8x128xf32>
    %125 = math.exp %124 : vector<8x128xf32>
    %cst_42 = arith.constant 1.000000e+00 : f32
    %126 = vector.broadcast %cst_42 : f32 to vector<8x128xf32>
    %127 = arith.addf %126, %125 : vector<8x128xf32>
    %128 = arith.divf %126, %127 : vector<8x128xf32>
    %129 = vector.extract_strided_slice %116 {offsets = [0, 128], sizes = [8, 128], strides = [1, 1]} : vector<8x384xf32> to vector<8x128xf32>
    %130 = vector.extract_strided_slice %120 {offsets = [0, 128], sizes = [8, 128], strides = [1, 1]} : vector<8x384xf32> to vector<8x128xf32>
    %131 = arith.addf %129, %130 : vector<8x128xf32>
    %132 = arith.negf %131 : vector<8x128xf32>
    %133 = math.exp %132 : vector<8x128xf32>
    %cst_43 = arith.constant 1.000000e+00 : f32
    %134 = vector.broadcast %cst_43 : f32 to vector<8x128xf32>
    %135 = arith.addf %134, %133 : vector<8x128xf32>
    %136 = arith.divf %134, %135 : vector<8x128xf32>
    %137 = vector.extract_strided_slice %116 {offsets = [0, 256], sizes = [8, 128], strides = [1, 1]} : vector<8x384xf32> to vector<8x128xf32>
    %138 = vector.extract_strided_slice %120 {offsets = [0, 256], sizes = [8, 128], strides = [1, 1]} : vector<8x384xf32> to vector<8x128xf32>
    %139 = arith.mulf %128, %138 : vector<8x128xf32>
    %140 = arith.addf %137, %139 : vector<8x128xf32>
    %141 = math.tanh %140 : vector<8x128xf32>
    %cst_44 = arith.constant 1.000000e+00 : f32
    %142 = vector.broadcast %cst_44 : f32 to vector<8x128xf32>
    %143 = arith.subf %142, %136 : vector<8x128xf32>
    %144 = arith.mulf %143, %141 : vector<8x128xf32>
    %145 = arith.mulf %136, %98 : vector<8x128xf32>
    %146 = arith.addf %144, %145 : vector<8x128xf32>
    %147 = arith.addi %16, %c2_i32 : i32
    %148 = vector.broadcast %147 : i32 to vector<8x1xi32>
    %149 = arith.cmpi slt, %148, %15 : vector<8x1xi32>
    %150 = arith.extui %149 : vector<8x1xi1> to vector<8x1xi32>
    %151 = arith.sitofp %150 : vector<8x1xi32> to vector<8x1xf32>
    %152 = arith.index_cast %c2_i32 : i32 to index
    %c0_45 = arith.constant 0 : index
    %c0_46 = arith.constant 0 : index
    %153 = vector.load %arg2[%152, %c0_45, %c0_46] : memref<8x8x128xf32, #tpu.memory_space<vmem>>, vector<1x8x128xf32>
    %154 = vector.shape_cast %153 : vector<1x8x128xf32> to vector<8x128xf32>
    %155 = arith.addf %146, %154 : vector<8x128xf32>
    %156 = vector.broadcast %151 : vector<8x1xf32> to vector<8x128xf32>
    %157 = arith.mulf %155, %156 : vector<8x128xf32>
    %158 = arith.index_cast %c2_i32 : i32 to index
    %c0_47 = arith.constant 0 : index
    %c0_48 = arith.constant 0 : index
    %159 = vector.load %arg8[%158, %c0_47, %c0_48] : memref<8x8x128xf32, #tpu.memory_space<vmem>>, vector<1x8x128xf32>
    %160 = vector.shape_cast %159 : vector<1x8x128xf32> to vector<8x128xf32>
    %161 = vector.shape_cast %157 : vector<8x128xf32> to vector<1x8x128xf32>
    tpu.vector_store %arg8[%158, %c0_47, %c0_48], %161 {strides = array<i32>} : memref<8x8x128xf32, #tpu.memory_space<vmem>>, vector<1x8x128xf32>,
    %c3_i32 = arith.constant 3 : i32
    %162 = arith.index_cast %c3_i32 : i32 to index
    %c0_49 = arith.constant 0 : index
    %c0_50 = arith.constant 0 : index
    %163 = vector.load %arg9[%162, %c0_49, %c0_50] : memref<8x8x384xf32, #tpu.memory_space<vmem>>, vector<1x8x384xf32>
    %164 = vector.shape_cast %163 : vector<1x8x384xf32> to vector<8x384xf32>
    %165 = arith.truncf %146 : vector<8x128xf32> to vector<8x128xbf16>
    %cst_51 = arith.constant dense<0.000000e+00> : vector<8x384xf32>
    %166 = tpu.matmul %165, %13, %cst_51 {dimension_numbers = #tpu.dot_dimension_numbers<[1], [0], [0], [1], [0, 0, 1, 1], [], []>} : vector<8x128xbf16>, vector<128x384xbf16>, vector<8x384xf32> -> vector<8x384xf32>
    %167 = vector.broadcast %14 : vector<1x384xf32> to vector<8x384xf32>
    %168 = arith.addf %166, %167 : vector<8x384xf32>
    %169 = vector.extract_strided_slice %164 {offsets = [0, 0], sizes = [8, 128], strides = [1, 1]} : vector<8x384xf32> to vector<8x128xf32>
    %170 = vector.extract_strided_slice %168 {offsets = [0, 0], sizes = [8, 128], strides = [1, 1]} : vector<8x384xf32> to vector<8x128xf32>
    %171 = arith.addf %169, %170 : vector<8x128xf32>
    %172 = arith.negf %171 : vector<8x128xf32>
    %173 = math.exp %172 : vector<8x128xf32>
    %cst_52 = arith.constant 1.000000e+00 : f32
    %174 = vector.broadcast %cst_52 : f32 to vector<8x128xf32>
    %175 = arith.addf %174, %173 : vector<8x128xf32>
    %176 = arith.divf %174, %175 : vector<8x128xf32>
    %177 = vector.extract_strided_slice %164 {offsets = [0, 128], sizes = [8, 128], strides = [1, 1]} : vector<8x384xf32> to vector<8x128xf32>
    %178 = vector.extract_strided_slice %168 {offsets = [0, 128], sizes = [8, 128], strides = [1, 1]} : vector<8x384xf32> to vector<8x128xf32>
    %179 = arith.addf %177, %178 : vector<8x128xf32>
    %180 = arith.negf %179 : vector<8x128xf32>
    %181 = math.exp %180 : vector<8x128xf32>
    %cst_53 = arith.constant 1.000000e+00 : f32
    %182 = vector.broadcast %cst_53 : f32 to vector<8x128xf32>
    %183 = arith.addf %182, %181 : vector<8x128xf32>
    %184 = arith.divf %182, %183 : vector<8x128xf32>
    %185 = vector.extract_strided_slice %164 {offsets = [0, 256], sizes = [8, 128], strides = [1, 1]} : vector<8x384xf32> to vector<8x128xf32>
    %186 = vector.extract_strided_slice %168 {offsets = [0, 256], sizes = [8, 128], strides = [1, 1]} : vector<8x384xf32> to vector<8x128xf32>
    %187 = arith.mulf %176, %186 : vector<8x128xf32>
    %188 = arith.addf %185, %187 : vector<8x128xf32>
    %189 = math.tanh %188 : vector<8x128xf32>
    %cst_54 = arith.constant 1.000000e+00 : f32
    %190 = vector.broadcast %cst_54 : f32 to vector<8x128xf32>
    %191 = arith.subf %190, %184 : vector<8x128xf32>
    %192 = arith.mulf %191, %189 : vector<8x128xf32>
    %193 = arith.mulf %184, %146 : vector<8x128xf32>
    %194 = arith.addf %192, %193 : vector<8x128xf32>
    %195 = arith.addi %16, %c3_i32 : i32
    %196 = vector.broadcast %195 : i32 to vector<8x1xi32>
    %197 = arith.cmpi slt, %196, %15 : vector<8x1xi32>
    %198 = arith.extui %197 : vector<8x1xi1> to vector<8x1xi32>
    %199 = arith.sitofp %198 : vector<8x1xi32> to vector<8x1xf32>
    %200 = arith.index_cast %c3_i32 : i32 to index
    %c0_55 = arith.constant 0 : index
    %c0_56 = arith.constant 0 : index
    %201 = vector.load %arg2[%200, %c0_55, %c0_56] : memref<8x8x128xf32, #tpu.memory_space<vmem>>, vector<1x8x128xf32>
    %202 = vector.shape_cast %201 : vector<1x8x128xf32> to vector<8x128xf32>
    %203 = arith.addf %194, %202 : vector<8x128xf32>
    %204 = vector.broadcast %199 : vector<8x1xf32> to vector<8x128xf32>
    %205 = arith.mulf %203, %204 : vector<8x128xf32>
    %206 = arith.index_cast %c3_i32 : i32 to index
    %c0_57 = arith.constant 0 : index
    %c0_58 = arith.constant 0 : index
    %207 = vector.load %arg8[%206, %c0_57, %c0_58] : memref<8x8x128xf32, #tpu.memory_space<vmem>>, vector<1x8x128xf32>
    %208 = vector.shape_cast %207 : vector<1x8x128xf32> to vector<8x128xf32>
    %209 = vector.shape_cast %205 : vector<8x128xf32> to vector<1x8x128xf32>
    tpu.vector_store %arg8[%206, %c0_57, %c0_58], %209 {strides = array<i32>} : memref<8x8x128xf32, #tpu.memory_space<vmem>>, vector<1x8x128xf32>,
    %c4_i32 = arith.constant 4 : i32
    %210 = arith.index_cast %c4_i32 : i32 to index
    %c0_59 = arith.constant 0 : index
    %c0_60 = arith.constant 0 : index
    %211 = vector.load %arg9[%210, %c0_59, %c0_60] : memref<8x8x384xf32, #tpu.memory_space<vmem>>, vector<1x8x384xf32>
    %212 = vector.shape_cast %211 : vector<1x8x384xf32> to vector<8x384xf32>
    %213 = arith.truncf %194 : vector<8x128xf32> to vector<8x128xbf16>
    %cst_61 = arith.constant dense<0.000000e+00> : vector<8x384xf32>
    %214 = tpu.matmul %213, %13, %cst_61 {dimension_numbers = #tpu.dot_dimension_numbers<[1], [0], [0], [1], [0, 0, 1, 1], [], []>} : vector<8x128xbf16>, vector<128x384xbf16>, vector<8x384xf32> -> vector<8x384xf32>
    %215 = vector.broadcast %14 : vector<1x384xf32> to vector<8x384xf32>
    %216 = arith.addf %214, %215 : vector<8x384xf32>
    %217 = vector.extract_strided_slice %212 {offsets = [0, 0], sizes = [8, 128], strides = [1, 1]} : vector<8x384xf32> to vector<8x128xf32>
    %218 = vector.extract_strided_slice %216 {offsets = [0, 0], sizes = [8, 128], strides = [1, 1]} : vector<8x384xf32> to vector<8x128xf32>
    %219 = arith.addf %217, %218 : vector<8x128xf32>
    %220 = arith.negf %219 : vector<8x128xf32>
    %221 = math.exp %220 : vector<8x128xf32>
    %cst_62 = arith.constant 1.000000e+00 : f32
    %222 = vector.broadcast %cst_62 : f32 to vector<8x128xf32>
    %223 = arith.addf %222, %221 : vector<8x128xf32>
    %224 = arith.divf %222, %223 : vector<8x128xf32>
    %225 = vector.extract_strided_slice %212 {offsets = [0, 128], sizes = [8, 128], strides = [1, 1]} : vector<8x384xf32> to vector<8x128xf32>
    %226 = vector.extract_strided_slice %216 {offsets = [0, 128], sizes = [8, 128], strides = [1, 1]} : vector<8x384xf32> to vector<8x128xf32>
    %227 = arith.addf %225, %226 : vector<8x128xf32>
    %228 = arith.negf %227 : vector<8x128xf32>
    %229 = math.exp %228 : vector<8x128xf32>
    %cst_63 = arith.constant 1.000000e+00 : f32
    %230 = vector.broadcast %cst_63 : f32 to vector<8x128xf32>
    %231 = arith.addf %230, %229 : vector<8x128xf32>
    %232 = arith.divf %230, %231 : vector<8x128xf32>
    %233 = vector.extract_strided_slice %212 {offsets = [0, 256], sizes = [8, 128], strides = [1, 1]} : vector<8x384xf32> to vector<8x128xf32>
    %234 = vector.extract_strided_slice %216 {offsets = [0, 256], sizes = [8, 128], strides = [1, 1]} : vector<8x384xf32> to vector<8x128xf32>
    %235 = arith.mulf %224, %234 : vector<8x128xf32>
    %236 = arith.addf %233, %235 : vector<8x128xf32>
    %237 = math.tanh %236 : vector<8x128xf32>
    %cst_64 = arith.constant 1.000000e+00 : f32
    %238 = vector.broadcast %cst_64 : f32 to vector<8x128xf32>
    %239 = arith.subf %238, %232 : vector<8x128xf32>
    %240 = arith.mulf %239, %237 : vector<8x128xf32>
    %241 = arith.mulf %232, %194 : vector<8x128xf32>
    %242 = arith.addf %240, %241 : vector<8x128xf32>
    %243 = arith.addi %16, %c4_i32 : i32
    %244 = vector.broadcast %243 : i32 to vector<8x1xi32>
    %245 = arith.cmpi slt, %244, %15 : vector<8x1xi32>
    %246 = arith.extui %245 : vector<8x1xi1> to vector<8x1xi32>
    %247 = arith.sitofp %246 : vector<8x1xi32> to vector<8x1xf32>
    %248 = arith.index_cast %c4_i32 : i32 to index
    %c0_65 = arith.constant 0 : index
    %c0_66 = arith.constant 0 : index
    %249 = vector.load %arg2[%248, %c0_65, %c0_66] : memref<8x8x128xf32, #tpu.memory_space<vmem>>, vector<1x8x128xf32>
    %250 = vector.shape_cast %249 : vector<1x8x128xf32> to vector<8x128xf32>
    %251 = arith.addf %242, %250 : vector<8x128xf32>
    %252 = vector.broadcast %247 : vector<8x1xf32> to vector<8x128xf32>
    %253 = arith.mulf %251, %252 : vector<8x128xf32>
    %254 = arith.index_cast %c4_i32 : i32 to index
    %c0_67 = arith.constant 0 : index
    %c0_68 = arith.constant 0 : index
    %255 = vector.load %arg8[%254, %c0_67, %c0_68] : memref<8x8x128xf32, #tpu.memory_space<vmem>>, vector<1x8x128xf32>
    %256 = vector.shape_cast %255 : vector<1x8x128xf32> to vector<8x128xf32>
    %257 = vector.shape_cast %253 : vector<8x128xf32> to vector<1x8x128xf32>
    tpu.vector_store %arg8[%254, %c0_67, %c0_68], %257 {strides = array<i32>} : memref<8x8x128xf32, #tpu.memory_space<vmem>>, vector<1x8x128xf32>,
    %c5_i32 = arith.constant 5 : i32
    %258 = arith.index_cast %c5_i32 : i32 to index
    %c0_69 = arith.constant 0 : index
    %c0_70 = arith.constant 0 : index
    %259 = vector.load %arg9[%258, %c0_69, %c0_70] : memref<8x8x384xf32, #tpu.memory_space<vmem>>, vector<1x8x384xf32>
    %260 = vector.shape_cast %259 : vector<1x8x384xf32> to vector<8x384xf32>
    %261 = arith.truncf %242 : vector<8x128xf32> to vector<8x128xbf16>
    %cst_71 = arith.constant dense<0.000000e+00> : vector<8x384xf32>
    %262 = tpu.matmul %261, %13, %cst_71 {dimension_numbers = #tpu.dot_dimension_numbers<[1], [0], [0], [1], [0, 0, 1, 1], [], []>} : vector<8x128xbf16>, vector<128x384xbf16>, vector<8x384xf32> -> vector<8x384xf32>
    %263 = vector.broadcast %14 : vector<1x384xf32> to vector<8x384xf32>
    %264 = arith.addf %262, %263 : vector<8x384xf32>
    %265 = vector.extract_strided_slice %260 {offsets = [0, 0], sizes = [8, 128], strides = [1, 1]} : vector<8x384xf32> to vector<8x128xf32>
    %266 = vector.extract_strided_slice %264 {offsets = [0, 0], sizes = [8, 128], strides = [1, 1]} : vector<8x384xf32> to vector<8x128xf32>
    %267 = arith.addf %265, %266 : vector<8x128xf32>
    %268 = arith.negf %267 : vector<8x128xf32>
    %269 = math.exp %268 : vector<8x128xf32>
    %cst_72 = arith.constant 1.000000e+00 : f32
    %270 = vector.broadcast %cst_72 : f32 to vector<8x128xf32>
    %271 = arith.addf %270, %269 : vector<8x128xf32>
    %272 = arith.divf %270, %271 : vector<8x128xf32>
    %273 = vector.extract_strided_slice %260 {offsets = [0, 128], sizes = [8, 128], strides = [1, 1]} : vector<8x384xf32> to vector<8x128xf32>
    %274 = vector.extract_strided_slice %264 {offsets = [0, 128], sizes = [8, 128], strides = [1, 1]} : vector<8x384xf32> to vector<8x128xf32>
    %275 = arith.addf %273, %274 : vector<8x128xf32>
    %276 = arith.negf %275 : vector<8x128xf32>
    %277 = math.exp %276 : vector<8x128xf32>
    %cst_73 = arith.constant 1.000000e+00 : f32
    %278 = vector.broadcast %cst_73 : f32 to vector<8x128xf32>
    %279 = arith.addf %278, %277 : vector<8x128xf32>
    %280 = arith.divf %278, %279 : vector<8x128xf32>
    %281 = vector.extract_strided_slice %260 {offsets = [0, 256], sizes = [8, 128], strides = [1, 1]} : vector<8x384xf32> to vector<8x128xf32>
    %282 = vector.extract_strided_slice %264 {offsets = [0, 256], sizes = [8, 128], strides = [1, 1]} : vector<8x384xf32> to vector<8x128xf32>
    %283 = arith.mulf %272, %282 : vector<8x128xf32>
    %284 = arith.addf %281, %283 : vector<8x128xf32>
    %285 = math.tanh %284 : vector<8x128xf32>
    %cst_74 = arith.constant 1.000000e+00 : f32
    %286 = vector.broadcast %cst_74 : f32 to vector<8x128xf32>
    %287 = arith.subf %286, %280 : vector<8x128xf32>
    %288 = arith.mulf %287, %285 : vector<8x128xf32>
    %289 = arith.mulf %280, %242 : vector<8x128xf32>
    %290 = arith.addf %288, %289 : vector<8x128xf32>
    %291 = arith.addi %16, %c5_i32 : i32
    %292 = vector.broadcast %291 : i32 to vector<8x1xi32>
    %293 = arith.cmpi slt, %292, %15 : vector<8x1xi32>
    %294 = arith.extui %293 : vector<8x1xi1> to vector<8x1xi32>
    %295 = arith.sitofp %294 : vector<8x1xi32> to vector<8x1xf32>
    %296 = arith.index_cast %c5_i32 : i32 to index
    %c0_75 = arith.constant 0 : index
    %c0_76 = arith.constant 0 : index
    %297 = vector.load %arg2[%296, %c0_75, %c0_76] : memref<8x8x128xf32, #tpu.memory_space<vmem>>, vector<1x8x128xf32>
    %298 = vector.shape_cast %297 : vector<1x8x128xf32> to vector<8x128xf32>
    %299 = arith.addf %290, %298 : vector<8x128xf32>
    %300 = vector.broadcast %295 : vector<8x1xf32> to vector<8x128xf32>
    %301 = arith.mulf %299, %300 : vector<8x128xf32>
    %302 = arith.index_cast %c5_i32 : i32 to index
    %c0_77 = arith.constant 0 : index
    %c0_78 = arith.constant 0 : index
    %303 = vector.load %arg8[%302, %c0_77, %c0_78] : memref<8x8x128xf32, #tpu.memory_space<vmem>>, vector<1x8x128xf32>
    %304 = vector.shape_cast %303 : vector<1x8x128xf32> to vector<8x128xf32>
    %305 = vector.shape_cast %301 : vector<8x128xf32> to vector<1x8x128xf32>
    tpu.vector_store %arg8[%302, %c0_77, %c0_78], %305 {strides = array<i32>} : memref<8x8x128xf32, #tpu.memory_space<vmem>>, vector<1x8x128xf32>,
    %c6_i32 = arith.constant 6 : i32
    %306 = arith.index_cast %c6_i32 : i32 to index
    %c0_79 = arith.constant 0 : index
    %c0_80 = arith.constant 0 : index
    %307 = vector.load %arg9[%306, %c0_79, %c0_80] : memref<8x8x384xf32, #tpu.memory_space<vmem>>, vector<1x8x384xf32>
    %308 = vector.shape_cast %307 : vector<1x8x384xf32> to vector<8x384xf32>
    %309 = arith.truncf %290 : vector<8x128xf32> to vector<8x128xbf16>
    %cst_81 = arith.constant dense<0.000000e+00> : vector<8x384xf32>
    %310 = tpu.matmul %309, %13, %cst_81 {dimension_numbers = #tpu.dot_dimension_numbers<[1], [0], [0], [1], [0, 0, 1, 1], [], []>} : vector<8x128xbf16>, vector<128x384xbf16>, vector<8x384xf32> -> vector<8x384xf32>
    %311 = vector.broadcast %14 : vector<1x384xf32> to vector<8x384xf32>
    %312 = arith.addf %310, %311 : vector<8x384xf32>
    %313 = vector.extract_strided_slice %308 {offsets = [0, 0], sizes = [8, 128], strides = [1, 1]} : vector<8x384xf32> to vector<8x128xf32>
    %314 = vector.extract_strided_slice %312 {offsets = [0, 0], sizes = [8, 128], strides = [1, 1]} : vector<8x384xf32> to vector<8x128xf32>
    %315 = arith.addf %313, %314 : vector<8x128xf32>
    %316 = arith.negf %315 : vector<8x128xf32>
    %317 = math.exp %316 : vector<8x128xf32>
    %cst_82 = arith.constant 1.000000e+00 : f32
    %318 = vector.broadcast %cst_82 : f32 to vector<8x128xf32>
    %319 = arith.addf %318, %317 : vector<8x128xf32>
    %320 = arith.divf %318, %319 : vector<8x128xf32>
    %321 = vector.extract_strided_slice %308 {offsets = [0, 128], sizes = [8, 128], strides = [1, 1]} : vector<8x384xf32> to vector<8x128xf32>
    %322 = vector.extract_strided_slice %312 {offsets = [0, 128], sizes = [8, 128], strides = [1, 1]} : vector<8x384xf32> to vector<8x128xf32>
    %323 = arith.addf %321, %322 : vector<8x128xf32>
    %324 = arith.negf %323 : vector<8x128xf32>
    %325 = math.exp %324 : vector<8x128xf32>
    %cst_83 = arith.constant 1.000000e+00 : f32
    %326 = vector.broadcast %cst_83 : f32 to vector<8x128xf32>
    %327 = arith.addf %326, %325 : vector<8x128xf32>
    %328 = arith.divf %326, %327 : vector<8x128xf32>
    %329 = vector.extract_strided_slice %308 {offsets = [0, 256], sizes = [8, 128], strides = [1, 1]} : vector<8x384xf32> to vector<8x128xf32>
    %330 = vector.extract_strided_slice %312 {offsets = [0, 256], sizes = [8, 128], strides = [1, 1]} : vector<8x384xf32> to vector<8x128xf32>
    %331 = arith.mulf %320, %330 : vector<8x128xf32>
    %332 = arith.addf %329, %331 : vector<8x128xf32>
    %333 = math.tanh %332 : vector<8x128xf32>
    %cst_84 = arith.constant 1.000000e+00 : f32
    %334 = vector.broadcast %cst_84 : f32 to vector<8x128xf32>
    %335 = arith.subf %334, %328 : vector<8x128xf32>
    %336 = arith.mulf %335, %333 : vector<8x128xf32>
    %337 = arith.mulf %328, %290 : vector<8x128xf32>
    %338 = arith.addf %336, %337 : vector<8x128xf32>
    %339 = arith.addi %16, %c6_i32 : i32
    %340 = vector.broadcast %339 : i32 to vector<8x1xi32>
    %341 = arith.cmpi slt, %340, %15 : vector<8x1xi32>
    %342 = arith.extui %341 : vector<8x1xi1> to vector<8x1xi32>
    %343 = arith.sitofp %342 : vector<8x1xi32> to vector<8x1xf32>
    %344 = arith.index_cast %c6_i32 : i32 to index
    %c0_85 = arith.constant 0 : index
    %c0_86 = arith.constant 0 : index
    %345 = vector.load %arg2[%344, %c0_85, %c0_86] : memref<8x8x128xf32, #tpu.memory_space<vmem>>, vector<1x8x128xf32>
    %346 = vector.shape_cast %345 : vector<1x8x128xf32> to vector<8x128xf32>
    %347 = arith.addf %338, %346 : vector<8x128xf32>
    %348 = vector.broadcast %343 : vector<8x1xf32> to vector<8x128xf32>
    %349 = arith.mulf %347, %348 : vector<8x128xf32>
    %350 = arith.index_cast %c6_i32 : i32 to index
    %c0_87 = arith.constant 0 : index
    %c0_88 = arith.constant 0 : index
    %351 = vector.load %arg8[%350, %c0_87, %c0_88] : memref<8x8x128xf32, #tpu.memory_space<vmem>>, vector<1x8x128xf32>
    %352 = vector.shape_cast %351 : vector<1x8x128xf32> to vector<8x128xf32>
    %353 = vector.shape_cast %349 : vector<8x128xf32> to vector<1x8x128xf32>
    tpu.vector_store %arg8[%350, %c0_87, %c0_88], %353 {strides = array<i32>} : memref<8x8x128xf32, #tpu.memory_space<vmem>>, vector<1x8x128xf32>,
    %c7_i32 = arith.constant 7 : i32
    %354 = arith.index_cast %c7_i32 : i32 to index
    %c0_89 = arith.constant 0 : index
    %c0_90 = arith.constant 0 : index
    %355 = vector.load %arg9[%354, %c0_89, %c0_90] : memref<8x8x384xf32, #tpu.memory_space<vmem>>, vector<1x8x384xf32>
    %356 = vector.shape_cast %355 : vector<1x8x384xf32> to vector<8x384xf32>
    %357 = arith.truncf %338 : vector<8x128xf32> to vector<8x128xbf16>
    %cst_91 = arith.constant dense<0.000000e+00> : vector<8x384xf32>
    %358 = tpu.matmul %357, %13, %cst_91 {dimension_numbers = #tpu.dot_dimension_numbers<[1], [0], [0], [1], [0, 0, 1, 1], [], []>} : vector<8x128xbf16>, vector<128x384xbf16>, vector<8x384xf32> -> vector<8x384xf32>
    %359 = vector.broadcast %14 : vector<1x384xf32> to vector<8x384xf32>
    %360 = arith.addf %358, %359 : vector<8x384xf32>
    %361 = vector.extract_strided_slice %356 {offsets = [0, 0], sizes = [8, 128], strides = [1, 1]} : vector<8x384xf32> to vector<8x128xf32>
    %362 = vector.extract_strided_slice %360 {offsets = [0, 0], sizes = [8, 128], strides = [1, 1]} : vector<8x384xf32> to vector<8x128xf32>
    %363 = arith.addf %361, %362 : vector<8x128xf32>
    %364 = arith.negf %363 : vector<8x128xf32>
    %365 = math.exp %364 : vector<8x128xf32>
    %cst_92 = arith.constant 1.000000e+00 : f32
    %366 = vector.broadcast %cst_92 : f32 to vector<8x128xf32>
    %367 = arith.addf %366, %365 : vector<8x128xf32>
    %368 = arith.divf %366, %367 : vector<8x128xf32>
    %369 = vector.extract_strided_slice %356 {offsets = [0, 128], sizes = [8, 128], strides = [1, 1]} : vector<8x384xf32> to vector<8x128xf32>
    %370 = vector.extract_strided_slice %360 {offsets = [0, 128], sizes = [8, 128], strides = [1, 1]} : vector<8x384xf32> to vector<8x128xf32>
    %371 = arith.addf %369, %370 : vector<8x128xf32>
    %372 = arith.negf %371 : vector<8x128xf32>
    %373 = math.exp %372 : vector<8x128xf32>
    %cst_93 = arith.constant 1.000000e+00 : f32
    %374 = vector.broadcast %cst_93 : f32 to vector<8x128xf32>
    %375 = arith.addf %374, %373 : vector<8x128xf32>
    %376 = arith.divf %374, %375 : vector<8x128xf32>
    %377 = vector.extract_strided_slice %356 {offsets = [0, 256], sizes = [8, 128], strides = [1, 1]} : vector<8x384xf32> to vector<8x128xf32>
    %378 = vector.extract_strided_slice %360 {offsets = [0, 256], sizes = [8, 128], strides = [1, 1]} : vector<8x384xf32> to vector<8x128xf32>
    %379 = arith.mulf %368, %378 : vector<8x128xf32>
    %380 = arith.addf %377, %379 : vector<8x128xf32>
    %381 = math.tanh %380 : vector<8x128xf32>
    %cst_94 = arith.constant 1.000000e+00 : f32
    %382 = vector.broadcast %cst_94 : f32 to vector<8x128xf32>
    %383 = arith.subf %382, %376 : vector<8x128xf32>
    %384 = arith.mulf %383, %381 : vector<8x128xf32>
    %385 = arith.mulf %376, %338 : vector<8x128xf32>
    %386 = arith.addf %384, %385 : vector<8x128xf32>
    %387 = arith.addi %16, %c7_i32 : i32
    %388 = vector.broadcast %387 : i32 to vector<8x1xi32>
    %389 = arith.cmpi slt, %388, %15 : vector<8x1xi32>
    %390 = arith.extui %389 : vector<8x1xi1> to vector<8x1xi32>
    %391 = arith.sitofp %390 : vector<8x1xi32> to vector<8x1xf32>
    %392 = arith.index_cast %c7_i32 : i32 to index
    %c0_95 = arith.constant 0 : index
    %c0_96 = arith.constant 0 : index
    %393 = vector.load %arg2[%392, %c0_95, %c0_96] : memref<8x8x128xf32, #tpu.memory_space<vmem>>, vector<1x8x128xf32>
    %394 = vector.shape_cast %393 : vector<1x8x128xf32> to vector<8x128xf32>
    %395 = arith.addf %386, %394 : vector<8x128xf32>
    %396 = vector.broadcast %391 : vector<8x1xf32> to vector<8x128xf32>
    %397 = arith.mulf %395, %396 : vector<8x128xf32>
    %398 = arith.index_cast %c7_i32 : i32 to index
    %c0_97 = arith.constant 0 : index
    %c0_98 = arith.constant 0 : index
    %399 = vector.load %arg8[%398, %c0_97, %c0_98] : memref<8x8x128xf32, #tpu.memory_space<vmem>>, vector<1x8x128xf32>
    %400 = vector.shape_cast %399 : vector<1x8x128xf32> to vector<8x128xf32>
    %401 = vector.shape_cast %397 : vector<8x128xf32> to vector<1x8x128xf32>
    tpu.vector_store %arg8[%398, %c0_97, %c0_98], %401 {strides = array<i32>} : memref<8x8x128xf32, #tpu.memory_space<vmem>>, vector<1x8x128xf32>,
    %c8_i32_99 = arith.constant 8 : i32
    %c0_100 = arith.constant 0 : index
    %c0_101 = arith.constant 0 : index
    %402 = vector.load %arg10[%c0_100, %c0_101] : memref<8x128xf32, #tpu.memory_space<vmem>>, vector<8x128xf32>
    tpu.vector_store %arg10[%c0_100, %c0_101], %386 {strides = array<i32>} : memref<8x128xf32, #tpu.memory_space<vmem>>, vector<8x128xf32>,
    return
  }
  func.func @transform_0(%arg0: i32, %arg1: i32) -> (i32, i32, i32) {
    %c0_i32 = arith.constant 0 : i32
    %c0_i32_0 = arith.constant 0 : i32
    return %arg1, %arg0, %c0_i32 : i32, i32, i32
  }
  func.func @transform_1(%arg0: i32, %arg1: i32) -> (i32, i32) {
    %c0_i32 = arith.constant 0 : i32
    %c0_i32_0 = arith.constant 0 : i32
    return %arg0, %c0_i32 : i32, i32
  }
  func.func @transform_2(%arg0: i32, %arg1: i32) -> (i32, i32) {
    %c0_i32 = arith.constant 0 : i32
    %c0_i32_0 = arith.constant 0 : i32
    %c0_i32_1 = arith.constant 0 : i32
    return %c0_i32, %c0_i32_0 : i32, i32
  }
  func.func @transform_3(%arg0: i32, %arg1: i32) -> (i32, i32) {
    %c0_i32 = arith.constant 0 : i32
    %c0_i32_0 = arith.constant 0 : i32
    %c0_i32_1 = arith.constant 0 : i32
    return %c0_i32, %c0_i32_0 : i32, i32
  }
  func.func @transform_4(%arg0: i32, %arg1: i32) -> (i32, i32) {
    %c0_i32 = arith.constant 0 : i32
    %c0_i32_0 = arith.constant 0 : i32
    %c0_i32_1 = arith.constant 0 : i32
    return %c0_i32, %c0_i32_0 : i32, i32
  }
  func.func @transform_5(%arg0: i32, %arg1: i32) -> (i32, i32) {
    %c0_i32 = arith.constant 0 : i32
    %c0_i32_0 = arith.constant 0 : i32
    %c0_i32_1 = arith.constant 0 : i32
    return %c0_i32, %c0_i32_0 : i32, i32
  }
  func.func @transform_6(%arg0: i32, %arg1: i32) -> (i32, i32, i32) {
    %c0_i32 = arith.constant 0 : i32
    %c0_i32_0 = arith.constant 0 : i32
    return %arg1, %arg0, %c0_i32 : i32, i32, i32
  }
}

module attributes {stable_mosaic.version = 11 : i64} {
  func.func @_gru_kernel(%arg0: i32, %arg1: i32, %arg2: memref<8x8x128xf32, #tpu.memory_space<vmem>>, %arg3: memref<8x1xi32, #tpu.memory_space<vmem>>, %arg4: memref<128x384xbf16, #tpu.memory_space<vmem>>, %arg5: memref<1x384xf32, #tpu.memory_space<vmem>>, %arg6: memref<128x384xbf16, #tpu.memory_space<vmem>>, %arg7: memref<1x384xf32, #tpu.memory_space<vmem>>, %arg8: memref<8x8x128xf32, #tpu.memory_space<vmem>>, %arg9: memref<8x8x384xf32, #tpu.memory_space<vmem>>, %arg10: memref<8x128xf32, #tpu.memory_space<vmem>>) attributes {dimension_semantics = [#tpu.dimension_semantics<parallel>, #tpu.dimension_semantics<arbitrary>], iteration_bounds = array<i64: 1, 1>, scalar_prefetch = 0 : i64, scratch_operands = 2 : i64, tpu.core_type = #tpu.core_type<tc>, window_params = [{transform_indices = @transform_0, window_bounds = array<i64: 8, 8, 128>}, {pipeline_mode = #tpu.pipeline_mode<synchronous>, transform_indices = @transform_1, window_bounds = array<i64: 8, 1>}, {pipeline_mode = #tpu.pipeline_mode<synchronous>, transform_indices = @transform_2, window_bounds = array<i64: 128, 384>}, {pipeline_mode = #tpu.pipeline_mode<synchronous>, transform_indices = @transform_3, window_bounds = array<i64: 1, 384>}, {pipeline_mode = #tpu.pipeline_mode<synchronous>, transform_indices = @transform_4, window_bounds = array<i64: 128, 384>}, {pipeline_mode = #tpu.pipeline_mode<synchronous>, transform_indices = @transform_5, window_bounds = array<i64: 1, 384>}, {transform_indices = @transform_6, window_bounds = array<i64: 8, 8, 128>}]} {
    %c0_i32 = arith.constant 0 : i32
    %0 = arith.cmpi eq, %arg1, %c0_i32 : i32
    %1 = arith.extui %0 : i1 to i32
    %c0_i32_0 = arith.constant 0 : i32
    %2 = arith.cmpi ne, %1, %c0_i32_0 : i32
    scf.if %2 {
      %cst_102 = arith.constant 0.000000e+00 : f32
      %403 = vector.broadcast %cst_102 : f32 to vector<8x128xf32>
      %c0_103 = arith.constant 0 : index
      %c0_104 = arith.constant 0 : index
      %404 = vector.load %arg10[%c0_103, %c0_104] : memref<8x128xf32, #tpu.memory_space<vmem>>, vector<8x128xf32>
      tpu.vector_store %arg10[%c0_103, %c0_104], %403 {strides = array<i32>} : memref<8x128xf32, #tpu.memory_space<vmem>>, vector<8x128xf32>,
    } else {
    }
    %c0 = arith.constant 0 : index
    %c0_1 = arith.constant 0 : index
    %c0_2 = arith.constant 0 : index
    %3 = vector.load %arg2[%c0, %c0_1, %c0_2] : memref<8x8x128xf32, #tpu.memory_space<vmem>>, vector<8x8x128xf32>
    %4 = vector.shape_cast %3 : vector<8x8x128xf32> to vector<64x128xf32>
    %5 = arith.truncf %4 : vector<64x128xf32> to vector<64x128xbf16>
    %c0_3 = arith.constant 0 : index
    %c0_4 = arith.constant 0 : index
    %6 = vector.load %arg4[%c0_3, %c0_4] : memref<128x384xbf16, #tpu.memory_space<vmem>>, vector<128x384xbf16>
    %cst = arith.constant dense<0.000000e+00> : vector<64x384xf32>
    %7 = tpu.matmul %5, %6, %cst {dimension_numbers = #tpu.dot_dimension_numbers<[1], [0], [0], [1], [0, 0, 1, 1], [], []>} : vector<64x128xbf16>, vector<128x384xbf16>, vector<64x384xf32> -> vector<64x384xf32>
    %c0_5 = arith.constant 0 : index
    %c0_6 = arith.constant 0 : index
    %8 = vector.load %arg5[%c0_5, %c0_6] : memref<1x384xf32, #tpu.memory_space<vmem>>, vector<1x384xf32>
    %9 = vector.broadcast %8 : vector<1x384xf32> to vector<64x384xf32>
    %10 = arith.addf %7, %9 : vector<64x384xf32>
    %11 = vector.shape_cast %10 : vector<64x384xf32> to vector<8x8x384xf32>
    %c0_7 = arith.constant 0 : index
    %c0_8 = arith.constant 0 : index
    %c0_9 = arith.constant 0 : index
    %12 = vector.load %arg9[%c0_7, %c0_8, %c0_9] : memref<8x8x384xf32, #tpu.memory_space<vmem>>, vector<8x8x384xf32>
    tpu.vector_store %arg9[%c0_7, %c0_8, %c0_9], %11 {strides = array<i32>} : memref<8x8x384xf32, #tpu.memory_space<vmem>>, vector<8x8x384xf32>,
    %c0_10 = arith.constant 0 : index
    %c0_11 = arith.constant 0 : index
    %13 = vector.load %arg6[%c0_10, %c0_11] : memref<128x384xbf16, #tpu.memory_space<vmem>>, vector<128x384xbf16>
    %c0_12 = arith.constant 0 : index
    %c0_13 = arith.constant 0 : index
    %14 = vector.load %arg7[%c0_12, %c0_13] : memref<1x384xf32, #tpu.memory_space<vmem>>, vector<1x384xf32>
    %c0_14 = arith.constant 0 : index
    %c0_15 = arith.constant 0 : index
    %15 = vector.load %arg3[%c0_14, %c0_15] : memref<8x1xi32, #tpu.memory_space<vmem>>, vector<8x1xi32>
    %c8_i32 = arith.constant 8 : i32
    %16 = arith.muli %arg1, %c8_i32 : i32
    %c0_16 = arith.constant 0 : index
    %c0_17 = arith.constant 0 : index
    %17 = vector.load %arg10[%c0_16, %c0_17] : memref<8x128xf32, #tpu.memory_space<vmem>>, vector<8x128xf32>
    %c0_i32_18 = arith.constant 0 : i32
    %18 = arith.index_cast %c0_i32_18 : i32 to index
    %c0_19 = arith.constant 0 : index
    %c0_20 = arith.constant 0 : index
    %19 = vector.load %arg9[%18, %c0_19, %c0_20] : memref<8x8x384xf32, #tpu.memory_space<vmem>>, vector<1x8x384xf32>
    %20 = vector.shape_cast %19 : vector<1x8x384xf32> to vector<8x384xf32>
    %21 = arith.truncf %17 : vector<8x128xf32> to vector<8x128xbf16>
    %cst_21 = arith.constant dense<0.000000e+00> : vector<8x384xf32>
    %22 = tpu.matmul %21, %13, %cst_21 {dimension_numbers = #tpu.dot_dimension_numbers<[1], [0], [0], [1], [0, 0, 1, 1], [], []>} : vector<8x128xbf16>, vector<128x384xbf16>, vector<8x384xf32> -> vector<8x384xf32>
    %23 = vector.broadcast %14 : vector<1x384xf32> to vector<8x384xf32>
    %24 = arith.addf %22, %23 : vector<8x384xf32>
    %25 = vector.extract_strided_slice %20 {offsets = [0, 0], sizes = [8, 128], strides = [1, 1]} : vector<8x384xf32> to vector<8x128xf32>
    %26 = vector.extract_strided_slice %24 {offsets = [0, 0], sizes = [8, 128], strides = [1, 1]} : vector<8x384xf32> to vector<8x128xf32>
    %27 = arith.addf %25, %26 : vector<8x128xf32>
    %28 = arith.negf %27 : vector<8x128xf32>
    %29 = math.exp %28 : vector<8x128xf32>
    %cst_22 = arith.constant 1.000000e+00 : f32
    %30 = vector.broadcast %cst_22 : f32 to vector<8x128xf32>
    %31 = arith.addf %30, %29 : vector<8x128xf32>
    %32 = arith.divf %30, %31 : vector<8x128xf32>
    %33 = vector.extract_strided_slice %20 {offsets = [0, 128], sizes = [8, 128], strides = [1, 1]} : vector<8x384xf32> to vector<8x128xf32>
    %34 = vector.extract_strided_slice %24 {offsets = [0, 128], sizes = [8, 128], strides = [1, 1]} : vector<8x384xf32> to vector<8x128xf32>
    %35 = arith.addf %33, %34 : vector<8x128xf32>
    %36 = arith.negf %35 : vector<8x128xf32>
    %37 = math.exp %36 : vector<8x128xf32>
    %cst_23 = arith.constant 1.000000e+00 : f32
    %38 = vector.broadcast %cst_23 : f32 to vector<8x128xf32>
    %39 = arith.addf %38, %37 : vector<8x128xf32>
    %40 = arith.divf %38, %39 : vector<8x128xf32>
    %41 = vector.extract_strided_slice %20 {offsets = [0, 256], sizes = [8, 128], strides = [1, 1]} : vector<8x384xf32> to vector<8x128xf32>
    %42 = vector.extract_strided_slice %24 {offsets = [0, 256], sizes = [8, 128], strides = [1, 1]} : vector<8x384xf32> to vector<8x128xf32>
    %43 = arith.mulf %32, %42 : vector<8x128xf32>
    %44 = arith.addf %41, %43 : vector<8x128xf32>
    %45 = math.tanh %44 : vector<8x128xf32>
    %cst_24 = arith.constant 1.000000e+00 : f32
    %46 = vector.broadcast %cst_24 : f32 to vector<8x128xf32>
    %47 = arith.subf %46, %40 : vector<8x128xf32>
    %48 = arith.mulf %47, %45 : vector<8x128xf32>
    %49 = arith.mulf %40, %17 : vector<8x128xf32>
    %50 = arith.addf %48, %49 : vector<8x128xf32>
    %51 = arith.addi %16, %c0_i32_18 : i32
    %52 = vector.broadcast %51 : i32 to vector<8x1xi32>
    %53 = arith.cmpi slt, %52, %15 : vector<8x1xi32>
    %54 = arith.extui %53 : vector<8x1xi1> to vector<8x1xi32>
    %55 = arith.sitofp %54 : vector<8x1xi32> to vector<8x1xf32>
    %56 = arith.index_cast %c0_i32_18 : i32 to index
    %c0_25 = arith.constant 0 : index
    %c0_26 = arith.constant 0 : index
    %57 = vector.load %arg2[%56, %c0_25, %c0_26] : memref<8x8x128xf32, #tpu.memory_space<vmem>>, vector<1x8x128xf32>
    %58 = vector.shape_cast %57 : vector<1x8x128xf32> to vector<8x128xf32>
    %59 = arith.addf %50, %58 : vector<8x128xf32>
    %60 = vector.broadcast %55 : vector<8x1xf32> to vector<8x128xf32>
    %61 = arith.mulf %59, %60 : vector<8x128xf32>
    %62 = arith.index_cast %c0_i32_18 : i32 to index
    %c0_27 = arith.constant 0 : index
    %c0_28 = arith.constant 0 : index
    %63 = vector.load %arg8[%62, %c0_27, %c0_28] : memref<8x8x128xf32, #tpu.memory_space<vmem>>, vector<1x8x128xf32>
    %64 = vector.shape_cast %63 : vector<1x8x128xf32> to vector<8x128xf32>
    %65 = vector.shape_cast %61 : vector<8x128xf32> to vector<1x8x128xf32>
    tpu.vector_store %arg8[%62, %c0_27, %c0_28], %65 {strides = array<i32>} : memref<8x8x128xf32, #tpu.memory_space<vmem>>, vector<1x8x128xf32>,
    %c1_i32 = arith.constant 1 : i32
    %66 = arith.index_cast %c1_i32 : i32 to index
    %c0_29 = arith.constant 0 : index
    %c0_30 = arith.constant 0 : index
    %67 = vector.load %arg9[%66, %c0_29, %c0_30] : memref<8x8x384xf32, #tpu.memory_space<vmem>>, vector<1x8x384xf32>
    %68 = vector.shape_cast %67 : vector<1x8x384xf32> to vector<8x384xf32>
    %69 = arith.truncf %50 : vector<8x128xf32> to vector<8x128xbf16>
    %cst_31 = arith.constant dense<0.000000e+00> : vector<8x384xf32>
    %70 = tpu.matmul %69, %13, %cst_31 {dimension_numbers = #tpu.dot_dimension_numbers<[1], [0], [0], [1], [0, 0, 1, 1], [], []>} : vector<8x128xbf16>, vector<128x384xbf16>, vector<8x384xf32> -> vector<8x384xf32>
    %71 = vector.broadcast %14 : vector<1x384xf32> to vector<8x384xf32>
    %72 = arith.addf %70, %71 : vector<8x384xf32>
    %73 = vector.extract_strided_slice %68 {offsets = [0, 0], sizes = [8, 128], strides = [1, 1]} : vector<8x384xf32> to vector<8x128xf32>
    %74 = vector.extract_strided_slice %72 {offsets = [0, 0], sizes = [8, 128], strides = [1, 1]} : vector<8x384xf32> to vector<8x128xf32>
    %75 = arith.addf %73, %74 : vector<8x128xf32>
    %76 = arith.negf %75 : vector<8x128xf32>
    %77 = math.exp %76 : vector<8x128xf32>
    %cst_32 = arith.constant 1.000000e+00 : f32
    %78 = vector.broadcast %cst_32 : f32 to vector<8x128xf32>
    %79 = arith.addf %78, %77 : vector<8x128xf32>
    %80 = arith.divf %78, %79 : vector<8x128xf32>
    %81 = vector.extract_strided_slice %68 {offsets = [0, 128], sizes = [8, 128], strides = [1, 1]} : vector<8x384xf32> to vector<8x128xf32>
    %82 = vector.extract_strided_slice %72 {offsets = [0, 128], sizes = [8, 128], strides = [1, 1]} : vector<8x384xf32> to vector<8x128xf32>
    %83 = arith.addf %81, %82 : vector<8x128xf32>
    %84 = arith.negf %83 : vector<8x128xf32>
    %85 = math.exp %84 : vector<8x128xf32>
    %cst_33 = arith.constant 1.000000e+00 : f32
    %86 = vector.broadcast %cst_33 : f32 to vector<8x128xf32>
    %87 = arith.addf %86, %85 : vector<8x128xf32>
    %88 = arith.divf %86, %87 : vector<8x128xf32>
    %89 = vector.extract_strided_slice %68 {offsets = [0, 256], sizes = [8, 128], strides = [1, 1]} : vector<8x384xf32> to vector<8x128xf32>
    %90 = vector.extract_strided_slice %72 {offsets = [0, 256], sizes = [8, 128], strides = [1, 1]} : vector<8x384xf32> to vector<8x128xf32>
    %91 = arith.mulf %80, %90 : vector<8x128xf32>
    %92 = arith.addf %89, %91 : vector<8x128xf32>
    %93 = math.tanh %92 : vector<8x128xf32>
    %cst_34 = arith.constant 1.000000e+00 : f32
    %94 = vector.broadcast %cst_34 : f32 to vector<8x128xf32>
    %95 = arith.subf %94, %88 : vector<8x128xf32>
    %96 = arith.mulf %95, %93 : vector<8x128xf32>
    %97 = arith.mulf %88, %50 : vector<8x128xf32>
    %98 = arith.addf %96, %97 : vector<8x128xf32>
    %99 = arith.addi %16, %c1_i32 : i32
    %100 = vector.broadcast %99 : i32 to vector<8x1xi32>
    %101 = arith.cmpi slt, %100, %15 : vector<8x1xi32>
    %102 = arith.extui %101 : vector<8x1xi1> to vector<8x1xi32>
    %103 = arith.sitofp %102 : vector<8x1xi32> to vector<8x1xf32>
    %104 = arith.index_cast %c1_i32 : i32 to index
    %c0_35 = arith.constant 0 : index
    %c0_36 = arith.constant 0 : index
    %105 = vector.load %arg2[%104, %c0_35, %c0_36] : memref<8x8x128xf32, #tpu.memory_space<vmem>>, vector<1x8x128xf32>
    %106 = vector.shape_cast %105 : vector<1x8x128xf32> to vector<8x128xf32>
    %107 = arith.addf %98, %106 : vector<8x128xf32>
    %108 = vector.broadcast %103 : vector<8x1xf32> to vector<8x128xf32>
    %109 = arith.mulf %107, %108 : vector<8x128xf32>
    %110 = arith.index_cast %c1_i32 : i32 to index
    %c0_37 = arith.constant 0 : index
    %c0_38 = arith.constant 0 : index
    %111 = vector.load %arg8[%110, %c0_37, %c0_38] : memref<8x8x128xf32, #tpu.memory_space<vmem>>, vector<1x8x128xf32>
    %112 = vector.shape_cast %111 : vector<1x8x128xf32> to vector<8x128xf32>
    %113 = vector.shape_cast %109 : vector<8x128xf32> to vector<1x8x128xf32>
    tpu.vector_store %arg8[%110, %c0_37, %c0_38], %113 {strides = array<i32>} : memref<8x8x128xf32, #tpu.memory_space<vmem>>, vector<1x8x128xf32>,
    %c2_i32 = arith.constant 2 : i32
    %114 = arith.index_cast %c2_i32 : i32 to index
    %c0_39 = arith.constant 0 : index
    %c0_40 = arith.constant 0 : index
    %115 = vector.load %arg9[%114, %c0_39, %c0_40] : memref<8x8x384xf32, #tpu.memory_space<vmem>>, vector<1x8x384xf32>
    %116 = vector.shape_cast %115 : vector<1x8x384xf32> to vector<8x384xf32>
    %117 = arith.truncf %98 : vector<8x128xf32> to vector<8x128xbf16>
    %cst_41 = arith.constant dense<0.000000e+00> : vector<8x384xf32>
    %118 = tpu.matmul %117, %13, %cst_41 {dimension_numbers = #tpu.dot_dimension_numbers<[1], [0], [0], [1], [0, 0, 1, 1], [], []>} : vector<8x128xbf16>, vector<128x384xbf16>, vector<8x384xf32> -> vector<8x384xf32>
    %119 = vector.broadcast %14 : vector<1x384xf32> to vector<8x384xf32>
    %120 = arith.addf %118, %119 : vector<8x384xf32>
    %121 = vector.extract_strided_slice %116 {offsets = [0, 0], sizes = [8, 128], strides = [1, 1]} : vector<8x384xf32> to vector<8x128xf32>
    %122 = vector.extract_strided_slice %120 {offsets = [0, 0], sizes = [8, 128], strides = [1, 1]} : vector<8x384xf32> to vector<8x128xf32>
    %123 = arith.addf %121, %122 : vector<8x128xf32>
    %124 = arith.negf %123 : vector<8x128xf32>
    %125 = math.exp %124 : vector<8x128xf32>
    %cst_42 = arith.constant 1.000000e+00 : f32
    %126 = vector.broadcast %cst_42 : f32 to vector<8x128xf32>
    %127 = arith.addf %126, %125 : vector<8x128xf32>
    %128 = arith.divf %126, %127 : vector<8x128xf32>
    %129 = vector.extract_strided_slice %116 {offsets = [0, 128], sizes = [8, 128], strides = [1, 1]} : vector<8x384xf32> to vector<8x128xf32>
    %130 = vector.extract_strided_slice %120 {offsets = [0, 128], sizes = [8, 128], strides = [1, 1]} : vector<8x384xf32> to vector<8x128xf32>
    %131 = arith.addf %129, %130 : vector<8x128xf32>
    %132 = arith.negf %131 : vector<8x128xf32>
    %133 = math.exp %132 : vector<8x128xf32>
    %cst_43 = arith.constant 1.000000e+00 : f32
    %134 = vector.broadcast %cst_43 : f32 to vector<8x128xf32>
    %135 = arith.addf %134, %133 : vector<8x128xf32>
    %136 = arith.divf %134, %135 : vector<8x128xf32>
    %137 = vector.extract_strided_slice %116 {offsets = [0, 256], sizes = [8, 128], strides = [1, 1]} : vector<8x384xf32> to vector<8x128xf32>
    %138 = vector.extract_strided_slice %120 {offsets = [0, 256], sizes = [8, 128], strides = [1, 1]} : vector<8x384xf32> to vector<8x128xf32>
    %139 = arith.mulf %128, %138 : vector<8x128xf32>
    %140 = arith.addf %137, %139 : vector<8x128xf32>
    %141 = math.tanh %140 : vector<8x128xf32>
    %cst_44 = arith.constant 1.000000e+00 : f32
    %142 = vector.broadcast %cst_44 : f32 to vector<8x128xf32>
    %143 = arith.subf %142, %136 : vector<8x128xf32>
    %144 = arith.mulf %143, %141 : vector<8x128xf32>
    %145 = arith.mulf %136, %98 : vector<8x128xf32>
    %146 = arith.addf %144, %145 : vector<8x128xf32>
    %147 = arith.addi %16, %c2_i32 : i32
    %148 = vector.broadcast %147 : i32 to vector<8x1xi32>
    %149 = arith.cmpi slt, %148, %15 : vector<8x1xi32>
    %150 = arith.extui %149 : vector<8x1xi1> to vector<8x1xi32>
    %151 = arith.sitofp %150 : vector<8x1xi32> to vector<8x1xf32>
    %152 = arith.index_cast %c2_i32 : i32 to index
    %c0_45 = arith.constant 0 : index
    %c0_46 = arith.constant 0 : index
    %153 = vector.load %arg2[%152, %c0_45, %c0_46] : memref<8x8x128xf32, #tpu.memory_space<vmem>>, vector<1x8x128xf32>
    %154 = vector.shape_cast %153 : vector<1x8x128xf32> to vector<8x128xf32>
    %155 = arith.addf %146, %154 : vector<8x128xf32>
    %156 = vector.broadcast %151 : vector<8x1xf32> to vector<8x128xf32>
    %157 = arith.mulf %155, %156 : vector<8x128xf32>
    %158 = arith.index_cast %c2_i32 : i32 to index
    %c0_47 = arith.constant 0 : index
    %c0_48 = arith.constant 0 : index
    %159 = vector.load %arg8[%158, %c0_47, %c0_48] : memref<8x8x128xf32, #tpu.memory_space<vmem>>, vector<1x8x128xf32>
    %160 = vector.shape_cast %159 : vector<1x8x128xf32> to vector<8x128xf32>
    %161 = vector.shape_cast %157 : vector<8x128xf32> to vector<1x8x128xf32>
    tpu.vector_store %arg8[%158, %c0_47, %c0_48], %161 {strides = array<i32>} : memref<8x8x128xf32, #tpu.memory_space<vmem>>, vector<1x8x128xf32>,
    %c3_i32 = arith.constant 3 : i32
    %162 = arith.index_cast %c3_i32 : i32 to index
    %c0_49 = arith.constant 0 : index
    %c0_50 = arith.constant 0 : index
    %163 = vector.load %arg9[%162, %c0_49, %c0_50] : memref<8x8x384xf32, #tpu.memory_space<vmem>>, vector<1x8x384xf32>
    %164 = vector.shape_cast %163 : vector<1x8x384xf32> to vector<8x384xf32>
    %165 = arith.truncf %146 : vector<8x128xf32> to vector<8x128xbf16>
    %cst_51 = arith.constant dense<0.000000e+00> : vector<8x384xf32>
    %166 = tpu.matmul %165, %13, %cst_51 {dimension_numbers = #tpu.dot_dimension_numbers<[1], [0], [0], [1], [0, 0, 1, 1], [], []>} : vector<8x128xbf16>, vector<128x384xbf16>, vector<8x384xf32> -> vector<8x384xf32>
    %167 = vector.broadcast %14 : vector<1x384xf32> to vector<8x384xf32>
    %168 = arith.addf %166, %167 : vector<8x384xf32>
    %169 = vector.extract_strided_slice %164 {offsets = [0, 0], sizes = [8, 128], strides = [1, 1]} : vector<8x384xf32> to vector<8x128xf32>
    %170 = vector.extract_strided_slice %168 {offsets = [0, 0], sizes = [8, 128], strides = [1, 1]} : vector<8x384xf32> to vector<8x128xf32>
    %171 = arith.addf %169, %170 : vector<8x128xf32>
    %172 = arith.negf %171 : vector<8x128xf32>
    %173 = math.exp %172 : vector<8x128xf32>
    %cst_52 = arith.constant 1.000000e+00 : f32
    %174 = vector.broadcast %cst_52 : f32 to vector<8x128xf32>
    %175 = arith.addf %174, %173 : vector<8x128xf32>
    %176 = arith.divf %174, %175 : vector<8x128xf32>
    %177 = vector.extract_strided_slice %164 {offsets = [0, 128], sizes = [8, 128], strides = [1, 1]} : vector<8x384xf32> to vector<8x128xf32>
    %178 = vector.extract_strided_slice %168 {offsets = [0, 128], sizes = [8, 128], strides = [1, 1]} : vector<8x384xf32> to vector<8x128xf32>
    %179 = arith.addf %177, %178 : vector<8x128xf32>
    %180 = arith.negf %179 : vector<8x128xf32>
    %181 = math.exp %180 : vector<8x128xf32>
    %cst_53 = arith.constant 1.000000e+00 : f32
    %182 = vector.broadcast %cst_53 : f32 to vector<8x128xf32>
    %183 = arith.addf %182, %181 : vector<8x128xf32>
    %184 = arith.divf %182, %183 : vector<8x128xf32>
    %185 = vector.extract_strided_slice %164 {offsets = [0, 256], sizes = [8, 128], strides = [1, 1]} : vector<8x384xf32> to vector<8x128xf32>
    %186 = vector.extract_strided_slice %168 {offsets = [0, 256], sizes = [8, 128], strides = [1, 1]} : vector<8x384xf32> to vector<8x128xf32>
    %187 = arith.mulf %176, %186 : vector<8x128xf32>
    %188 = arith.addf %185, %187 : vector<8x128xf32>
    %189 = math.tanh %188 : vector<8x128xf32>
    %cst_54 = arith.constant 1.000000e+00 : f32
    %190 = vector.broadcast %cst_54 : f32 to vector<8x128xf32>
    %191 = arith.subf %190, %184 : vector<8x128xf32>
    %192 = arith.mulf %191, %189 : vector<8x128xf32>
    %193 = arith.mulf %184, %146 : vector<8x128xf32>
    %194 = arith.addf %192, %193 : vector<8x128xf32>
    %195 = arith.addi %16, %c3_i32 : i32
    %196 = vector.broadcast %195 : i32 to vector<8x1xi32>
    %197 = arith.cmpi slt, %196, %15 : vector<8x1xi32>
    %198 = arith.extui %197 : vector<8x1xi1> to vector<8x1xi32>
    %199 = arith.sitofp %198 : vector<8x1xi32> to vector<8x1xf32>
    %200 = arith.index_cast %c3_i32 : i32 to index
    %c0_55 = arith.constant 0 : index
    %c0_56 = arith.constant 0 : index
    %201 = vector.load %arg2[%200, %c0_55, %c0_56] : memref<8x8x128xf32, #tpu.memory_space<vmem>>, vector<1x8x128xf32>
    %202 = vector.shape_cast %201 : vector<1x8x128xf32> to vector<8x128xf32>
    %203 = arith.addf %194, %202 : vector<8x128xf32>
    %204 = vector.broadcast %199 : vector<8x1xf32> to vector<8x128xf32>
    %205 = arith.mulf %203, %204 : vector<8x128xf32>
    %206 = arith.index_cast %c3_i32 : i32 to index
    %c0_57 = arith.constant 0 : index
    %c0_58 = arith.constant 0 : index
    %207 = vector.load %arg8[%206, %c0_57, %c0_58] : memref<8x8x128xf32, #tpu.memory_space<vmem>>, vector<1x8x128xf32>
    %208 = vector.shape_cast %207 : vector<1x8x128xf32> to vector<8x128xf32>
    %209 = vector.shape_cast %205 : vector<8x128xf32> to vector<1x8x128xf32>
    tpu.vector_store %arg8[%206, %c0_57, %c0_58], %209 {strides = array<i32>} : memref<8x8x128xf32, #tpu.memory_space<vmem>>, vector<1x8x128xf32>,
    %c4_i32 = arith.constant 4 : i32
    %210 = arith.index_cast %c4_i32 : i32 to index
    %c0_59 = arith.constant 0 : index
    %c0_60 = arith.constant 0 : index
    %211 = vector.load %arg9[%210, %c0_59, %c0_60] : memref<8x8x384xf32, #tpu.memory_space<vmem>>, vector<1x8x384xf32>
    %212 = vector.shape_cast %211 : vector<1x8x384xf32> to vector<8x384xf32>
    %213 = arith.truncf %194 : vector<8x128xf32> to vector<8x128xbf16>
    %cst_61 = arith.constant dense<0.000000e+00> : vector<8x384xf32>
    %214 = tpu.matmul %213, %13, %cst_61 {dimension_numbers = #tpu.dot_dimension_numbers<[1], [0], [0], [1], [0, 0, 1, 1], [], []>} : vector<8x128xbf16>, vector<128x384xbf16>, vector<8x384xf32> -> vector<8x384xf32>
    %215 = vector.broadcast %14 : vector<1x384xf32> to vector<8x384xf32>
    %216 = arith.addf %214, %215 : vector<8x384xf32>
    %217 = vector.extract_strided_slice %212 {offsets = [0, 0], sizes = [8, 128], strides = [1, 1]} : vector<8x384xf32> to vector<8x128xf32>
    %218 = vector.extract_strided_slice %216 {offsets = [0, 0], sizes = [8, 128], strides = [1, 1]} : vector<8x384xf32> to vector<8x128xf32>
    %219 = arith.addf %217, %218 : vector<8x128xf32>
    %220 = arith.negf %219 : vector<8x128xf32>
    %221 = math.exp %220 : vector<8x128xf32>
    %cst_62 = arith.constant 1.000000e+00 : f32
    %222 = vector.broadcast %cst_62 : f32 to vector<8x128xf32>
    %223 = arith.addf %222, %221 : vector<8x128xf32>
    %224 = arith.divf %222, %223 : vector<8x128xf32>
    %225 = vector.extract_strided_slice %212 {offsets = [0, 128], sizes = [8, 128], strides = [1, 1]} : vector<8x384xf32> to vector<8x128xf32>
    %226 = vector.extract_strided_slice %216 {offsets = [0, 128], sizes = [8, 128], strides = [1, 1]} : vector<8x384xf32> to vector<8x128xf32>
    %227 = arith.addf %225, %226 : vector<8x128xf32>
    %228 = arith.negf %227 : vector<8x128xf32>
    %229 = math.exp %228 : vector<8x128xf32>
    %cst_63 = arith.constant 1.000000e+00 : f32
    %230 = vector.broadcast %cst_63 : f32 to vector<8x128xf32>
    %231 = arith.addf %230, %229 : vector<8x128xf32>
    %232 = arith.divf %230, %231 : vector<8x128xf32>
    %233 = vector.extract_strided_slice %212 {offsets = [0, 256], sizes = [8, 128], strides = [1, 1]} : vector<8x384xf32> to vector<8x128xf32>
    %234 = vector.extract_strided_slice %216 {offsets = [0, 256], sizes = [8, 128], strides = [1, 1]} : vector<8x384xf32> to vector<8x128xf32>
    %235 = arith.mulf %224, %234 : vector<8x128xf32>
    %236 = arith.addf %233, %235 : vector<8x128xf32>
    %237 = math.tanh %236 : vector<8x128xf32>
    %cst_64 = arith.constant 1.000000e+00 : f32
    %238 = vector.broadcast %cst_64 : f32 to vector<8x128xf32>
    %239 = arith.subf %238, %232 : vector<8x128xf32>
    %240 = arith.mulf %239, %237 : vector<8x128xf32>
    %241 = arith.mulf %232, %194 : vector<8x128xf32>
    %242 = arith.addf %240, %241 : vector<8x128xf32>
    %243 = arith.addi %16, %c4_i32 : i32
    %244 = vector.broadcast %243 : i32 to vector<8x1xi32>
    %245 = arith.cmpi slt, %244, %15 : vector<8x1xi32>
    %246 = arith.extui %245 : vector<8x1xi1> to vector<8x1xi32>
    %247 = arith.sitofp %246 : vector<8x1xi32> to vector<8x1xf32>
    %248 = arith.index_cast %c4_i32 : i32 to index
    %c0_65 = arith.constant 0 : index
    %c0_66 = arith.constant 0 : index
    %249 = vector.load %arg2[%248, %c0_65, %c0_66] : memref<8x8x128xf32, #tpu.memory_space<vmem>>, vector<1x8x128xf32>
    %250 = vector.shape_cast %249 : vector<1x8x128xf32> to vector<8x128xf32>
    %251 = arith.addf %242, %250 : vector<8x128xf32>
    %252 = vector.broadcast %247 : vector<8x1xf32> to vector<8x128xf32>
    %253 = arith.mulf %251, %252 : vector<8x128xf32>
    %254 = arith.index_cast %c4_i32 : i32 to index
    %c0_67 = arith.constant 0 : index
    %c0_68 = arith.constant 0 : index
    %255 = vector.load %arg8[%254, %c0_67, %c0_68] : memref<8x8x128xf32, #tpu.memory_space<vmem>>, vector<1x8x128xf32>
    %256 = vector.shape_cast %255 : vector<1x8x128xf32> to vector<8x128xf32>
    %257 = vector.shape_cast %253 : vector<8x128xf32> to vector<1x8x128xf32>
    tpu.vector_store %arg8[%254, %c0_67, %c0_68], %257 {strides = array<i32>} : memref<8x8x128xf32, #tpu.memory_space<vmem>>, vector<1x8x128xf32>,
    %c5_i32 = arith.constant 5 : i32
    %258 = arith.index_cast %c5_i32 : i32 to index
    %c0_69 = arith.constant 0 : index
    %c0_70 = arith.constant 0 : index
    %259 = vector.load %arg9[%258, %c0_69, %c0_70] : memref<8x8x384xf32, #tpu.memory_space<vmem>>, vector<1x8x384xf32>
    %260 = vector.shape_cast %259 : vector<1x8x384xf32> to vector<8x384xf32>
    %261 = arith.truncf %242 : vector<8x128xf32> to vector<8x128xbf16>
    %cst_71 = arith.constant dense<0.000000e+00> : vector<8x384xf32>
    %262 = tpu.matmul %261, %13, %cst_71 {dimension_numbers = #tpu.dot_dimension_numbers<[1], [0], [0], [1], [0, 0, 1, 1], [], []>} : vector<8x128xbf16>, vector<128x384xbf16>, vector<8x384xf32> -> vector<8x384xf32>
    %263 = vector.broadcast %14 : vector<1x384xf32> to vector<8x384xf32>
    %264 = arith.addf %262, %263 : vector<8x384xf32>
    %265 = vector.extract_strided_slice %260 {offsets = [0, 0], sizes = [8, 128], strides = [1, 1]} : vector<8x384xf32> to vector<8x128xf32>
    %266 = vector.extract_strided_slice %264 {offsets = [0, 0], sizes = [8, 128], strides = [1, 1]} : vector<8x384xf32> to vector<8x128xf32>
    %267 = arith.addf %265, %266 : vector<8x128xf32>
    %268 = arith.negf %267 : vector<8x128xf32>
    %269 = math.exp %268 : vector<8x128xf32>
    %cst_72 = arith.constant 1.000000e+00 : f32
    %270 = vector.broadcast %cst_72 : f32 to vector<8x128xf32>
    %271 = arith.addf %270, %269 : vector<8x128xf32>
    %272 = arith.divf %270, %271 : vector<8x128xf32>
    %273 = vector.extract_strided_slice %260 {offsets = [0, 128], sizes = [8, 128], strides = [1, 1]} : vector<8x384xf32> to vector<8x128xf32>
    %274 = vector.extract_strided_slice %264 {offsets = [0, 128], sizes = [8, 128], strides = [1, 1]} : vector<8x384xf32> to vector<8x128xf32>
    %275 = arith.addf %273, %274 : vector<8x128xf32>
    %276 = arith.negf %275 : vector<8x128xf32>
    %277 = math.exp %276 : vector<8x128xf32>
    %cst_73 = arith.constant 1.000000e+00 : f32
    %278 = vector.broadcast %cst_73 : f32 to vector<8x128xf32>
    %279 = arith.addf %278, %277 : vector<8x128xf32>
    %280 = arith.divf %278, %279 : vector<8x128xf32>
    %281 = vector.extract_strided_slice %260 {offsets = [0, 256], sizes = [8, 128], strides = [1, 1]} : vector<8x384xf32> to vector<8x128xf32>
    %282 = vector.extract_strided_slice %264 {offsets = [0, 256], sizes = [8, 128], strides = [1, 1]} : vector<8x384xf32> to vector<8x128xf32>
    %283 = arith.mulf %272, %282 : vector<8x128xf32>
    %284 = arith.addf %281, %283 : vector<8x128xf32>
    %285 = math.tanh %284 : vector<8x128xf32>
    %cst_74 = arith.constant 1.000000e+00 : f32
    %286 = vector.broadcast %cst_74 : f32 to vector<8x128xf32>
    %287 = arith.subf %286, %280 : vector<8x128xf32>
    %288 = arith.mulf %287, %285 : vector<8x128xf32>
    %289 = arith.mulf %280, %242 : vector<8x128xf32>
    %290 = arith.addf %288, %289 : vector<8x128xf32>
    %291 = arith.addi %16, %c5_i32 : i32
    %292 = vector.broadcast %291 : i32 to vector<8x1xi32>
    %293 = arith.cmpi slt, %292, %15 : vector<8x1xi32>
    %294 = arith.extui %293 : vector<8x1xi1> to vector<8x1xi32>
    %295 = arith.sitofp %294 : vector<8x1xi32> to vector<8x1xf32>
    %296 = arith.index_cast %c5_i32 : i32 to index
    %c0_75 = arith.constant 0 : index
    %c0_76 = arith.constant 0 : index
    %297 = vector.load %arg2[%296, %c0_75, %c0_76] : memref<8x8x128xf32, #tpu.memory_space<vmem>>, vector<1x8x128xf32>
    %298 = vector.shape_cast %297 : vector<1x8x128xf32> to vector<8x128xf32>
    %299 = arith.addf %290, %298 : vector<8x128xf32>
    %300 = vector.broadcast %295 : vector<8x1xf32> to vector<8x128xf32>
    %301 = arith.mulf %299, %300 : vector<8x128xf32>
    %302 = arith.index_cast %c5_i32 : i32 to index
    %c0_77 = arith.constant 0 : index
    %c0_78 = arith.constant 0 : index
    %303 = vector.load %arg8[%302, %c0_77, %c0_78] : memref<8x8x128xf32, #tpu.memory_space<vmem>>, vector<1x8x128xf32>
    %304 = vector.shape_cast %303 : vector<1x8x128xf32> to vector<8x128xf32>
    %305 = vector.shape_cast %301 : vector<8x128xf32> to vector<1x8x128xf32>
    tpu.vector_store %arg8[%302, %c0_77, %c0_78], %305 {strides = array<i32>} : memref<8x8x128xf32, #tpu.memory_space<vmem>>, vector<1x8x128xf32>,
    %c6_i32 = arith.constant 6 : i32
    %306 = arith.index_cast %c6_i32 : i32 to index
    %c0_79 = arith.constant 0 : index
    %c0_80 = arith.constant 0 : index
    %307 = vector.load %arg9[%306, %c0_79, %c0_80] : memref<8x8x384xf32, #tpu.memory_space<vmem>>, vector<1x8x384xf32>
    %308 = vector.shape_cast %307 : vector<1x8x384xf32> to vector<8x384xf32>
    %309 = arith.truncf %290 : vector<8x128xf32> to vector<8x128xbf16>
    %cst_81 = arith.constant dense<0.000000e+00> : vector<8x384xf32>
    %310 = tpu.matmul %309, %13, %cst_81 {dimension_numbers = #tpu.dot_dimension_numbers<[1], [0], [0], [1], [0, 0, 1, 1], [], []>} : vector<8x128xbf16>, vector<128x384xbf16>, vector<8x384xf32> -> vector<8x384xf32>
    %311 = vector.broadcast %14 : vector<1x384xf32> to vector<8x384xf32>
    %312 = arith.addf %310, %311 : vector<8x384xf32>
    %313 = vector.extract_strided_slice %308 {offsets = [0, 0], sizes = [8, 128], strides = [1, 1]} : vector<8x384xf32> to vector<8x128xf32>
    %314 = vector.extract_strided_slice %312 {offsets = [0, 0], sizes = [8, 128], strides = [1, 1]} : vector<8x384xf32> to vector<8x128xf32>
    %315 = arith.addf %313, %314 : vector<8x128xf32>
    %316 = arith.negf %315 : vector<8x128xf32>
    %317 = math.exp %316 : vector<8x128xf32>
    %cst_82 = arith.constant 1.000000e+00 : f32
    %318 = vector.broadcast %cst_82 : f32 to vector<8x128xf32>
    %319 = arith.addf %318, %317 : vector<8x128xf32>
    %320 = arith.divf %318, %319 : vector<8x128xf32>
    %321 = vector.extract_strided_slice %308 {offsets = [0, 128], sizes = [8, 128], strides = [1, 1]} : vector<8x384xf32> to vector<8x128xf32>
    %322 = vector.extract_strided_slice %312 {offsets = [0, 128], sizes = [8, 128], strides = [1, 1]} : vector<8x384xf32> to vector<8x128xf32>
    %323 = arith.addf %321, %322 : vector<8x128xf32>
    %324 = arith.negf %323 : vector<8x128xf32>
    %325 = math.exp %324 : vector<8x128xf32>
    %cst_83 = arith.constant 1.000000e+00 : f32
    %326 = vector.broadcast %cst_83 : f32 to vector<8x128xf32>
    %327 = arith.addf %326, %325 : vector<8x128xf32>
    %328 = arith.divf %326, %327 : vector<8x128xf32>
    %329 = vector.extract_strided_slice %308 {offsets = [0, 256], sizes = [8, 128], strides = [1, 1]} : vector<8x384xf32> to vector<8x128xf32>
    %330 = vector.extract_strided_slice %312 {offsets = [0, 256], sizes = [8, 128], strides = [1, 1]} : vector<8x384xf32> to vector<8x128xf32>
    %331 = arith.mulf %320, %330 : vector<8x128xf32>
    %332 = arith.addf %329, %331 : vector<8x128xf32>
    %333 = math.tanh %332 : vector<8x128xf32>
    %cst_84 = arith.constant 1.000000e+00 : f32
    %334 = vector.broadcast %cst_84 : f32 to vector<8x128xf32>
    %335 = arith.subf %334, %328 : vector<8x128xf32>
    %336 = arith.mulf %335, %333 : vector<8x128xf32>
    %337 = arith.mulf %328, %290 : vector<8x128xf32>
    %338 = arith.addf %336, %337 : vector<8x128xf32>
    %339 = arith.addi %16, %c6_i32 : i32
    %340 = vector.broadcast %339 : i32 to vector<8x1xi32>
    %341 = arith.cmpi slt, %340, %15 : vector<8x1xi32>
    %342 = arith.extui %341 : vector<8x1xi1> to vector<8x1xi32>
    %343 = arith.sitofp %342 : vector<8x1xi32> to vector<8x1xf32>
    %344 = arith.index_cast %c6_i32 : i32 to index
    %c0_85 = arith.constant 0 : index
    %c0_86 = arith.constant 0 : index
    %345 = vector.load %arg2[%344, %c0_85, %c0_86] : memref<8x8x128xf32, #tpu.memory_space<vmem>>, vector<1x8x128xf32>
    %346 = vector.shape_cast %345 : vector<1x8x128xf32> to vector<8x128xf32>
    %347 = arith.addf %338, %346 : vector<8x128xf32>
    %348 = vector.broadcast %343 : vector<8x1xf32> to vector<8x128xf32>
    %349 = arith.mulf %347, %348 : vector<8x128xf32>
    %350 = arith.index_cast %c6_i32 : i32 to index
    %c0_87 = arith.constant 0 : index
    %c0_88 = arith.constant 0 : index
    %351 = vector.load %arg8[%350, %c0_87, %c0_88] : memref<8x8x128xf32, #tpu.memory_space<vmem>>, vector<1x8x128xf32>
    %352 = vector.shape_cast %351 : vector<1x8x128xf32> to vector<8x128xf32>
    %353 = vector.shape_cast %349 : vector<8x128xf32> to vector<1x8x128xf32>
    tpu.vector_store %arg8[%350, %c0_87, %c0_88], %353 {strides = array<i32>} : memref<8x8x128xf32, #tpu.memory_space<vmem>>, vector<1x8x128xf32>,
    %c7_i32 = arith.constant 7 : i32
    %354 = arith.index_cast %c7_i32 : i32 to index
    %c0_89 = arith.constant 0 : index
    %c0_90 = arith.constant 0 : index
    %355 = vector.load %arg9[%354, %c0_89, %c0_90] : memref<8x8x384xf32, #tpu.memory_space<vmem>>, vector<1x8x384xf32>
    %356 = vector.shape_cast %355 : vector<1x8x384xf32> to vector<8x384xf32>
    %357 = arith.truncf %338 : vector<8x128xf32> to vector<8x128xbf16>
    %cst_91 = arith.constant dense<0.000000e+00> : vector<8x384xf32>
    %358 = tpu.matmul %357, %13, %cst_91 {dimension_numbers = #tpu.dot_dimension_numbers<[1], [0], [0], [1], [0, 0, 1, 1], [], []>} : vector<8x128xbf16>, vector<128x384xbf16>, vector<8x384xf32> -> vector<8x384xf32>
    %359 = vector.broadcast %14 : vector<1x384xf32> to vector<8x384xf32>
    %360 = arith.addf %358, %359 : vector<8x384xf32>
    %361 = vector.extract_strided_slice %356 {offsets = [0, 0], sizes = [8, 128], strides = [1, 1]} : vector<8x384xf32> to vector<8x128xf32>
    %362 = vector.extract_strided_slice %360 {offsets = [0, 0], sizes = [8, 128], strides = [1, 1]} : vector<8x384xf32> to vector<8x128xf32>
    %363 = arith.addf %361, %362 : vector<8x128xf32>
    %364 = arith.negf %363 : vector<8x128xf32>
    %365 = math.exp %364 : vector<8x128xf32>
    %cst_92 = arith.constant 1.000000e+00 : f32
    %366 = vector.broadcast %cst_92 : f32 to vector<8x128xf32>
    %367 = arith.addf %366, %365 : vector<8x128xf32>
    %368 = arith.divf %366, %367 : vector<8x128xf32>
    %369 = vector.extract_strided_slice %356 {offsets = [0, 128], sizes = [8, 128], strides = [1, 1]} : vector<8x384xf32> to vector<8x128xf32>
    %370 = vector.extract_strided_slice %360 {offsets = [0, 128], sizes = [8, 128], strides = [1, 1]} : vector<8x384xf32> to vector<8x128xf32>
    %371 = arith.addf %369, %370 : vector<8x128xf32>
    %372 = arith.negf %371 : vector<8x128xf32>
    %373 = math.exp %372 : vector<8x128xf32>
    %cst_93 = arith.constant 1.000000e+00 : f32
    %374 = vector.broadcast %cst_93 : f32 to vector<8x128xf32>
    %375 = arith.addf %374, %373 : vector<8x128xf32>
    %376 = arith.divf %374, %375 : vector<8x128xf32>
    %377 = vector.extract_strided_slice %356 {offsets = [0, 256], sizes = [8, 128], strides = [1, 1]} : vector<8x384xf32> to vector<8x128xf32>
    %378 = vector.extract_strided_slice %360 {offsets = [0, 256], sizes = [8, 128], strides = [1, 1]} : vector<8x384xf32> to vector<8x128xf32>
    %379 = arith.mulf %368, %378 : vector<8x128xf32>
    %380 = arith.addf %377, %379 : vector<8x128xf32>
    %381 = math.tanh %380 : vector<8x128xf32>
    %cst_94 = arith.constant 1.000000e+00 : f32
    %382 = vector.broadcast %cst_94 : f32 to vector<8x128xf32>
    %383 = arith.subf %382, %376 : vector<8x128xf32>
    %384 = arith.mulf %383, %381 : vector<8x128xf32>
    %385 = arith.mulf %376, %338 : vector<8x128xf32>
    %386 = arith.addf %384, %385 : vector<8x128xf32>
    %387 = arith.addi %16, %c7_i32 : i32
    %388 = vector.broadcast %387 : i32 to vector<8x1xi32>
    %389 = arith.cmpi slt, %388, %15 : vector<8x1xi32>
    %390 = arith.extui %389 : vector<8x1xi1> to vector<8x1xi32>
    %391 = arith.sitofp %390 : vector<8x1xi32> to vector<8x1xf32>
    %392 = arith.index_cast %c7_i32 : i32 to index
    %c0_95 = arith.constant 0 : index
    %c0_96 = arith.constant 0 : index
    %393 = vector.load %arg2[%392, %c0_95, %c0_96] : memref<8x8x128xf32, #tpu.memory_space<vmem>>, vector<1x8x128xf32>
    %394 = vector.shape_cast %393 : vector<1x8x128xf32> to vector<8x128xf32>
    %395 = arith.addf %386, %394 : vector<8x128xf32>
    %396 = vector.broadcast %391 : vector<8x1xf32> to vector<8x128xf32>
    %397 = arith.mulf %395, %396 : vector<8x128xf32>
    %398 = arith.index_cast %c7_i32 : i32 to index
    %c0_97 = arith.constant 0 : index
    %c0_98 = arith.constant 0 : index
    %399 = vector.load %arg8[%398, %c0_97, %c0_98] : memref<8x8x128xf32, #tpu.memory_space<vmem>>, vector<1x8x128xf32>
    %400 = vector.shape_cast %399 : vector<1x8x128xf32> to vector<8x128xf32>
    %401 = vector.shape_cast %397 : vector<8x128xf32> to vector<1x8x128xf32>
    tpu.vector_store %arg8[%398, %c0_97, %c0_98], %401 {strides = array<i32>} : memref<8x8x128xf32, #tpu.memory_space<vmem>>, vector<1x8x128xf32>,
    %c8_i32_99 = arith.constant 8 : i32
    %c0_100 = arith.constant 0 : index
    %c0_101 = arith.constant 0 : index
    %402 = vector.load %arg10[%c0_100, %c0_101] : memref<8x128xf32, #tpu.memory_space<vmem>>, vector<8x128xf32>
    tpu.vector_store %arg10[%c0_100, %c0_101], %386 {strides = array<i32>} : memref<8x128xf32, #tpu.memory_space<vmem>>, vector<8x128xf32>,
    return
  }
  func.func @transform_0(%arg0: i32, %arg1: i32) -> (i32, i32, i32) {
    %c0_i32 = arith.constant 0 : i32
    %c0_i32_0 = arith.constant 0 : i32
    return %arg1, %arg0, %c0_i32 : i32, i32, i32
  }
  func.func @transform_1(%arg0: i32, %arg1: i32) -> (i32, i32) {
    %c0_i32 = arith.constant 0 : i32
    %c0_i32_0 = arith.constant 0 : i32
    return %arg0, %c0_i32 : i32, i32
  }
  func.func @transform_2(%arg0: i32, %arg1: i32) -> (i32, i32) {
    %c0_i32 = arith.constant 0 : i32
    %c0_i32_0 = arith.constant 0 : i32
    %c0_i32_1 = arith.constant 0 : i32
    return %c0_i32, %c0_i32_0 : i32, i32
  }
  func.func @transform_3(%arg0: i32, %arg1: i32) -> (i32, i32) {
    %c0_i32 = arith.constant 0 : i32
    %c0_i32_0 = arith.constant 0 : i32
    %c0_i32_1 = arith.constant 0 : i32
    return %c0_i32, %c0_i32_0 : i32, i32
  }
  func.func @transform_4(%arg0: i32, %arg1: i32) -> (i32, i32) {
    %c0_i32 = arith.constant 0 : i32
    %c0_i32_0 = arith.constant 0 : i32
    %c0_i32_1 = arith.constant 0 : i32
    return %c0_i32, %c0_i32_0 : i32, i32
  }
  func.func @transform_5(%arg0: i32, %arg1: i32) -> (i32, i32) {
    %c0_i32 = arith.constant 0 : i32
    %c0_i32_0 = arith.constant 0 : i32
    %c0_i32_1 = arith.constant 0 : i32
    return %c0_i32, %c0_i32_0 : i32, i32
  }
  func.func @transform_6(%arg0: i32, %arg1: i32) -> (i32, i32, i32) {
    %c0_i32 = arith.constant 0 : i32
    %c0_i32_0 = arith.constant 0 : i32
    return %arg1, %arg0, %c0_i32 : i32, i32, i32
  }
}

module attributes {stable_mosaic.version = 11 : i64} {
  func.func @_linear_kernel(%arg0: i32, %arg1: memref<64x128xf32, #tpu.memory_space<vmem>>, %arg2: memref<128x128xbf16, #tpu.memory_space<vmem>>, %arg3: memref<1x128xf32, #tpu.memory_space<vmem>>, %arg4: memref<64x128xf32, #tpu.memory_space<vmem>>) attributes {dimension_semantics = [#tpu.dimension_semantics<parallel>], iteration_bounds = array<i64: 1>, scalar_prefetch = 0 : i64, scratch_operands = 0 : i64, tpu.core_type = #tpu.core_type<tc>, window_params = [{transform_indices = @transform_0, window_bounds = array<i64: 64, 128>}, {pipeline_mode = #tpu.pipeline_mode<synchronous>, transform_indices = @transform_1, window_bounds = array<i64: 128, 128>}, {pipeline_mode = #tpu.pipeline_mode<synchronous>, transform_indices = @transform_2, window_bounds = array<i64: 1, 128>}, {transform_indices = @transform_3, window_bounds = array<i64: 64, 128>}]} {
    %c0 = arith.constant 0 : index
    %c0_0 = arith.constant 0 : index
    %0 = vector.load %arg1[%c0, %c0_0] : memref<64x128xf32, #tpu.memory_space<vmem>>, vector<64x128xf32>
    %1 = arith.truncf %0 : vector<64x128xf32> to vector<64x128xbf16>
    %c0_1 = arith.constant 0 : index
    %c0_2 = arith.constant 0 : index
    %2 = vector.load %arg2[%c0_1, %c0_2] : memref<128x128xbf16, #tpu.memory_space<vmem>>, vector<128x128xbf16>
    %cst = arith.constant dense<0.000000e+00> : vector<64x128xf32>
    %3 = tpu.matmul %1, %2, %cst {dimension_numbers = #tpu.dot_dimension_numbers<[1], [0], [0], [1], [0, 0, 1, 1], [], []>} : vector<64x128xbf16>, vector<128x128xbf16>, vector<64x128xf32> -> vector<64x128xf32>
    %c0_3 = arith.constant 0 : index
    %c0_4 = arith.constant 0 : index
    %4 = vector.load %arg3[%c0_3, %c0_4] : memref<1x128xf32, #tpu.memory_space<vmem>>, vector<1x128xf32>
    %5 = vector.broadcast %4 : vector<1x128xf32> to vector<64x128xf32>
    %6 = arith.addf %3, %5 : vector<64x128xf32>
    %c0_5 = arith.constant 0 : index
    %c0_6 = arith.constant 0 : index
    %7 = vector.load %arg4[%c0_5, %c0_6] : memref<64x128xf32, #tpu.memory_space<vmem>>, vector<64x128xf32>
    tpu.vector_store %arg4[%c0_5, %c0_6], %6 {strides = array<i32>} : memref<64x128xf32, #tpu.memory_space<vmem>>, vector<64x128xf32>,
    return
  }
  func.func @transform_0(%arg0: i32) -> (i32, i32) {
    %c0_i32 = arith.constant 0 : i32
    %c0_i32_0 = arith.constant 0 : i32
    return %arg0, %c0_i32 : i32, i32
  }
  func.func @transform_1(%arg0: i32) -> (i32, i32) {
    %c0_i32 = arith.constant 0 : i32
    %c0_i32_0 = arith.constant 0 : i32
    %c0_i32_1 = arith.constant 0 : i32
    return %c0_i32, %c0_i32_0 : i32, i32
  }
  func.func @transform_2(%arg0: i32) -> (i32, i32) {
    %c0_i32 = arith.constant 0 : i32
    %c0_i32_0 = arith.constant 0 : i32
    %c0_i32_1 = arith.constant 0 : i32
    return %c0_i32, %c0_i32_0 : i32, i32
  }
  func.func @transform_3(%arg0: i32) -> (i32, i32) {
    %c0_i32 = arith.constant 0 : i32
    %c0_i32_0 = arith.constant 0 : i32
    return %arg0, %c0_i32 : i32, i32
  }
}

</mosaic_0001>

<bundles_post_ra>
// kernel: apc_forward.6
= control target key start
LH: loop header
LB: loop body
LE: loop exit
PB: predicated region body
PF: predicated region fallthrough
CT: control target
= control target key end

     0   :  { %vm39_vm0 = vcmask 130048   ;;  %s188_s1 = inlined_call_operand.vmem [shape: bf16[16,128], index: 1, kind: input, shape index: {}]   ;;  %s189_s0 = inlined_call_operand.vmem [shape: f32[64,16], index: 0, kind: input, shape index: {}]   ;;  %s190_s2 = inlined_call_operand.vmem [shape: f32[1,128], index: 2, kind: input, shape index: {}]   ;;  %s191_s3 = inlined_call_operand.vmem [shape: f32[64,128], index: 3, kind: output, shape index: {}]  }
   0x1   :  { %v109_v0 = vld [vmem:[%s188_s1] sm:$0xff]  ;;  %v16_v2 = vld [vmem:[%s189_s0 + $0x8] sm:$0xff]  ;;  %v17_v4 = vld [vmem:[%s189_s0 + $0x10] sm:$0xff] }
   0x2   :  { %v15_v1 = vld [vmem:[%s189_s0] sm:$0xff]  ;;  %v18_v5 = vld [vmem:[%s189_s0 + $0x18] sm:$0xff]  ;;  %59 = vmatpush.bf16.msra.mxu0 %v109_v0  ;;  %110 = vmatpush.bf16.msra.mxu1 %v109_v0  ;;  %v20_v8 = vld [vmem:[%s189_s0 + $0x28] sm:$0xff] }
   0x3   :  { %v23_v3 = vpack.c.bf16 %v16_v2, %v15_v1  ;;  %v19_v6 = vld [vmem:[%s189_s0 + $0x20] sm:$0xff]  ;;  %v24_v7 = vpack.c.bf16 %v18_v5, %v17_v4  ;;  %v21_v9 = vld [vmem:[%s189_s0 + $0x30] sm:$0xff]  ;;  %v22_v10 = vld [vmem:[%s189_s0 + $0x38] sm:$0xff]  ;;  %111 = vmatpush.bf16.msra.mxu2 %v109_v0  ;;  %112 = vmatpush.bf16.msra.mxu3 %v109_v0 }
   0x4   :  { %v25_v11 = vpack.c.bf16 %v20_v8, %v19_v6  ;;  %v26_v12 = vpack.c.bf16 %v22_v10, %v21_v9  ;;  %v113_v13 = vld [vmem:[%s190_s2] ss:$0 sm:$0xff] }
   0x5   :  { %105 = vmatmul.msk.bf16.vlgmr.msra.gmra.mxu0 %vm39_vm0, %v23_v3  ;;  %106 = vmatmul.msk.bf16.vlgmr.msra.gmra.mxu1 %vm39_vm0, %v24_v7 }
   0x6   :  { %107 = vmatmul.msk.bf16.vlgmr.msra.gmra.mxu2 %vm39_vm0, %v25_v11  ;;  %108 = vmatmul.msk.bf16.vlgmr.msra.gmra.mxu3 %vm39_vm0, %v26_v12 }
  0x82   :  { %v61_v14 = vpop.f32.mrf.mxu0  ;;  %v66_v15 = vpop.f32.mrf.mxu1 }
  0x83   :  { %v62_v16 = vadd.f32 %v113_v13, %v61_v14  ;;  %v67_v17 = vadd.f32 %v113_v13, %v66_v15 }
  0x85   :  { %v81_v18 = vmax.f32 %v62_v16, 0.0  ;;  %v83_v19 = vmax.f32 %v67_v17, 0.0 }
  0x87   :  { %89 = vst [vmem:[%s191_s3] sm:$0xff] %v81_v18 }
  0x88   :  { %91 = vst [vmem:[%s191_s3 + $0x10] sm:$0xff] %v83_v19 }
  0x89   :  { %v71_v20 = vpop.f32.mrf.mxu2  ;;  %v76_v21 = vpop.f32.mrf.mxu3 }
  0x8a   :  { %v72_v22 = vadd.f32 %v113_v13, %v71_v20  ;;  %v77_v23 = vadd.f32 %v113_v13, %v76_v21  ;;  %v63_v24 = vpop.f32.mrf.mxu0  ;;  %v68_v25 = vpop.f32.mrf.mxu1 }
  0x8b   :  { %v64_v26 = vadd.f32 %v113_v13, %v63_v24  ;;  %v69_v27 = vadd.f32 %v113_v13, %v68_v25 }
  0x8c   :  { %v85_v28 = vmax.f32 %v72_v22, 0.0  ;;  %v87_v29 = vmax.f32 %v77_v23, 0.0 }
  0x8d   :  { %v82_v30 = vmax.f32 %v64_v26, 0.0  ;;  %v84_v31 = vmax.f32 %v69_v27, 0.0 }
  0x8e   :  { %93 = vst [vmem:[%s191_s3 + $0x20] sm:$0xff] %v85_v28 }
  0x8f   :  { %95 = vst [vmem:[%s191_s3 + $0x30] sm:$0xff] %v87_v29 }
  0x90   :  { %90 = vst [vmem:[%s191_s3 + $0x8] sm:$0xff] %v82_v30 }
  0x91   :  { %92 = vst [vmem:[%s191_s3 + $0x18] sm:$0xff] %v84_v31  ;;  %v73_v32 = vpop.f32.mrf.mxu2  ;;  %v78_v33 = vpop.f32.mrf.mxu3 }
  0x92   :  { %v74_v34 = vadd.f32 %v113_v13, %v73_v32  ;;  %v79_v35 = vadd.f32 %v113_v13, %v78_v33 }
  0x94   :  { %v86_v36 = vmax.f32 %v74_v34, 0.0  ;;  %v88_v37 = vmax.f32 %v79_v35, 0.0 }
  0x96   :  { %94 = vst [vmem:[%s191_s3 + $0x28] sm:$0xff] %v86_v36 }
  0x97   :  { %96 = vst [vmem:[%s191_s3 + $0x38] sm:$0xff] %v88_v37 }

// kernel: apc_forward.7
= control target key start
LH: loop header
LB: loop body
LE: loop exit
PB: predicated region body
PF: predicated region fallthrough
CT: control target
= control target key end

     0   :  { %8 = vsyncpa [#allocation3], 0  ;;  %s254_s15 = smov [#allocation2]   ;;  %s255_s17 = smov 64   ;;  %s331_s0 = inlined_call_operand.vmem [shape: f32[64,128], index: 0, kind: input, shape index: {}]   ;;  %s332_s1 = inlined_call_operand.hbm [shape: bf16[128,128], index: 1, kind: input, shape index: {}]   ;;  %s333_s2 = inlined_call_operand.vmem [shape: f32[1,128], index: 2, kind: input, shape index: {}]   ;;  %s334_s3 = inlined_call_operand.vmem [shape: f32[64,128], index: 3, kind: output, shape index: {}]  }
   0x1   :  { %s15_s14 = sshll.u32 %s332_s1, 4  ;;  %s17_s16 = sshll.u32 %s254_s15, 4  ;;  %s16_s14 = int_to_ptr.hbm [resolvable:$true] %s15_s14  ;;  %s18_s16 = int_to_ptr.vmem [resolvable:$true] %s17_s16 }
   0x2   :  { %s256_s18 = smov 4  }
   0x3   :  { %23 = dma.hbm_to_vmem [thread:$0]  %s16_s14, 1024, %s18_s16, [#allocation3], %s255_s17, %s255_s17, %s256_s18  }
   0x4   :  { %252 = dma.done.wait [#allocation3], 1024  }
   0x5   :  { %253 = vsyncadd [#allocation3], 4294966272  ;;  %v199_v0 = vld [vmem:[#allocation2 + $0x38] sm:$0xff]  ;;  %v198_v1 = vld [vmem:[#allocation2 + $0x30] sm:$0xff] }
   0x6   :  { %110 = vmatpush.bf16.msra.mxu0 %v199_v0  ;;  %200 = vmatpush.bf16.msra.mxu1 %v199_v0  ;;  %v197_v2 = vld [vmem:[#allocation2 + $0x28] sm:$0xff]  ;;  %v196_v3 = vld [vmem:[#allocation2 + $0x20] sm:$0xff]  ;;  %v195_v4 = vld [vmem:[#allocation2 + $0x18] sm:$0xff] }
   0x7   :  { %201 = vmatpush.bf16.msra.mxu2 %v199_v0  ;;  %202 = vmatpush.bf16.msra.mxu3 %v199_v0  ;;  %v194_v5 = vld [vmem:[#allocation2 + $0x10] sm:$0xff]  ;;  %v193_v6 = vld [vmem:[#allocation2 + $0x8] sm:$0xff]  ;;  %v192_v7 = vld [vmem:[#allocation2] sm:$0xff] }
   0x8   :  { %v30_v8 = vld [vmem:[%s331_s0] sm:$0xff]  ;;  %v31_v9 = vld [vmem:[%s331_s0 + $0x8] sm:$0xff]  ;;  %v32_v10 = vld [vmem:[%s331_s0 + $0x10] sm:$0xff] }
   0x9   :  { %v33_v11 = vld [vmem:[%s331_s0 + $0x18] sm:$0xff]  ;;  %v34_v12 = vld [vmem:[%s331_s0 + $0x20] sm:$0xff]  ;;  %v35_v13 = vld [vmem:[%s331_s0 + $0x28] sm:$0xff]  ;;  %v38_v16 = vpack.c.bf16 %v31_v9, %v30_v8 }
   0xa   :  { %111 = vmatpush.bf16.msra.mxu0 %v198_v1  ;;  %203 = vmatpush.bf16.msra.mxu1 %v198_v1  ;;  %v36_v14 = vld [vmem:[%s331_s0 + $0x30] sm:$0xff]  ;;  %v37_v15 = vld [vmem:[%s331_s0 + $0x38] sm:$0xff]  ;;  %v39_v17 = vpack.c.bf16 %v33_v11, %v32_v10  ;;  %v40_v18 = vpack.c.bf16 %v35_v13, %v34_v12  ;;  %v227_v20 = vld [vmem:[%s333_s2] ss:$0 sm:$0xff] }
   0xb   :  { %204 = vmatpush.bf16.msra.mxu2 %v198_v1  ;;  %205 = vmatpush.bf16.msra.mxu3 %v198_v1  ;;  %v41_v19 = vpack.c.bf16 %v37_v15, %v36_v14 }
   0xe   :  { %112 = vmatpush.bf16.msra.mxu0 %v197_v2  ;;  %206 = vmatpush.bf16.msra.mxu1 %v197_v2 }
   0xf   :  { %207 = vmatpush.bf16.msra.mxu2 %v197_v2  ;;  %208 = vmatpush.bf16.msra.mxu3 %v197_v2 }
  0x12   :  { %113 = vmatpush.bf16.msra.mxu0 %v196_v3  ;;  %209 = vmatpush.bf16.msra.mxu1 %v196_v3 }
  0x13   :  { %210 = vmatpush.bf16.msra.mxu2 %v196_v3  ;;  %211 = vmatpush.bf16.msra.mxu3 %v196_v3 }
  0x16   :  { %114 = vmatpush.bf16.msra.mxu0 %v195_v4  ;;  %212 = vmatpush.bf16.msra.mxu1 %v195_v4 }
  0x17   :  { %213 = vmatpush.bf16.msra.mxu2 %v195_v4  ;;  %214 = vmatpush.bf16.msra.mxu3 %v195_v4 }
  0x1a   :  { %115 = vmatpush.bf16.msra.mxu0 %v194_v5  ;;  %215 = vmatpush.bf16.msra.mxu1 %v194_v5 }
  0x1b   :  { %216 = vmatpush.bf16.msra.mxu2 %v194_v5  ;;  %217 = vmatpush.bf16.msra.mxu3 %v194_v5 }
  0x1e   :  { %116 = vmatpush.bf16.msra.mxu0 %v193_v6  ;;  %218 = vmatpush.bf16.msra.mxu1 %v193_v6 }
  0x1f   :  { %219 = vmatpush.bf16.msra.mxu2 %v193_v6  ;;  %220 = vmatpush.bf16.msra.mxu3 %v193_v6 }
  0x22   :  { %117 = vmatpush.bf16.msra.mxu0 %v192_v7  ;;  %221 = vmatpush.bf16.msra.mxu1 %v192_v7 }
  0x23   :  { %222 = vmatpush.bf16.msra.mxu2 %v192_v7  ;;  %223 = vmatpush.bf16.msra.mxu3 %v192_v7 }
  0x25   :  { %118 = vmatmul.bf16.vlgmr.msra.gmra.mxu0 %v38_v16  ;;  %123 = vmatmul.bf16.vlgmr.msra.gmra.mxu1 %v39_v17 }
  0x26   :  { %128 = vmatmul.bf16.vlgmr.msra.gmra.mxu2 %v40_v18  ;;  %133 = vmatmul.bf16.vlgmr.msra.gmra.mxu3 %v41_v19 }
  0xa2   :  { %v119_v21 = vpop.f32.mrf.mxu0  ;;  %v124_v22 = vpop.f32.mrf.mxu1 }
  0xa3   :  { %v120_v23 = vadd.f32 %v227_v20, %v119_v21  ;;  %v125_v24 = vadd.f32 %v227_v20, %v124_v22 }
  0xa5   :  { %v139_v25 = vmax.f32 %v120_v23, 0.0  ;;  %v141_v26 = vmax.f32 %v125_v24, 0.0 }
  0xa7   :  { %147 = vst [vmem:[%s334_s3] sm:$0xff] %v139_v25 }
  0xa8   :  { %149 = vst [vmem:[%s334_s3 + $0x10] sm:$0xff] %v141_v26 }
  0xa9   :  { %v129_v27 = vpop.f32.mrf.mxu2  ;;  %v134_v28 = vpop.f32.mrf.mxu3 }
  0xaa   :  { %v130_v29 = vadd.f32 %v227_v20, %v129_v27  ;;  %v135_v30 = vadd.f32 %v227_v20, %v134_v28  ;;  %v121_v31 = vpop.f32.mrf.mxu0  ;;  %v126_v32 = vpop.f32.mrf.mxu1 }
  0xab   :  { %v122_v33 = vadd.f32 %v227_v20, %v121_v31  ;;  %v127_v34 = vadd.f32 %v227_v20, %v126_v32 }
  0xac   :  { %v143_v35 = vmax.f32 %v130_v29, 0.0  ;;  %v145_v36 = vmax.f32 %v135_v30, 0.0 }
  0xad   :  { %v140_v37 = vmax.f32 %v122_v33, 0.0  ;;  %v142_v38 = vmax.f32 %v127_v34, 0.0 }
  0xae   :  { %151 = vst [vmem:[%s334_s3 + $0x20] sm:$0xff] %v143_v35 }
  0xaf   :  { %153 = vst [vmem:[%s334_s3 + $0x30] sm:$0xff] %v145_v36 }
  0xb0   :  { %148 = vst [vmem:[%s334_s3 + $0x8] sm:$0xff] %v140_v37 }
  0xb1   :  { %150 = vst [vmem:[%s334_s3 + $0x18] sm:$0xff] %v142_v38  ;;  %v131_v39 = vpop.f32.mrf.mxu2  ;;  %v136_v40 = vpop.f32.mrf.mxu3 }
  0xb2   :  { %v132_v41 = vadd.f32 %v227_v20, %v131_v39  ;;  %v137_v42 = vadd.f32 %v227_v20, %v136_v40 }
  0xb4   :  { %v144_v43 = vmax.f32 %v132_v41, 0.0  ;;  %v146_v44 = vmax.f32 %v137_v42, 0.0 }
  0xb6   :  { %152 = vst [vmem:[%s334_s3 + $0x28] sm:$0xff] %v144_v43 }
  0xb7   :  { %154 = vst [vmem:[%s334_s3 + $0x38] sm:$0xff] %v146_v44 }
  0xb8   :  { %159 = vsyncpa [#allocation3], 1 }

// kernel: apc_forward.8
= control target key start
LH: loop header
LB: loop body
LE: loop exit
PB: predicated region body
PF: predicated region fallthrough
CT: control target
= control target key end

     0   :  { %11 = vsyncpa [#allocation5], 0  ;;  %s1785_s24 = smov [#allocation4]   ;;  %s1786_s26 = smov 192   ;;  %s2497_s0 = inlined_call_operand.vmem [shape: f32[8,8,128], index: 0, kind: input, shape index: {}]   ;;  %s2498_s1 = inlined_call_operand.vmem [shape: s32[8,1], index: 1, kind: input, shape index: {}]   ;;  %s2499_s2 = inlined_call_operand.vmem [shape: bf16[128,384], index: 2, kind: input, shape index: {}]   ;;  %s2500_s3 = inlined_call_operand.vmem [shape: f32[1,384], index: 3, kind: input, shape index: {}]   ;;  %s2501_s4 = inlined_call_operand.hbm [shape: bf16[128,384], index: 4, kind: input, shape index: {}]   ;;  %s2502_s5 = inlined_call_operand.vmem [shape: f32[1,384], index: 5, kind: input, shape index: {}]   ;;  %s2503_s6 = inlined_call_operand.vmem [shape: f32[8,8,128], index: 6, kind: output, shape index: {}]  }
   0x1   :  { %s24_s23 = sshll.u32 %s2501_s4, 4  ;;  %s26_s25 = sshll.u32 %s1785_s24, 4  ;;  %s25_s23 = int_to_ptr.hbm [resolvable:$true] %s24_s23  ;;  %s27_s25 = int_to_ptr.vmem [resolvable:$true] %s26_s25 }
   0x2   :  { %s1787_s27 = smov 12  }
   0x3   :  { %32 = dma.hbm_to_vmem [thread:$0]  %s25_s23, 3072, %s27_s25, [#allocation5], %s1786_s26, %s1786_s26, %s1787_s27  }
   0x4   :  { %1783 = dma.done.wait [#allocation5], 3072  }
   0x5   :  { %1784 = vsyncadd [#allocation5], 4294964224  ;;  %v1450_v0 = vld [vmem:[%s2499_s2 + $0xa8] sm:$0xf]  ;;  %v1624_v1 = vld [vmem:[%s2499_s2 + $0xb0] sm:$0xf0] }
   0x6   :  { %v1546_v2 = vld [vmem:[#allocation4 + $0xa8] sm:$0xf]  ;;  %v1451_v3 = vor.u32 %v1624_v1, %v1450_v0  ;;  %v1648_v4 = vld [vmem:[#allocation4 + $0xb0] sm:$0xf0]  ;;  %v1438_v5 = vld [vmem:[%s2499_s2 + $0x90] sm:$0xf] }
   0x7   :  { %v1621_v6 = vld [vmem:[%s2499_s2 + $0x98] sm:$0xf0]  ;;  %v1841_v7 = vor.u32 %v1648_v4, %v1546_v2  ;;  %v1534_v8 = vld [vmem:[#allocation4 + $0x90] sm:$0xf]  ;;  %v1426_v12 = vld [vmem:[%s2499_s2 + $0x78] sm:$0xf] }
   0x8   :  { %v1645_v9 = vld [vmem:[#allocation4 + $0x98] sm:$0xf0]  ;;  %224 = vmatpush.bf16.msra.mxu0 %v1451_v3  ;;  %v1439_v10 = vor.u32 %v1621_v6, %v1438_v5  ;;  %v1618_v13 = vld [vmem:[%s2499_s2 + $0x80] sm:$0xf0]  ;;  %v1522_v14 = vld [vmem:[#allocation4 + $0x78] sm:$0xf] }
   0x9   :  { %510 = vmatpush.bf16.msra.mxu3 %v1841_v7  ;;  %v1844_v11 = vor.u32 %v1645_v9, %v1534_v8  ;;  %v1642_v15 = vld [vmem:[#allocation4 + $0x80] sm:$0xf0]  ;;  %v1427_v16 = vor.u32 %v1618_v13, %v1426_v12  ;;  %v1414_v18 = vld [vmem:[%s2499_s2 + $0x60] sm:$0xf]  ;;  %v1615_v19 = vld [vmem:[%s2499_s2 + $0x68] sm:$0xf0] }
   0xa   :  { %v1853_v17 = vor.u32 %v1642_v15, %v1522_v14  ;;  %v1510_v20 = vld [vmem:[#allocation4 + $0x60] sm:$0xf]  ;;  %v1639_v21 = vld [vmem:[#allocation4 + $0x68] sm:$0xf0]  ;;  %v1415_v22 = vor.u32 %v1615_v19, %v1414_v18  ;;  %v1402_v24 = vld [vmem:[%s2499_s2 + $0x48] sm:$0xf] }
   0xb   :  { %v1862_v23 = vor.u32 %v1639_v21, %v1510_v20  ;;  %v1612_v25 = vld [vmem:[%s2499_s2 + $0x50] sm:$0xf0]  ;;  %v1498_v26 = vld [vmem:[#allocation4 + $0x48] sm:$0xf]  ;;  %v1623_v28 = vld [vmem:[%s2499_s2 + $0xac] sm:$0xf] }
   0xc   :  { %225 = vmatpush.bf16.msra.mxu0 %v1439_v10  ;;  %v1636_v27 = vld [vmem:[#allocation4 + $0x50] sm:$0xf0]  ;;  %v1452_v29 = vld [vmem:[%s2499_s2 + $0xb4] sm:$0xf0]  ;;  %v1403_v32 = vor.u32 %v1612_v25, %v1402_v24  ;;  %v1440_v33 = vld [vmem:[%s2499_s2 + $0x9c] sm:$0xf0] }
   0xd   :  { %511 = vmatpush.bf16.msra.mxu3 %v1844_v11  ;;  %v1455_v30 = vor.u32 %v1623_v28, %v1452_v29  ;;  %v1620_v31 = vld [vmem:[%s2499_s2 + $0x94] sm:$0xf]  ;;  %v1883_v34 = vor.u32 %v1636_v27, %v1498_v26  ;;  %v1390_v35 = vld [vmem:[%s2499_s2 + $0x30] sm:$0xf]  ;;  %v1609_v36 = vld [vmem:[%s2499_s2 + $0x38] sm:$0xf0] }
   0xe   :  { %v1486_v37 = vld [vmem:[#allocation4 + $0x30] sm:$0xf]  ;;  %v1443_v38 = vor.u32 %v1620_v31, %v1440_v33  ;;  %v1633_v39 = vld [vmem:[#allocation4 + $0x38] sm:$0xf0]  ;;  %v1428_v41 = vld [vmem:[%s2499_s2 + $0x84] sm:$0xf0]  ;;  %v1391_v42 = vor.u32 %v1609_v36, %v1390_v35 }
   0xf   :  { %253 = vmatpush.bf16.msra.mxu1 %v1455_v30  ;;  %v1617_v40 = vld [vmem:[%s2499_s2 + $0x7c] sm:$0xf]  ;;  %v1378_v43 = vld [vmem:[%s2499_s2 + $0x18] sm:$0xf]  ;;  %v1606_v44 = vld [vmem:[%s2499_s2 + $0x20] sm:$0xf0]  ;;  %v1904_v45 = vor.u32 %v1633_v39, %v1486_v37 }
  0x10   :  { %226 = vmatpush.bf16.msra.mxu0 %v1427_v16  ;;  %v1474_v46 = vld [vmem:[#allocation4 + $0x18] sm:$0xf]  ;;  %v1630_v47 = vld [vmem:[#allocation4 + $0x20] sm:$0xf0]  ;;  %v1431_v48 = vor.u32 %v1617_v40, %v1428_v41  ;;  %v1416_v50 = vld [vmem:[%s2499_s2 + $0x6c] sm:$0xf0]  ;;  %v1379_v54 = vor.u32 %v1606_v44, %v1378_v43 }
  0x11   :  { %512 = vmatpush.bf16.msra.mxu3 %v1853_v17  ;;  %v1614_v49 = vld [vmem:[%s2499_s2 + $0x64] sm:$0xf]  ;;  %v1458_v51 = vld [vmem:[%s2499_s2 + $0xb0] sm:$0xf]  ;;  %v1625_v52 = vld [vmem:[%s2499_s2 + $0xb8] sm:$0xf0]  ;;  %v1925_v58 = vor.u32 %v1630_v47, %v1474_v46 }
  0x12   :  { %v1459_v53 = vor.u32 %v1625_v52, %v1458_v51  ;;  %v1366_v55 = vld [vmem:[%s2499_s2] sm:$0xf]  ;;  %v1603_v56 = vld [vmem:[%s2499_s2 + $0x8] sm:$0xf0]  ;;  %v1548_v61 = vld [vmem:[#allocation4 + $0xb4] sm:$0xf0]  ;;  %v1419_v62 = vor.u32 %v1614_v49, %v1416_v50 }
  0x13   :  { %254 = vmatpush.bf16.msra.mxu1 %v1443_v38  ;;  %v1462_v57 = vld [vmem:[#allocation4] sm:$0xf]  ;;  %v1627_v59 = vld [vmem:[#allocation4 + $0x8] sm:$0xf0]  ;;  %v1554_v63 = vld [vmem:[#allocation4 + $0xb0] sm:$0xf]  ;;  %v1367_v5 = vor.u32 %v1603_v56, %v1366_v55 }
  0x14   :  { %227 = vmatpush.bf16.msra.mxu0 %v1415_v22  ;;  %v1647_v60 = vld [vmem:[#allocation4 + $0xac] sm:$0xf]  ;;  %v1649_v0 = vld [vmem:[#allocation4 + $0xb8] sm:$0xf0]  ;;  %282 = vmatpush.bf16.msra.mxu2 %v1459_v53  ;;  %v1446_v1 = vld [vmem:[%s2499_s2 + $0x98] sm:$0xf]  ;;  %v1950_v10 = vor.u32 %v1627_v59, %v1462_v57 }
  0x15   :  { %513 = vmatpush.bf16.msra.mxu3 %v1862_v23  ;;  %v1611_v2 = vld [vmem:[%s2499_s2 + $0x4c] sm:$0xf]  ;;  %v1404_v3 = vld [vmem:[%s2499_s2 + $0x54] sm:$0xf0]  ;;  %v1622_v4 = vld [vmem:[%s2499_s2 + $0xa0] sm:$0xf0]  ;;  %v1952_v12 = vor.u32 %v1649_v0, %v1554_v63  ;;  %v1954_v15 = vor.u32 %v1647_v60, %v1548_v61 }
  0x16   :  { %v1942_v6 = vld [vmem:[%s2497_s0] sm:$0xff]  ;;  %v1947_v8 = vld [vmem:[%s2497_s0 + $0x8] sm:$0xff]  ;;  %v1447_v9 = vor.u32 %v1622_v4, %v1446_v1  ;;  %v1644_v13 = vld [vmem:[#allocation4 + $0x94] sm:$0xf]  ;;  %v1407_v18 = vor.u32 %v1611_v2, %v1404_v3  ;;  %v1788_v40 = vmov 0.0|0.0  }
  0x17   :  { %255 = vmatpush.bf16.msra.mxu1 %v1431_v48  ;;  %v1542_v14 = vld [vmem:[#allocation4 + $0x98] sm:$0xf]  ;;  %v1646_v16 = vld [vmem:[#allocation4 + $0xa0] sm:$0xf0]  ;;  %v1434_v19 = vld [vmem:[%s2499_s2 + $0x80] sm:$0xf]  ;;  %v1964_v21 = vpack.c.bf16 %v1947_v8, %v1942_v6 }
  0x18   :  { %228 = vmatpush.bf16.msra.mxu0 %v1403_v32  ;;  %283 = vmatpush.bf16.msra.mxu2 %v1447_v9  ;;  %v1619_v20 = vld [vmem:[%s2499_s2 + $0x88] sm:$0xf0]  ;;  %v1536_v22 = vld [vmem:[#allocation4 + $0x9c] sm:$0xf0]  ;;  %v1608_v24 = vld [vmem:[%s2499_s2 + $0x34] sm:$0xf]  ;;  %v1974_v28 = vor.u32 %v1646_v16, %v1542_v14 }
  0x19   :  { %514 = vmatpush.bf16.msra.mxu3 %v1883_v34  ;;  %v1392_v25 = vld [vmem:[%s2499_s2 + $0x3c] sm:$0xf0]  ;;  %v1435_v26 = vor.u32 %v1619_v20, %v1434_v19  ;;  %v1641_v27 = vld [vmem:[#allocation4 + $0x7c] sm:$0xf]  ;;  %v1977_v30 = vor.u32 %v1644_v13, %v1536_v22  ;;  %v1643_v31 = vld [vmem:[#allocation4 + $0x88] sm:$0xf0] }
  0x1a   :  { %v1530_v29 = vld [vmem:[#allocation4 + $0x80] sm:$0xf]  ;;  %v1395_v32 = vor.u32 %v1608_v24, %v1392_v25  ;;  %v1422_v33 = vld [vmem:[%s2499_s2 + $0x68] sm:$0xf]  ;;  %v1616_v35 = vld [vmem:[%s2499_s2 + $0x70] sm:$0xf0] }
  0x1b   :  { %256 = vmatpush.bf16.msra.mxu1 %v1419_v62  ;;  %v1524_v36 = vld [vmem:[#allocation4 + $0x84] sm:$0xf0]  ;;  %v1605_v37 = vld [vmem:[%s2499_s2 + $0x1c] sm:$0xf]  ;;  %v1423_v39 = vor.u32 %v1616_v35, %v1422_v33  ;;  %v1410_v41 = vld [vmem:[%s2499_s2 + $0x50] sm:$0xf]  ;;  %v2000_v43 = vor.u32 %v1643_v31, %v1530_v29 }
  0x1c   :  { %229 = vmatpush.bf16.msra.mxu0 %v1391_v42  ;;  %v1380_v38 = vld [vmem:[%s2499_s2 + $0x24] sm:$0xf0]  ;;  %284 = vmatpush.bf16.msra.mxu2 %v1435_v26  ;;  %v1613_v42 = vld [vmem:[%s2499_s2 + $0x58] sm:$0xf0]  ;;  %v2003_v44 = vor.u32 %v1641_v27, %v1524_v36  ;;  %v1638_v46 = vld [vmem:[#allocation4 + $0x64] sm:$0xf] }
  0x1d   :  { %515 = vmatpush.bf16.msra.mxu3 %v1904_v45  ;;  %v1518_v47 = vld [vmem:[#allocation4 + $0x68] sm:$0xf]  ;;  %v1640_v48 = vld [vmem:[#allocation4 + $0x70] sm:$0xf0]  ;;  %v1383_v49 = vor.u32 %v1605_v37, %v1380_v38  ;;  %v1512_v50 = vld [vmem:[#allocation4 + $0x6c] sm:$0xf0]  ;;  %v1411_v53 = vor.u32 %v1613_v42, %v1410_v41 }
  0x1e   :  { %v1602_v51 = vld [vmem:[%s2499_s2 + $0x4] sm:$0xf]  ;;  %v1368_v52 = vld [vmem:[%s2499_s2 + $0xc] sm:$0xf0]  ;;  %v2018_v56 = vor.u32 %v1640_v48, %v1518_v47  ;;  %v2021_v57 = vor.u32 %v1638_v46, %v1512_v50  ;;  %v1637_v61 = vld [vmem:[#allocation4 + $0x58] sm:$0xf0] }
  0x1f   :  { %257 = vmatpush.bf16.msra.mxu1 %v1407_v18  ;;  %v1610_v55 = vld [vmem:[%s2499_s2 + $0x40] sm:$0xf0]  ;;  %v1371_v59 = vor.u32 %v1602_v51, %v1368_v52  ;;  %v1506_v60 = vld [vmem:[#allocation4 + $0x50] sm:$0xf]  ;;  %v1635_v62 = vld [vmem:[#allocation4 + $0x4c] sm:$0xf] }
  0x20   :  { %230 = vmatpush.bf16.msra.mxu0 %v1379_v54  ;;  %285 = vmatpush.bf16.msra.mxu2 %v1423_v39  ;;  %v1398_v54 = vld [vmem:[%s2499_s2 + $0x38] sm:$0xf]  ;;  %v2026_v0 = vld [vmem:[%s2497_s0 + $0x10] sm:$0xff]  ;;  %v1386_v3 = vld [vmem:[%s2499_s2 + $0x20] sm:$0xf]  ;;  %v1789_v50 = vmov 0  }
  0x21   :  { %516 = vmatpush.bf16.msra.mxu3 %v1925_v58  ;;  %v1500_v63 = vld [vmem:[#allocation4 + $0x54] sm:$0xf0]  ;;  %v1399_v1 = vor.u32 %v1610_v55, %v1398_v54  ;;  %v1607_v4 = vld [vmem:[%s2499_s2 + $0x28] sm:$0xf0]  ;;  %v1634_v14 = vld [vmem:[#allocation4 + $0x40] sm:$0xf0]  ;;  %1656 = vset.pattern.permute.xlu0 %v1789_v50 }
  0x22   :  { %v47_v2 = vld [vmem:[%s2497_s0 + $0x18] sm:$0xff]  ;;  %v2041_v9 = vor.u32 %v1635_v62, %v1500_v63  ;;  %v1632_v18 = vld [vmem:[#allocation4 + $0x34] sm:$0xf]  ;;  %v1488_v19 = vld [vmem:[#allocation4 + $0x3c] sm:$0xf0]  ;;  %v1387_v20 = vor.u32 %v1607_v4, %v1386_v3  ;;  %v2504_v51 = vmov 0.0   ;;  %1667 = vset.pattern.permute.xlu1 %v1789_v50 }
  0x23   :  { %258 = vmatpush.bf16.msra.mxu1 %v1395_v32  ;;  %v1494_v13 = vld [vmem:[#allocation4 + $0x38] sm:$0xf]  ;;  %v2044_v16 = vpack.c.bf16 %v47_v2, %v2026_v0  ;;  %v2052_v24 = vor.u32 %v1632_v18, %v1488_v19  ;;  %v1629_v25 = vld [vmem:[#allocation4 + $0x1c] sm:$0xf]  ;;  %v1374_v26 = vld [vmem:[%s2499_s2 + $0x8] sm:$0xf] }
  0x24   :  { %231 = vmatpush.bf16.msra.mxu0 %v1367_v5  ;;  %286 = vmatpush.bf16.msra.mxu2 %v1411_v53  ;;  %v2038_v5 = vor.u32 %v1637_v61, %v1506_v60  ;;  %v2049_v22 = vor.u32 %v1634_v14, %v1494_v13  ;;  %v1604_v27 = vld [vmem:[%s2499_s2 + $0x10] sm:$0xf0]  ;;  %v1476_v29 = vld [vmem:[#allocation4 + $0x24] sm:$0xf0]  ;;  %v1482_v31 = vld [vmem:[#allocation4 + $0x20] sm:$0xf] }
  0x25   :  { %517 = vmatpush.bf16.msra.mxu3 %v1950_v10  ;;  %v1631_v32 = vld [vmem:[#allocation4 + $0x28] sm:$0xf0]  ;;  %v1375_v33 = vor.u32 %v1604_v27, %v1374_v26  ;;  %v2066_v36 = vor.u32 %v1629_v25, %v1476_v29  ;;  %v1470_v37 = vld [vmem:[#allocation4 + $0x8] sm:$0xf]  ;;  %v1628_v38 = vld [vmem:[#allocation4 + $0x10] sm:$0xf0] }
  0x26   :  { %v2063_v35 = vor.u32 %v1631_v32, %v1482_v31  ;;  %v1626_v39 = vld [vmem:[#allocation4 + $0x4] sm:$0xf]  ;;  %v1464_v41 = vld [vmem:[#allocation4 + $0xc] sm:$0xf0]  ;;  %v2071_v42 = vor.u32 %v1628_v38, %v1470_v37  ;;  %v49_v48 = vld [vmem:[%s2497_s0 + $0x28] sm:$0xff] }
  0x27   :  { %232 = vmatmul.bf16.vlgmr.msra.gmra.mxu0 %v1964_v21  ;;  %259 = vmatpush.bf16.msra.mxu1 %v1383_v49  ;;  %v2074_v46 = vor.u32 %v1626_v39, %v1464_v41  ;;  %v48_v47 = vld [vmem:[%s2497_s0 + $0x20] sm:$0xff]  ;;  %v50_v55 = vld [vmem:[%s2497_s0 + $0x30] sm:$0xff] }
  0x28   :  { %536 = vmatpush.bf16.msrb.mxu0 %v1952_v12  ;;  %518 = vmatmul.bf16.vlgmr.msra.gmra.mxu3 %v1788_v40  ;;  %v54_v49 = vpack.c.bf16 %v49_v48, %v48_v47  ;;  %v88_v61 = vld [vmem:[%s2500_s3] sm:$0x7] }
  0x29   :  { %523 = vmatpush.bf16.msrb.mxu3 %v1954_v15  ;;  %287 = vmatpush.bf16.msra.mxu2 %v1399_v1  ;;  %v367_v62 = vld [vmem:[%s2502_s5] sm:$0x7]  ;;  %v90_v63 = vperm.slane %v88_v61, 0  ;;  %v2179_v32 = vperm.slane %v88_v61, 1  ;;  %v2185_v47 = vperm.slane %v88_v61, 2 }
  0x2a   :  { %v2170_v3 = vperm.slane %v367_v62, 0  ;;  %v2183_v39 = vperm.slane %v367_v62, 1 }
  0x2b   :  { %260 = vmatpush.bf16.msra.mxu1 %v1371_v59  ;;  %v51_v59 = vld [vmem:[%s2497_s0 + $0x38] sm:$0xff]  ;;  %2507 = vst [vmem:[#allocation7_spill] sm:$0xff] %v2185_v47 }
  0x2c   :  { %537 = vmatpush.bf16.msrb.mxu0 %v1974_v28  ;;  %v55_v60 = vpack.c.bf16 %v51_v59, %v50_v55 }
  0x2d   :  { %524 = vmatpush.bf16.msrb.mxu3 %v1977_v30  ;;  %288 = vmatpush.bf16.msra.mxu2 %v1387_v20 }
  0x2e   :  { %261 = vmatmul.bf16.vlgmr.msra.gmra.mxu1 %v1964_v21 }
  0x2f   :  { %614 = vmatpush.bf16.msrb.mxu1 %v1841_v7 }
  0x30   :  { %538 = vmatpush.bf16.msrb.mxu0 %v2000_v43 }
  0x31   :  { %525 = vmatpush.bf16.msrb.mxu3 %v2003_v44  ;;  %289 = vmatpush.bf16.msra.mxu2 %v1375_v33 }
  0x33   :  { %615 = vmatpush.bf16.msrb.mxu1 %v1844_v11 }
  0x34   :  { %539 = vmatpush.bf16.msrb.mxu0 %v2018_v56  ;;  %290 = vmatmul.bf16.vlgmr.msra.gmra.mxu2 %v1964_v21  ;;  %v2097_v21 = vld [vmem:[%s2498_s1] sm:$0xff] }
  0x35   :  { %526 = vmatpush.bf16.msrb.mxu3 %v2021_v57  ;;  %627 = vmatpush.bf16.msrb.mxu2 %v1954_v15  ;;  %vm1558_vm0 = vcmp.gt.s32.totalorder %v2097_v21, 0  ;;  %vm1562_vm1 = vcmp.gt.s32.totalorder %v2097_v21, 1  ;;  %vm1568_vm10 = vcmp.gt.s32.totalorder %v2097_v21, 2  ;;  %vm1574_vm11 = vcmp.gt.s32.totalorder %v2097_v21, 3 }
  0x36   :  { %v1559_v52 = vsel %vm1558_vm0, 1.0, %v2504_v51  ;;  %v1563_v53 = vsel %vm1562_vm1, 1.0, %v2504_v51 }
  0x37   :  { %237 = vmatmul.bf16.gmra.mxu0 %v2044_v16  ;;  %616 = vmatpush.bf16.msrb.mxu1 %v1853_v17  ;;  %v1657_v54 = vpack.i.bf16 %v1563_v53, %v1559_v52 }
  0x38   :  { %540 = vmatpush.bf16.msrb.mxu0 %v2038_v5 }
  0x39   :  { %527 = vmatpush.bf16.msrb.mxu3 %v2041_v9  ;;  %628 = vmatpush.bf16.msrb.mxu2 %v1977_v30 }
  0x3a   :  { %1658 = vperm.xlu0 %1656, %v1657_v54  }
  0x3b   :  { %617 = vmatpush.bf16.msrb.mxu1 %v1862_v23 }
  0x3c   :  { %541 = vmatpush.bf16.msrb.mxu0 %v2049_v22 }
  0x3d   :  { %528 = vmatpush.bf16.msrb.mxu3 %v2052_v24  ;;  %629 = vmatpush.bf16.msrb.mxu2 %v2003_v44 }
  0x3e   :  { %266 = vmatmul.bf16.gmra.mxu1 %v2044_v16 }
  0x3f   :  { %618 = vmatpush.bf16.msrb.mxu1 %v1883_v34 }
  0x40   :  { %542 = vmatpush.bf16.msrb.mxu0 %v2063_v35 }
  0x41   :  { %529 = vmatpush.bf16.msrb.mxu3 %v2066_v36  ;;  %630 = vmatpush.bf16.msrb.mxu2 %v2021_v57 }
  0x43   :  { %619 = vmatpush.bf16.msrb.mxu1 %v1904_v45 }
  0x44   :  { %543 = vmatpush.bf16.msrb.mxu0 %v2071_v42  ;;  %295 = vmatmul.bf16.gmra.mxu2 %v2044_v16 }
  0x45   :  { %530 = vmatpush.bf16.msrb.mxu3 %v2074_v46  ;;  %631 = vmatpush.bf16.msrb.mxu2 %v2041_v9 }
  0x47   :  { %242 = vmatmul.bf16.gmra.mxu0 %v54_v49  ;;  %620 = vmatpush.bf16.msrb.mxu1 %v1925_v58 }
  0x48   :  { %721 = vmatpush.bf16.msra.mxu0 %v1841_v7  ;;  %531 = vmatmul.bf16.vlgmr.msrb.gmra.mxu3 %v1788_v40 }
  0x49   :  { %640 = vmatpush.bf16.msra.mxu3 %v1952_v12  ;;  %632 = vmatpush.bf16.msrb.mxu2 %v2052_v24 }
  0x4b   :  { %621 = vmatpush.bf16.msrb.mxu1 %v1950_v10 }
  0x4c   :  { %722 = vmatpush.bf16.msra.mxu0 %v1844_v11 }
  0x4d   :  { %641 = vmatpush.bf16.msra.mxu3 %v1974_v28  ;;  %633 = vmatpush.bf16.msrb.mxu2 %v2066_v36 }
  0x4e   :  { %271 = vmatmul.bf16.gmra.mxu1 %v54_v49 }
  0x4f   :  { %734 = vmatpush.bf16.msra.mxu1 %v1954_v15 }
  0x50   :  { %723 = vmatpush.bf16.msra.mxu0 %v1853_v17 }
  0x51   :  { %642 = vmatpush.bf16.msra.mxu3 %v2000_v43  ;;  %634 = vmatpush.bf16.msrb.mxu2 %v2074_v46 }
  0x53   :  { %735 = vmatpush.bf16.msra.mxu1 %v1977_v30 }
  0x54   :  { %724 = vmatpush.bf16.msra.mxu0 %v1862_v23  ;;  %300 = vmatmul.bf16.gmra.mxu2 %v54_v49 }
  0x55   :  { %643 = vmatpush.bf16.msra.mxu3 %v2018_v56  ;;  %747 = vmatpush.bf16.msra.mxu2 %v1952_v12 }
  0x57   :  { %247 = vmatmul.bf16.gmra.mxu0 %v55_v60  ;;  %736 = vmatpush.bf16.msra.mxu1 %v2003_v44 }
  0x58   :  { %725 = vmatpush.bf16.msra.mxu0 %v1883_v34 }
  0x59   :  { %644 = vmatpush.bf16.msra.mxu3 %v2038_v5  ;;  %748 = vmatpush.bf16.msra.mxu2 %v1974_v28 }
  0x5b   :  { %737 = vmatpush.bf16.msra.mxu1 %v2021_v57 }
  0x5c   :  { %726 = vmatpush.bf16.msra.mxu0 %v1904_v45 }
  0x5d   :  { %645 = vmatpush.bf16.msra.mxu3 %v2049_v22  ;;  %749 = vmatpush.bf16.msra.mxu2 %v2000_v43 }
  0x5e   :  { %276 = vmatmul.bf16.gmra.mxu1 %v55_v60 }
  0x5f   :  { %738 = vmatpush.bf16.msra.mxu1 %v2041_v9 }
  0x60   :  { %727 = vmatpush.bf16.msra.mxu0 %v1925_v58 }
  0x61   :  { %646 = vmatpush.bf16.msra.mxu3 %v2063_v35  ;;  %750 = vmatpush.bf16.msra.mxu2 %v2018_v56 }
  0x63   :  { %739 = vmatpush.bf16.msra.mxu1 %v2052_v24 }
  0x64   :  { %728 = vmatpush.bf16.msra.mxu0 %v1950_v10  ;;  %305 = vmatmul.bf16.gmra.mxu2 %v55_v60 }
  0x65   :  { %647 = vmatpush.bf16.msra.mxu3 %v2071_v42  ;;  %751 = vmatpush.bf16.msra.mxu2 %v2038_v5 }
  0x67   :  { %544 = vmatmul.bf16.vlgmr.msrb.gmra.mxu0 %v1788_v40  ;;  %740 = vmatpush.bf16.msra.mxu1 %v2066_v36 }
  0x68   :  { %841 = vmatpush.bf16.msrb.mxu0 %v1954_v15 }
  0x69   :  { %828 = vmatpush.bf16.msrb.mxu3 %v1841_v7  ;;  %752 = vmatpush.bf16.msra.mxu2 %v2049_v22 }
  0x6b   :  { %741 = vmatpush.bf16.msra.mxu1 %v2074_v46 }
  0x6c   :  { %842 = vmatpush.bf16.msrb.mxu0 %v1977_v30 }
  0x6d   :  { %829 = vmatpush.bf16.msrb.mxu3 %v1844_v11  ;;  %753 = vmatpush.bf16.msra.mxu2 %v2063_v35 }
  0x70   :  { %843 = vmatpush.bf16.msrb.mxu0 %v2003_v44 }
  0x71   :  { %830 = vmatpush.bf16.msrb.mxu3 %v1853_v17  ;;  %754 = vmatpush.bf16.msra.mxu2 %v2071_v42 }
  0x74   :  { %844 = vmatpush.bf16.msrb.mxu0 %v2021_v57 }
  0x75   :  { %831 = vmatpush.bf16.msrb.mxu3 %v1862_v23 }
  0x78   :  { %845 = vmatpush.bf16.msrb.mxu0 %v2041_v9 }
  0x79   :  { %832 = vmatpush.bf16.msrb.mxu3 %v1883_v34 }
  0x7c   :  { %846 = vmatpush.bf16.msrb.mxu0 %v2052_v24 }
  0x7d   :  { %833 = vmatpush.bf16.msrb.mxu3 %v1904_v45 }
  0x80   :  { %847 = vmatpush.bf16.msrb.mxu0 %v2066_v36 }
  0x81   :  { %834 = vmatpush.bf16.msrb.mxu3 %v1925_v58 }
  0x84   :  { %848 = vmatpush.bf16.msrb.mxu0 %v2074_v46 }
  0x85   :  { %835 = vmatpush.bf16.msrb.mxu3 %v1950_v10 }
  0xa4   :  { %v233_v40 = vpop.f32.mrf.mxu0 }
  0xa5   :  { %v234_v14 = vadd.f32 %v233_v40, %v90_v63 }
  0xab   :  { %v519_v1 = vpop.f32.mrf.mxu3  ;;  %v262_v37 = vpop.f32.mrf.mxu1 }
  0xac   :  { %v235_v2 = vpop.f32.mrf.mxu0  ;;  %v520_v13 = vadd.f32 %v519_v1, %v2170_v3  ;;  %v263_v48 = vadd.f32 %v262_v37, %v2179_v32 }
  0xad   :  { %v2172_v4 = vadd.f32 %v235_v2, %v90_v63 }
  0xae   :  { %v549_v19 = vadd.f32 %v520_v13, %v234_v14 }
  0xb0   :  { %v1556_v25 = vmul.f32 -1.442695, %v549_v19 }
  0xb2   :  { %1678 = vpow2.f32 %v1556_v25 }
  0xb3   :  { %v521_v16 = vpop.f32.mrf.mxu3 }
  0xb4   :  { %v238_v18 = vpop.f32.mrf.mxu0 }
  0xb5   :  { %v2175_v20 = vadd.f32 %v238_v18, %v90_v63 }
  0xb7   :  { %v291_v29 = vpop.f32.mrf.mxu2 }
  0xb8   :  { %v1679_v31 = vpop.eup %1678 }
  0xb9   :  { %v553_v41 = vadd.f32 1.0, %v1679_v31 }
  0xbb   :  { %1680 = vrcp.f32 %v553_v41  ;;  %vm559_vm3 = vweird.f32 %v553_v41 }
  0xbc   :  { %v240_v26 = vpop.f32.mrf.mxu0 }
  0xbd   :  { %v2177_v27 = vadd.f32 %v240_v26, %v90_v63 }
  0xbf   :  { %v293_v52 = vpop.f32.mrf.mxu2 }
  0xc0   :  { %v2190_v53 = vadd.f32 %v293_v52, %v2185_v47 }
  0xc1   :  { %v1681_v40 = vpop.eup %1680 }
  0xc2   :  { %v555_v61 = vmul.f32 %v1681_v40, %v553_v41  ;;  %vm560_vm2 = vweird.f32 %v1681_v40 }
  0xc3   :  { %vm561_vm4 = vmor %vm559_vm3, %vm560_vm2 }
  0xc4   :  { %v243_v33 = vpop.f32.mrf.mxu0  ;;  %v556_v18 = vsub.f32 1.0, %v555_v61 }
  0xc5   :  { %v2181_v38 = vadd.f32 %v243_v33, %v90_v63 }
  0xc6   :  { %v557_v25 = vmul.f32 %v1681_v40, %v556_v18  ;;  %v292_v18 = vadd.f32 %v291_v29, %v2185_v47 }
  0xc7   :  { %v296_v19 = vpop.f32.mrf.mxu2 }
  0xc8   :  { %v2197_v26 = vadd.f32 %v296_v19, %v2185_v47 }
  0xcb   :  { %v532_v49 = vpop.f32.mrf.mxu3 }
  0xcc   :  { %v533_v50 = vadd.f32 %v532_v49, %v2183_v39  ;;  %v245_v55 = vpop.f32.mrf.mxu0  ;;  %v558_v49 = vadd.f32 %v1681_v40, %v557_v25 }
  0xcd   :  { %v2192_v60 = vadd.f32 %v245_v55, %v90_v63  ;;  %v563_v55 = vand.u32 2147483647, %v553_v41 }
  0xce   :  { %v569_v54 = vadd.f32 %v533_v50, %v263_v48  ;;  %v565_v50 = vand.u32 2147483648, %v553_v41  ;;  %v562_v61 = vsel %vm561_vm4, %v1681_v40, %v558_v49 }
  0xcf   :  { %2508 = vst [vmem:[#allocation8_spill] sm:$0xff] %v2192_v60  ;;  %vm564_vm5 = vcmp.eq.f32.partialorder %v563_v55, 8.507059e+37 }
  0xd0   :  { %v1557_v59 = vmul.f32 -1.442695, %v569_v54  ;;  %v2201_v54 = vperm.slane %v367_v62, 2 }
  0xd2   :  { %1682 = vpow2.f32 %v1557_v59  ;;  %v298_v59 = vpop.f32.mrf.mxu2 }
  0xd3   :  { %v534_v1 = vpop.f32.mrf.mxu3 }
  0xd4   :  { %v248_v2 = vpop.f32.mrf.mxu0 }
  0xd5   :  { %v2194_v14 = vadd.f32 %v248_v2, %v90_v63  ;;  %v2204_v2 = vadd.f32 %v298_v59, %v2185_v47 }
  0xd7   :  { %2509 = vst [vmem:[#allocation9_spill] sm:$0xff] %v2194_v14 }
  0xd8   :  { %v1683_v13 = vpop.eup %1682 }
  0xd9   :  { %v573_v16 = vadd.f32 1.0, %v1683_v13 }
  0xda   :  { %v301_v49 = vpop.f32.mrf.mxu2 }
  0xdb   :  { %1684 = vrcp.f32 %v573_v16  ;;  %vm579_vm6 = vweird.f32 %v573_v16 }
  0xdc   :  { %v250_v31 = vpop.f32.mrf.mxu0 }
  0xdd   :  { %v2199_v33 = vadd.f32 %v250_v31, %v90_v63  ;;  %v566_v63 = vor.u32 1.1754944e-38, %v565_v50  ;;  %v585_v31 = vand.u32 2147483648, %v573_v16  ;;  %v2209_v50 = vadd.f32 %v301_v49, %v2185_v47 }
  0xdf   :  { %2510 = vst [vmem:[#allocation10_spill] sm:$0xff] %v2199_v33  ;;  %v567_v62 = vsel %vm564_vm5, %v566_v63, %v562_v61  ;;  %v586_v59 = vor.u32 1.1754944e-38, %v585_v31  ;;  %v2211_v33 = vpop.permute.xlu0 %1658  ;;  %v264_v31 = vpop.f32.mrf.mxu1 }
  0xe0   :  { %2511 = vst [vmem:[#allocation11_spill] sm:$0xff] %v2209_v50 }
  0xe1   :  { %v1685_v37 = vpop.eup %1684 }
  0xe2   :  { %v575_v48 = vmul.f32 %v1685_v37, %v573_v16  ;;  %vm580_vm7 = vweird.f32 %v1685_v37  ;;  %v303_v63 = vpop.f32.mrf.mxu2 }
  0xe3   :  { %vm581_vm8 = vmor %vm579_vm6, %vm580_vm7 }
  0xe4   :  { %v576_v52 = vsub.f32 1.0, %v575_v48  ;;  %v545_v13 = vpop.f32.mrf.mxu0  ;;  %v583_v48 = vand.u32 2147483647, %v573_v16  ;;  %v2214_v16 = vadd.f32 %v303_v63, %v2185_v47 }
  0xe5   :  { %v546_v19 = vadd.f32 %v545_v13, %v2201_v54 }
  0xe6   :  { %v577_v1 = vmul.f32 %v1685_v37, %v576_v52  ;;  %vm584_vm9 = vcmp.eq.f32.partialorder %v583_v48, 8.507059e+37  ;;  %2512 = vst [vmem:[#allocation12_spill] sm:$0xff] %v2214_v16 }
  0xe7   :  { %v589_v41 = vmul.f32 %v567_v62, %v546_v19 }
  0xe8   :  { %v578_v25 = vadd.f32 %v1685_v37, %v577_v1 }
  0xe9   :  { %v590_v52 = vadd.f32 %v589_v41, %v292_v18  ;;  %v2253_v41 = vpop.f32.mrf.mxu1 }
  0xea   :  { %v582_v40 = vsel %vm581_vm8, %v1685_v37, %v578_v25  ;;  %v1660_v37 = vunpack.i.l.bf16 %v2211_v33 }
  0xeb   :  { %1686 = vtanh.f32 %v590_v52  ;;  %v587_v13 = vsel %vm584_vm9, %v586_v59, %v582_v40 }
  0xec   :  { %v547_v29 = vpop.f32.mrf.mxu0  ;;  %v592_v55 = vsub.f32 1.0, %v587_v13  ;;  %v594_v61 = vmul.f32 0.0, %v587_v13 }
  0xf1   :  { %v1687_v51 = vpop.eup %1686  ;;  %v2255_v48 = vpop.f32.mrf.mxu1 }
  0xf2   :  { %v593_v1 = vmul.f32 %v1687_v51, %v592_v55  ;;  %v306_v51 = vpop.f32.mrf.mxu2 }
  0xf4   :  { %v2217_v18 = vadd.f32 %v594_v61, %v593_v1 }
  0xf6   :  { %v601_v19 = vadd.f32 %v2217_v18, %v1942_v6  ;;  %v613_v62 = vpack.c.bf16 %v2217_v18, %v2217_v18  ;;  %v2230_v6 = vadd.f32 %v306_v51, %v2185_v47 }
  0xf8   :  { %v607_v25 = vmul.f32 %v1660_v37, %v601_v19  ;;  %622 = vmatmul.bf16.vlgmr.msrb.gmra.mxu1 %v613_v62  ;;  %635 = vmatmul.bf16.vlgmr.msrb.gmra.mxu2 %v613_v62  ;;  %2513 = vst [vmem:[#allocation13_spill] sm:$0xff] %v2230_v6  ;;  %v265_v37 = vadd.f32 %v264_v31, %v2179_v32 }
  0xf9   :  { %648 = vmatmul.bf16.vlgmr.msra.gmra.mxu3 %v613_v62  ;;  %854 = vmatpush.bf16.msrb.mxu1 %v1952_v12  ;;  %v2257_v52 = vpop.f32.mrf.mxu1 }
  0xfa   :  { %608 = vst [vmem:[%s2503_s6] sm:$0xff] %v607_v25  ;;  %935 = vmatpush.bf16.msrb.mxu2 %v1841_v7  ;;  %948 = vmatpush.bf16.msra.mxu3 %v1954_v15  ;;  %v2265_v29 = vpop.f32.mrf.mxu2 }
  0xfb   :  { %2517 = vst [vmem:[#allocation17_spill] sm:$0xff] %v2265_v29 }
  0xfd   :  { %855 = vmatpush.bf16.msrb.mxu1 %v1974_v28 }
  0xfe   :  { %936 = vmatpush.bf16.msrb.mxu2 %v1844_v11  ;;  %949 = vmatpush.bf16.msra.mxu3 %v1977_v30 }
 0x101   :  { %856 = vmatpush.bf16.msrb.mxu1 %v2000_v43  ;;  %v2259_v40 = vpop.f32.mrf.mxu1 }
 0x102   :  { %937 = vmatpush.bf16.msrb.mxu2 %v1853_v17  ;;  %950 = vmatpush.bf16.msra.mxu3 %v2003_v44  ;;  %2514 = vst [vmem:[#allocation14_spill] sm:$0xff] %v2259_v40 }
 0x105   :  { %857 = vmatpush.bf16.msrb.mxu1 %v2018_v56 }
 0x106   :  { %938 = vmatpush.bf16.msrb.mxu2 %v1862_v23  ;;  %951 = vmatpush.bf16.msra.mxu3 %v2021_v57 }
 0x109   :  { %858 = vmatpush.bf16.msrb.mxu1 %v2038_v5  ;;  %v2261_v49 = vpop.f32.mrf.mxu1 }
 0x10a   :  { %939 = vmatpush.bf16.msrb.mxu2 %v1883_v34  ;;  %952 = vmatpush.bf16.msra.mxu3 %v2041_v9  ;;  %2515 = vst [vmem:[#allocation15_spill] sm:$0xff] %v2261_v49 }
 0x10d   :  { %859 = vmatpush.bf16.msrb.mxu1 %v2049_v22 }
 0x10e   :  { %940 = vmatpush.bf16.msrb.mxu2 %v1904_v45  ;;  %953 = vmatpush.bf16.msra.mxu3 %v2052_v24 }
 0x111   :  { %860 = vmatpush.bf16.msrb.mxu1 %v2063_v35  ;;  %v2263_v59 = vpop.f32.mrf.mxu1 }
 0x112   :  { %941 = vmatpush.bf16.msrb.mxu2 %v1925_v58  ;;  %954 = vmatpush.bf16.msra.mxu3 %v2066_v36  ;;  %2516 = vst [vmem:[#allocation16_spill] sm:$0xff] %v2263_v59 }
 0x115   :  { %861 = vmatpush.bf16.msrb.mxu1 %v2071_v42 }
 0x116   :  { %942 = vmatpush.bf16.msrb.mxu2 %v1950_v10  ;;  %955 = vmatpush.bf16.msra.mxu3 %v2074_v46 }
 0x175   :  { %v623_v13 = vpop.f32.mrf.mxu1 }
 0x176   :  { %v624_v55 = vadd.f32 %v623_v13, %v2170_v3 }
 0x178   :  { %v653_v1 = vadd.f32 %v624_v55, %v2172_v4  ;;  %v2518_v4 = vmov 0.0  }
 0x179   :  { %v1569_v31 = vsel %vm1568_vm10, 1.0, %v2518_v4  ;;  %v1575_v55 = vsel %vm1574_vm11, 1.0, %v2518_v4 }
 0x17a   :  { %v1560_v61 = vmul.f32 -1.442695, %v653_v1 }
 0x17b   :  { %v636_v63 = vpop.f32.mrf.mxu2 }
 0x17c   :  { %1688 = vpow2.f32 %v1560_v61  ;;  %v637_v19 = vadd.f32 %v636_v63, %v2183_v39  ;;  %v649_v62 = vpop.f32.mrf.mxu3  ;;  %v1662_v63 = vpack.i.bf16 %v1575_v55, %v1569_v31 }
 0x17d   :  { %v625_v25 = vpop.f32.mrf.mxu1  ;;  %v650_v16 = vadd.f32 %v649_v62, %v2201_v54 }
 0x17e   :  { %v673_v51 = vadd.f32 %v637_v19, %v265_v37  ;;  %1663 = vperm.xlu0 %1656, %v1662_v63  }
 0x180   :  { %v1561_v47 = vmul.f32 -1.442695, %v673_v51 }
 0x182   :  { %v1689_v6 = vpop.eup %1688  ;;  %1690 = vpow2.f32 %v1561_v47 }
 0x183   :  { %v657_v59 = vadd.f32 1.0, %v1689_v6  ;;  %v638_v29 = vpop.f32.mrf.mxu2 }
 0x184   :  { %v651_v14 = vpop.f32.mrf.mxu3 }
 0x185   :  { %1692 = vrcp.f32 %v657_v59  ;;  %v669_v47 = vand.u32 2147483648, %v657_v59  ;;  %v667_v14 = vand.u32 2147483647, %v657_v59  ;;  %vm663_vm13 = vweird.f32 %v657_v59 }
 0x187   :  { %v670_v51 = vor.u32 1.1754944e-38, %v669_v47  ;;  %vm668_vm15 = vcmp.eq.f32.partialorder %v667_v14, 8.507059e+37  ;;  %v1661_v14 = vunpack.i.h.bf16 %v2211_v33 }
 0x188   :  { %v1691_v13 = vpop.eup %1690 }
 0x189   :  { %v677_v49 = vadd.f32 1.0, %v1691_v13 }
 0x18b   :  { %v1693_v1 = vpop.eup %1692  ;;  %1694 = vrcp.f32 %v677_v49  ;;  %v689_v31 = vand.u32 2147483648, %v677_v49  ;;  %vm683_vm1 = vweird.f32 %v677_v49 }
 0x18c   :  { %v659_v61 = vmul.f32 %v1693_v1, %v657_v59  ;;  %vm664_vm12 = vweird.f32 %v1693_v1 }
 0x18d   :  { %vm665_vm14 = vmor %vm663_vm13, %vm664_vm12  ;;  %vm1580_vm12 = vcmp.gt.s32.totalorder %v2097_v21, 4  ;;  %vm1586_vm13 = vcmp.gt.s32.totalorder %v2097_v21, 5 }
 0x18e   :  { %v660_v37 = vsub.f32 1.0, %v659_v61  ;;  %v687_v61 = vand.u32 2147483647, %v677_v49 }
 0x190   :  { %v661_v6 = vmul.f32 %v1693_v1, %v660_v37  ;;  %vm688_vm3 = vcmp.eq.f32.partialorder %v687_v61, 8.507059e+37 }
 0x191   :  { %v1695_v29 = vpop.eup %1694 }
 0x192   :  { %v679_v19 = vmul.f32 %v1695_v29, %v677_v49  ;;  %v662_v25 = vadd.f32 %v1693_v1, %v661_v6  ;;  %vm684_vm0 = vweird.f32 %v1695_v29  ;;  %v690_v6 = vor.u32 1.1754944e-38, %v689_v31 }
 0x193   :  { %vm685_vm2 = vmor %vm683_vm1, %vm684_vm0 }
 0x194   :  { %v680_v13 = vsub.f32 1.0, %v679_v19  ;;  %v666_v40 = vsel %vm665_vm14, %v1693_v1, %v662_v25 }
 0x195   :  { %v671_v60 = vsel %vm668_vm15, %v670_v51, %v666_v40 }
 0x196   :  { %v681_v50 = vmul.f32 %v1695_v29, %v680_v13  ;;  %v693_v55 = vmul.f32 %v671_v60, %v650_v16  ;;  %v268_v16 = vadd.f32 %v2253_v41, %v2179_v32 }
 0x198   :  { %v682_v63 = vadd.f32 %v1695_v29, %v681_v50  ;;  %v694_v37 = vadd.f32 %v693_v55, %v2190_v53 }
 0x19a   :  { %v686_v59 = vsel %vm685_vm2, %v1695_v29, %v682_v63  ;;  %1696 = vtanh.f32 %v694_v37 }
 0x19b   :  { %v691_v47 = vsel %vm688_vm3, %v690_v6, %v686_v59 }
 0x19c   :  { %v696_v19 = vsub.f32 1.0, %v691_v47  ;;  %v698_v40 = vmul.f32 %v691_v47, %v2217_v18 }
 0x1a0   :  { %v1697_v62 = vpop.eup %1696 }
 0x1a1   :  { %v697_v1 = vmul.f32 %v1697_v62, %v696_v19 }
 0x1a3   :  { %v2279_v25 = vadd.f32 %v698_v40, %v697_v1 }
 0x1a5   :  { %v707_v60 = vadd.f32 %v2279_v25, %v1947_v8  ;;  %v720_v53 = vpack.c.bf16 %v2279_v25, %v2279_v25 }
 0x1a7   :  { %v713_v50 = vmul.f32 %v1661_v14, %v707_v60  ;;  %729 = vmatmul.bf16.vlgmr.msra.gmra.mxu0 %v720_v53  ;;  %742 = vmatmul.bf16.vlgmr.msra.gmra.mxu1 %v720_v53 }
 0x1a8   :  { %755 = vmatmul.bf16.vlgmr.msra.gmra.mxu2 %v720_v53  ;;  %961 = vmatpush.bf16.msra.mxu0 %v1952_v12 }
 0x1a9   :  { %1565 = vst [vmem:[%s2503_s6 + $0x8] sm:$0xff] %v713_v50  ;;  %1042 = vmatpush.bf16.msra.mxu1 %v1841_v7  ;;  %1055 = vmatpush.bf16.msra.mxu2 %v1954_v15 }
 0x1ac   :  { %962 = vmatpush.bf16.msra.mxu0 %v1974_v28 }
 0x1ad   :  { %1043 = vmatpush.bf16.msra.mxu1 %v1844_v11  ;;  %1056 = vmatpush.bf16.msra.mxu2 %v1977_v30 }
 0x1b0   :  { %963 = vmatpush.bf16.msra.mxu0 %v2000_v43 }
 0x1b1   :  { %1044 = vmatpush.bf16.msra.mxu1 %v1853_v17  ;;  %1057 = vmatpush.bf16.msra.mxu2 %v2003_v44 }
 0x1b4   :  { %964 = vmatpush.bf16.msra.mxu0 %v2018_v56 }
 0x1b5   :  { %1045 = vmatpush.bf16.msra.mxu1 %v1862_v23  ;;  %1058 = vmatpush.bf16.msra.mxu2 %v2021_v57 }
 0x1b8   :  { %965 = vmatpush.bf16.msra.mxu0 %v2038_v5 }
 0x1b9   :  { %1046 = vmatpush.bf16.msra.mxu1 %v1883_v34  ;;  %1059 = vmatpush.bf16.msra.mxu2 %v2041_v9 }
 0x1bc   :  { %966 = vmatpush.bf16.msra.mxu0 %v2049_v22 }
 0x1bd   :  { %1047 = vmatpush.bf16.msra.mxu1 %v1904_v45  ;;  %1060 = vmatpush.bf16.msra.mxu2 %v2052_v24 }
 0x1c0   :  { %967 = vmatpush.bf16.msra.mxu0 %v2063_v35 }
 0x1c1   :  { %1048 = vmatpush.bf16.msra.mxu1 %v1925_v58  ;;  %1061 = vmatpush.bf16.msra.mxu2 %v2066_v36 }
 0x1c4   :  { %968 = vmatpush.bf16.msra.mxu0 %v2071_v42 }
 0x1c5   :  { %1049 = vmatpush.bf16.msra.mxu1 %v1950_v10  ;;  %1062 = vmatpush.bf16.msra.mxu2 %v2074_v46 }
 0x224   :  { %v730_v8 = vpop.f32.mrf.mxu0  ;;  %v743_v33 = vpop.f32.mrf.mxu1 }
 0x225   :  { %v731_v18 = vadd.f32 %v730_v8, %v2170_v3  ;;  %v744_v49 = vadd.f32 %v743_v33, %v2183_v39 }
 0x227   :  { %v760_v29 = vadd.f32 %v731_v18, %v2175_v20  ;;  %v780_v51 = vadd.f32 %v744_v49, %v268_v16 }
 0x229   :  { %v1566_v13 = vmul.f32 -1.442695, %v760_v29  ;;  %v1567_v31 = vmul.f32 -1.442695, %v780_v51 }
 0x22b   :  { %1698 = vpow2.f32 %v1566_v13  ;;  %v756_v55 = vpop.f32.mrf.mxu2 }
 0x22c   :  { %1700 = vpow2.f32 %v1567_v31  ;;  %v732_v61 = vpop.f32.mrf.mxu0  ;;  %v745_v63 = vpop.f32.mrf.mxu1  ;;  %v757_v18 = vadd.f32 %v756_v55, %v2201_v54 }
 0x22d   :  { %v2319_v55 = vpop.permute.xlu0 %1663 }
 0x231   :  { %v1699_v37 = vpop.eup %1698 }
 0x232   :  { %v1701_v6 = vpop.eup %1700  ;;  %v764_v59 = vadd.f32 1.0, %v1699_v37 }
 0x233   :  { %v784_v47 = vadd.f32 1.0, %v1701_v6  ;;  %v758_v19 = vpop.f32.mrf.mxu2 }
 0x234   :  { %1702 = vrcp.f32 %v764_v59  ;;  %v776_v60 = vand.u32 2147483648, %v764_v59  ;;  %v774_v50 = vand.u32 2147483647, %v764_v59  ;;  %vm770_vm5 = vweird.f32 %v764_v59 }
 0x235   :  { %1704 = vrcp.f32 %v784_v47  ;;  %v796_v31 = vand.u32 2147483648, %v784_v47  ;;  %vm790_vm9 = vweird.f32 %v784_v47  ;;  %v794_v61 = vand.u32 2147483647, %v784_v47 }
 0x236   :  { %v777_v16 = vor.u32 1.1754944e-38, %v776_v60  ;;  %vm775_vm7 = vcmp.eq.f32.partialorder %v774_v50, 8.507059e+37 }
 0x237   :  { %v797_v6 = vor.u32 1.1754944e-38, %v796_v31  ;;  %vm795_vm11 = vcmp.eq.f32.partialorder %v794_v61, 8.507059e+37 }
 0x23a   :  { %v1703_v41 = vpop.eup %1702 }
 0x23b   :  { %v1705_v62 = vpop.eup %1704  ;;  %v766_v1 = vmul.f32 %v1703_v41, %v764_v59  ;;  %vm771_vm4 = vweird.f32 %v1703_v41 }
 0x23c   :  { %v786_v40 = vmul.f32 %v1705_v62, %v784_v47  ;;  %vm772_vm6 = vmor %vm770_vm5, %vm771_vm4  ;;  %vm791_vm8 = vweird.f32 %v1705_v62 }
 0x23d   :  { %v767_v20 = vsub.f32 1.0, %v766_v1  ;;  %vm792_vm10 = vmor %vm790_vm9, %vm791_vm8 }
 0x23e   :  { %v787_v14 = vsub.f32 1.0, %v786_v40 }
 0x23f   :  { %v768_v53 = vmul.f32 %v1703_v41, %v767_v20  ;;  %v1665_v20 = vunpack.i.l.bf16 %v2319_v55 }
 0x240   :  { %v788_v8 = vmul.f32 %v1705_v62, %v787_v14 }
 0x241   :  { %v769_v33 = vadd.f32 %v1703_v41, %v768_v53 }
 0x242   :  { %v789_v51 = vadd.f32 %v1705_v62, %v788_v8 }
 0x243   :  { %v773_v49 = vsel %vm772_vm6, %v1703_v41, %v769_v33 }
 0x244   :  { %v778_v29 = vsel %vm775_vm7, %v777_v16, %v773_v49  ;;  %v793_v37 = vsel %vm792_vm10, %v1705_v62, %v789_v51 }
 0x245   :  { %v800_v13 = vmul.f32 %v778_v29, %v757_v18  ;;  %v798_v59 = vsel %vm795_vm11, %v797_v6, %v793_v37 }
 0x246   :  { %v803_v19 = vsub.f32 1.0, %v798_v59  ;;  %v805_v40 = vmul.f32 %v798_v59, %v2279_v25  ;;  %v270_v25 = vadd.f32 %v2255_v48, %v2179_v32  ;;  %v1581_v59 = vsel %vm1580_vm12, 1.0, %v2518_v4 }
 0x247   :  { %v801_v63 = vadd.f32 %v800_v13, %v2197_v26 }
 0x249   :  { %1706 = vtanh.f32 %v801_v63 }
 0x24f   :  { %v1707_v1 = vpop.eup %1706 }
 0x250   :  { %v804_v41 = vmul.f32 %v1707_v1, %v803_v19 }
 0x252   :  { %v2323_v14 = vadd.f32 %v805_v40, %v804_v41 }
 0x254   :  { %v814_v26 = vadd.f32 %v2323_v14, %v2026_v0  ;;  %v827_v47 = vpack.c.bf16 %v2323_v14, %v2323_v14 }
 0x256   :  { %v820_v62 = vmul.f32 %v1665_v20, %v814_v26  ;;  %836 = vmatmul.bf16.vlgmr.msrb.gmra.mxu3 %v827_v47  ;;  %849 = vmatmul.bf16.vlgmr.msrb.gmra.mxu0 %v827_v47 }
 0x257   :  { %862 = vmatmul.bf16.vlgmr.msrb.gmra.mxu1 %v827_v47  ;;  %1068 = vmatpush.bf16.msrb.mxu3 %v1952_v12 }
 0x258   :  { %1571 = vst [vmem:[%s2503_s6 + $0x10] sm:$0xff] %v820_v62  ;;  %1149 = vmatpush.bf16.msrb.mxu0 %v1841_v7  ;;  %1162 = vmatpush.bf16.msrb.mxu1 %v1954_v15 }
 0x25b   :  { %1069 = vmatpush.bf16.msrb.mxu3 %v1974_v28 }
 0x25c   :  { %1150 = vmatpush.bf16.msrb.mxu0 %v1844_v11  ;;  %1163 = vmatpush.bf16.msrb.mxu1 %v1977_v30 }
 0x25f   :  { %1070 = vmatpush.bf16.msrb.mxu3 %v2000_v43 }
 0x260   :  { %1151 = vmatpush.bf16.msrb.mxu0 %v1853_v17  ;;  %1164 = vmatpush.bf16.msrb.mxu1 %v2003_v44 }
 0x263   :  { %1071 = vmatpush.bf16.msrb.mxu3 %v2018_v56 }
 0x264   :  { %1152 = vmatpush.bf16.msrb.mxu0 %v1862_v23  ;;  %1165 = vmatpush.bf16.msrb.mxu1 %v2021_v57 }
 0x267   :  { %1072 = vmatpush.bf16.msrb.mxu3 %v2038_v5 }
 0x268   :  { %1153 = vmatpush.bf16.msrb.mxu0 %v1883_v34  ;;  %1166 = vmatpush.bf16.msrb.mxu1 %v2041_v9 }
 0x26b   :  { %1073 = vmatpush.bf16.msrb.mxu3 %v2049_v22 }
 0x26c   :  { %1154 = vmatpush.bf16.msrb.mxu0 %v1904_v45  ;;  %1167 = vmatpush.bf16.msrb.mxu1 %v2052_v24 }
 0x26f   :  { %1074 = vmatpush.bf16.msrb.mxu3 %v2063_v35 }
 0x270   :  { %1155 = vmatpush.bf16.msrb.mxu0 %v1925_v58  ;;  %1168 = vmatpush.bf16.msrb.mxu1 %v2066_v36 }
 0x273   :  { %1075 = vmatpush.bf16.msrb.mxu3 %v2071_v42 }
 0x274   :  { %1156 = vmatpush.bf16.msrb.mxu0 %v1950_v10  ;;  %1169 = vmatpush.bf16.msrb.mxu1 %v2074_v46 }
 0x2d3   :  { %v850_v0 = vpop.f32.mrf.mxu0 }
 0x2d4   :  { %v851_v60 = vadd.f32 %v850_v0, %v2183_v39  ;;  %v863_v53 = vpop.f32.mrf.mxu1 }
 0x2d5   :  { %v864_v21 = vadd.f32 %v863_v53, %v2201_v54 }
 0x2d6   :  { %v887_v50 = vadd.f32 %v851_v60, %v270_v25 }
 0x2d8   :  { %v1573_v8 = vmul.f32 -1.442695, %v887_v50 }
 0x2d9   :  { %v837_v33 = vpop.f32.mrf.mxu3 }
 0x2da   :  { %1708 = vpow2.f32 %v1573_v8  ;;  %v838_v16 = vadd.f32 %v837_v33, %v2170_v3 }
 0x2db   :  { %v852_v18 = vpop.f32.mrf.mxu0 }
 0x2dc   :  { %v867_v49 = vadd.f32 %v838_v16, %v2177_v27  ;;  %v865_v29 = vpop.f32.mrf.mxu1  ;;  %v1587_v27 = vsel %vm1586_vm13, 1.0, %v2518_v4 }
 0x2dd   :  { %v1668_v1 = vpack.i.bf16 %v1587_v27, %v1581_v59  ;;  %v1576_v59 = vld [vmem:[%s2497_s0 + $0x18] sm:$0xff]  ;;  %v1666_v27 = vunpack.i.h.bf16 %v2319_v55 }
 0x2de   :  { %v1572_v51 = vmul.f32 -1.442695, %v867_v49 }
 0x2df   :  { %1669 = vperm.xlu1 %1667, %v1668_v1  }
 0x2e0   :  { %v1709_v13 = vpop.eup %1708  ;;  %1710 = vpow2.f32 %v1572_v51 }
 0x2e1   :  { %v891_v31 = vadd.f32 1.0, %v1709_v13  ;;  %v839_v61 = vpop.f32.mrf.mxu3 }
 0x2e3   :  { %1712 = vrcp.f32 %v891_v31  ;;  %v903_v16 = vand.u32 2147483648, %v891_v31  ;;  %vm897_vm3 = vweird.f32 %v891_v31  ;;  %v901_v49 = vand.u32 2147483647, %v891_v31 }
 0x2e5   :  { %v904_v13 = vor.u32 1.1754944e-38, %v903_v16  ;;  %vm902_vm5 = vcmp.eq.f32.partialorder %v901_v49, 8.507059e+37  ;;  %v2519_v49 = vld [vmem:[#allocation11_spill] sm:$0xff] }
 0x2e6   :  { %v1711_v48 = vpop.eup %1710 }
 0x2e7   :  { %v871_v63 = vadd.f32 1.0, %v1711_v48 }
 0x2e9   :  { %1714 = vrcp.f32 %v871_v63  ;;  %v1713_v37 = vpop.eup %1712  ;;  %v883_v26 = vand.u32 2147483648, %v871_v63  ;;  %v881_v62 = vand.u32 2147483647, %v871_v63  ;;  %vm877_vm15 = vweird.f32 %v871_v63 }
 0x2ea   :  { %v893_v6 = vmul.f32 %v1713_v37, %v891_v31  ;;  %vm898_vm2 = vweird.f32 %v1713_v37 }
 0x2eb   :  { %v884_v60 = vor.u32 1.1754944e-38, %v883_v26  ;;  %vm882_vm1 = vcmp.eq.f32.partialorder %v881_v62, 8.507059e+37  ;;  %vm899_vm4 = vmor %vm897_vm3, %vm898_vm2 }
 0x2ec   :  { %v894_v40 = vsub.f32 1.0, %v893_v6 }
 0x2ee   :  { %v895_v0 = vmul.f32 %v1713_v37, %v894_v40 }
 0x2ef   :  { %v1715_v19 = vpop.eup %1714 }
 0x2f0   :  { %v873_v41 = vmul.f32 %v1715_v19, %v871_v63  ;;  %vm878_vm14 = vweird.f32 %v1715_v19  ;;  %v896_v33 = vadd.f32 %v1713_v37, %v895_v0 }
 0x2f1   :  { %vm879_vm0 = vmor %vm877_vm15, %vm878_vm14 }
 0x2f2   :  { %v874_v20 = vsub.f32 1.0, %v873_v41  ;;  %v900_v51 = vsel %vm899_vm4, %v1713_v37, %v896_v33 }
 0x2f3   :  { %v905_v61 = vsel %vm902_vm5, %v904_v13, %v900_v51 }
 0x2f4   :  { %v875_v47 = vmul.f32 %v1715_v19, %v874_v20  ;;  %v910_v48 = vsub.f32 1.0, %v905_v61  ;;  %v912_v6 = vmul.f32 %v905_v61, %v2323_v14 }
 0x2f6   :  { %v876_v25 = vadd.f32 %v1715_v19, %v875_v47 }
 0x2f8   :  { %v880_v50 = vsel %vm879_vm0, %v1715_v19, %v876_v25 }
 0x2f9   :  { %v885_v8 = vsel %vm882_vm1, %v884_v60, %v880_v50 }
 0x2fa   :  { %v907_v18 = vmul.f32 %v885_v8, %v864_v21 }
 0x2fc   :  { %v908_v29 = vadd.f32 %v907_v18, %v2204_v2 }
 0x2fe   :  { %1716 = vtanh.f32 %v908_v29 }
 0x304   :  { %v1717_v63 = vpop.eup %1716 }
 0x305   :  { %v911_v53 = vmul.f32 %v1717_v63, %v910_v48 }
 0x307   :  { %v2372_v31 = vadd.f32 %v912_v6, %v911_v53 }
 0x309   :  { %v921_v2 = vadd.f32 %v1576_v59, %v2372_v31  ;;  %v934_v37 = vpack.c.bf16 %v2372_v31, %v2372_v31 }
 0x30b   :  { %v927_v19 = vmul.f32 %v1666_v27, %v921_v2  ;;  %943 = vmatmul.bf16.vlgmr.msrb.gmra.mxu2 %v934_v37  ;;  %956 = vmatmul.bf16.vlgmr.msra.gmra.mxu3 %v934_v37  ;;  %v1582_v27 = vld [vmem:[%s2497_s0 + $0x20] sm:$0xff] }
 0x30c   :  { %969 = vmatmul.bf16.vlgmr.msra.gmra.mxu0 %v934_v37  ;;  %1175 = vmatpush.bf16.msrb.mxu2 %v1952_v12 }
 0x30d   :  { %1577 = vst [vmem:[%s2503_s6 + $0x18] sm:$0xff] %v927_v19  ;;  %1256 = vmatpush.bf16.msra.mxu3 %v1841_v7  ;;  %1269 = vmatpush.bf16.msra.mxu0 %v1954_v15 }
 0x310   :  { %1176 = vmatpush.bf16.msrb.mxu2 %v1974_v28 }
 0x311   :  { %1257 = vmatpush.bf16.msra.mxu3 %v1844_v11  ;;  %1270 = vmatpush.bf16.msra.mxu0 %v1977_v30 }
 0x314   :  { %1177 = vmatpush.bf16.msrb.mxu2 %v2000_v43 }
 0x315   :  { %1258 = vmatpush.bf16.msra.mxu3 %v1853_v17  ;;  %1271 = vmatpush.bf16.msra.mxu0 %v2003_v44 }
 0x318   :  { %1178 = vmatpush.bf16.msrb.mxu2 %v2018_v56 }
 0x319   :  { %1259 = vmatpush.bf16.msra.mxu3 %v1862_v23  ;;  %1272 = vmatpush.bf16.msra.mxu0 %v2021_v57  ;;  %v273_v23 = vadd.f32 %v2257_v52, %v2179_v32 }
 0x31c   :  { %1179 = vmatpush.bf16.msrb.mxu2 %v2038_v5 }
 0x31d   :  { %1260 = vmatpush.bf16.msra.mxu3 %v1883_v34  ;;  %1273 = vmatpush.bf16.msra.mxu0 %v2041_v9 }
 0x320   :  { %1180 = vmatpush.bf16.msrb.mxu2 %v2049_v22 }
 0x321   :  { %1261 = vmatpush.bf16.msra.mxu3 %v1904_v45  ;;  %1274 = vmatpush.bf16.msra.mxu0 %v2052_v24 }
 0x324   :  { %1181 = vmatpush.bf16.msrb.mxu2 %v2063_v35 }
 0x325   :  { %1262 = vmatpush.bf16.msra.mxu3 %v1925_v58  ;;  %1275 = vmatpush.bf16.msra.mxu0 %v2066_v36 }
 0x328   :  { %1182 = vmatpush.bf16.msrb.mxu2 %v2071_v42 }
 0x329   :  { %1263 = vmatpush.bf16.msra.mxu3 %v1950_v10  ;;  %1276 = vmatpush.bf16.msra.mxu0 %v2074_v46 }
 0x351   :  { %v2411_v53 = vpop.permute.xlu1 %1669 }
 0x352   :  { %v1671_v2 = vunpack.i.l.bf16 %v2411_v53 }
 0x389   :  { %v970_v7 = vpop.f32.mrf.mxu0 }
 0x38a   :  { %v971_v60 = vadd.f32 %v970_v7, %v2201_v54 }
 0x38e   :  { %v944_v11 = vpop.f32.mrf.mxu2  ;;  %v957_v17 = vpop.f32.mrf.mxu3 }
 0x38f   :  { %v945_v34 = vadd.f32 %v944_v11, %v2170_v3  ;;  %v958_v45 = vadd.f32 %v957_v17, %v2183_v39  ;;  %v2520_v17 = vld [vmem:[#allocation8_spill] sm:$0xff] }
 0x391   :  { %v974_v58 = vadd.f32 %v945_v34, %v2181_v38  ;;  %v994_v15 = vadd.f32 %v958_v45, %v273_v23  ;;  %v972_v30 = vpop.f32.mrf.mxu0 }
 0x393   :  { %v1578_v44 = vmul.f32 -1.442695, %v974_v58  ;;  %v1579_v57 = vmul.f32 -1.442695, %v994_v15 }
 0x395   :  { %1718 = vpow2.f32 %v1578_v44 }
 0x396   :  { %1720 = vpow2.f32 %v1579_v57  ;;  %v946_v10 = vpop.f32.mrf.mxu2  ;;  %v959_v9 = vpop.f32.mrf.mxu3 }
 0x397   :  { %v1758_v9 = vld [vmem:[%s2498_s1] sm:$0xff] }
 0x398   :  { %vm1592_vm14 = vcmp.gt.s32.totalorder %v1758_v9, 6  ;;  %vm1598_vm15 = vcmp.gt.s32.totalorder %v1758_v9, 7 }
 0x39b   :  { %v1719_v24 = vpop.eup %1718 }
 0x39c   :  { %v1721_v36 = vpop.eup %1720  ;;  %v978_v46 = vadd.f32 1.0, %v1719_v24  ;;  %v1593_v24 = vsel %vm1592_vm14, 1.0, %v2518_v4 }
 0x39d   :  { %v998_v55 = vadd.f32 1.0, %v1721_v36  ;;  %v1599_v36 = vsel %vm1598_vm15, 1.0, %v2518_v4 }
 0x39e   :  { %1722 = vrcp.f32 %v978_v46  ;;  %v990_v38 = vand.u32 2147483648, %v978_v46  ;;  %v988_v47 = vand.u32 2147483647, %v978_v46  ;;  %vm984_vm7 = vweird.f32 %v978_v46 }
 0x39f   :  { %1724 = vrcp.f32 %v998_v55  ;;  %v1010_v16 = vand.u32 2147483648, %v998_v55  ;;  %vm1004_vm11 = vweird.f32 %v998_v55  ;;  %v1008_v18 = vand.u32 2147483647, %v998_v55 }
 0x3a0   :  { %v991_v25 = vor.u32 1.1754944e-38, %v990_v38  ;;  %vm989_vm9 = vcmp.eq.f32.partialorder %v988_v47, 8.507059e+37 }
 0x3a1   :  { %v1011_v13 = vor.u32 1.1754944e-38, %v1010_v16  ;;  %vm1009_vm13 = vcmp.eq.f32.partialorder %v1008_v18, 8.507059e+37  ;;  %v2522_v16 = vld [vmem:[#allocation12_spill] sm:$0xff] }
 0x3a4   :  { %v1723_v52 = vpop.eup %1722 }
 0x3a5   :  { %v1725_v14 = vpop.eup %1724  ;;  %v980_v1 = vmul.f32 %v1723_v52, %v978_v46  ;;  %vm985_vm6 = vweird.f32 %v1723_v52 }
 0x3a6   :  { %v1000_v41 = vmul.f32 %v1725_v14, %v998_v55  ;;  %vm986_vm8 = vmor %vm984_vm7, %vm985_vm6  ;;  %vm1005_vm10 = vweird.f32 %v1725_v14 }
 0x3a7   :  { %v981_v40 = vsub.f32 1.0, %v980_v1  ;;  %vm1006_vm12 = vmor %vm1004_vm11, %vm1005_vm10 }
 0x3a8   :  { %v1001_v20 = vsub.f32 1.0, %v1000_v41 }
 0x3a9   :  { %v982_v26 = vmul.f32 %v1723_v52, %v981_v40 }
 0x3aa   :  { %v1002_v62 = vmul.f32 %v1725_v14, %v1001_v20 }
 0x3ab   :  { %v983_v0 = vadd.f32 %v1723_v52, %v982_v26 }
 0x3ac   :  { %v1003_v8 = vadd.f32 %v1725_v14, %v1002_v62 }
 0x3ad   :  { %v987_v21 = vsel %vm986_vm8, %v1723_v52, %v983_v0  ;;  %v1673_v52 = vpack.i.bf16 %v1599_v36, %v1593_v24 }
 0x3ae   :  { %v992_v50 = vsel %vm989_vm9, %v991_v25, %v987_v21  ;;  %v1007_v51 = vsel %vm1006_vm12, %v1725_v14, %v1003_v8 }
 0x3af   :  { %v1014_v33 = vmul.f32 %v992_v50, %v971_v60  ;;  %v1012_v61 = vsel %vm1009_vm13, %v1011_v13, %v1007_v51  ;;  %1674 = vperm.xlu1 %1667, %v1673_v52  }
 0x3b0   :  { %v1017_v48 = vsub.f32 1.0, %v1012_v61  ;;  %v1019_v59 = vmul.f32 %v1012_v61, %v2372_v31 }
 0x3b1   :  { %v1015_v29 = vadd.f32 %v1014_v33, %v2519_v49 }
 0x3b3   :  { %1726 = vtanh.f32 %v1015_v29 }
 0x3b9   :  { %v1727_v63 = vpop.eup %1726 }
 0x3ba   :  { %v1018_v6 = vmul.f32 %v1727_v63, %v1017_v48 }
 0x3bc   :  { %v2418_v37 = vadd.f32 %v1019_v59, %v1018_v6  ;;  %v1588_v6 = vld [vmem:[%s2497_s0 + $0x28] sm:$0xff]  ;;  %v1672_v59 = vunpack.i.h.bf16 %v2411_v53 }
 0x3be   :  { %v1028_v19 = vadd.f32 %v1582_v27, %v2418_v37  ;;  %v1041_v7 = vpack.c.bf16 %v2418_v37, %v2418_v37 }
 0x3c0   :  { %v1034_v11 = vmul.f32 %v1671_v2, %v1028_v19  ;;  %1050 = vmatmul.bf16.vlgmr.msra.gmra.mxu1 %v1041_v7  ;;  %1063 = vmatmul.bf16.vlgmr.msra.gmra.mxu2 %v1041_v7 }
 0x3c1   :  { %1076 = vmatmul.bf16.vlgmr.msrb.gmra.mxu3 %v1041_v7  ;;  %1282 = vmatpush.bf16.msra.mxu1 %v1952_v12 }
 0x3c2   :  { %1583 = vst [vmem:[%s2503_s6 + $0x20] sm:$0xff] %v1034_v11 }
 0x3c5   :  { %1283 = vmatpush.bf16.msra.mxu1 %v1974_v28  ;;  %v2521_v28 = vld [vmem:[#allocation14_spill] sm:$0xff] }
 0x3c9   :  { %1284 = vmatpush.bf16.msra.mxu1 %v2000_v43  ;;  %v275_v43 = vadd.f32 %v2521_v28, %v2179_v32 }
 0x3cd   :  { %1285 = vmatpush.bf16.msra.mxu1 %v2018_v56 }
 0x3d1   :  { %1286 = vmatpush.bf16.msra.mxu1 %v2038_v5 }
 0x3d5   :  { %1287 = vmatpush.bf16.msra.mxu1 %v2049_v22 }
 0x3d9   :  { %1288 = vmatpush.bf16.msra.mxu1 %v2063_v35 }
 0x3dd   :  { %1289 = vmatpush.bf16.msra.mxu1 %v2071_v42 }
 0x43d   :  { %v1051_v31 = vpop.f32.mrf.mxu1 }
 0x43e   :  { %v1052_v12 = vadd.f32 %v1051_v31, %v2170_v3  ;;  %v2523_v31 = vld [vmem:[#allocation15_spill] sm:$0xff] }
 0x43f   :  { %v278_v53 = vadd.f32 %v2523_v31, %v2179_v32 }
 0x440   :  { %v1081_v23 = vadd.f32 %v1052_v12, %v2520_v17 }
 0x442   :  { %v1584_v34 = vmul.f32 -1.442695, %v1081_v23  ;;  %v2524_v23 = vld [vmem:[#allocation9_spill] sm:$0xff] }
 0x443   :  { %v1064_v45 = vpop.f32.mrf.mxu2 }
 0x444   :  { %1728 = vpow2.f32 %v1584_v34  ;;  %v1065_v56 = vadd.f32 %v1064_v45, %v2183_v39  ;;  %v1077_v5 = vpop.f32.mrf.mxu3 }
 0x445   :  { %v1053_v58 = vpop.f32.mrf.mxu1  ;;  %v1078_v0 = vadd.f32 %v1077_v5, %v2201_v54 }
 0x446   :  { %v1101_v22 = vadd.f32 %v1065_v56, %v275_v43 }
 0x448   :  { %v1585_v15 = vmul.f32 -1.442695, %v1101_v22 }
 0x44a   :  { %v1729_v35 = vpop.eup %1728  ;;  %1730 = vpow2.f32 %v1585_v15 }
 0x44b   :  { %v1085_v42 = vadd.f32 1.0, %v1729_v35  ;;  %v1066_v30 = vpop.f32.mrf.mxu2 }
 0x44c   :  { %v1079_v44 = vpop.f32.mrf.mxu3 }
 0x44d   :  { %1732 = vrcp.f32 %v1085_v42  ;;  %v1097_v1 = vand.u32 2147483648, %v1085_v42  ;;  %v1095_v40 = vand.u32 2147483647, %v1085_v42  ;;  %vm1091_vm1 = vweird.f32 %v1085_v42 }
 0x44f   :  { %v1098_v47 = vor.u32 1.1754944e-38, %v1097_v1  ;;  %vm1096_vm3 = vcmp.eq.f32.partialorder %v1095_v40, 8.507059e+37 }
 0x450   :  { %v1731_v57 = vpop.eup %1730 }
 0x451   :  { %v1105_v10 = vadd.f32 1.0, %v1731_v57 }
 0x453   :  { %v1733_v46 = vpop.eup %1732  ;;  %1734 = vrcp.f32 %v1105_v10  ;;  %v1117_v21 = vand.u32 2147483648, %v1105_v10  ;;  %v1115_v8 = vand.u32 2147483647, %v1105_v10  ;;  %vm1111_vm5 = vweird.f32 %v1105_v10 }
 0x454   :  { %v1087_v55 = vmul.f32 %v1733_v46, %v1085_v42  ;;  %vm1092_vm0 = vweird.f32 %v1733_v46 }
 0x455   :  { %vm1093_vm2 = vmor %vm1091_vm1, %vm1092_vm0  ;;  %v1118_v49 = vor.u32 1.1754944e-38, %v1117_v21  ;;  %vm1116_vm7 = vcmp.eq.f32.partialorder %v1115_v8, 8.507059e+37 }
 0x456   :  { %v1088_v14 = vsub.f32 1.0, %v1087_v55 }
 0x458   :  { %v1089_v41 = vmul.f32 %v1733_v46, %v1088_v14 }
 0x459   :  { %v1735_v38 = vpop.eup %1734 }
 0x45a   :  { %v1107_v20 = vmul.f32 %v1735_v38, %v1105_v10  ;;  %v1090_v26 = vadd.f32 %v1733_v46, %v1089_v41  ;;  %vm1112_vm4 = vweird.f32 %v1735_v38 }
 0x45b   :  { %vm1113_vm6 = vmor %vm1111_vm5, %vm1112_vm4 }
 0x45c   :  { %v1108_v62 = vsub.f32 1.0, %v1107_v20  ;;  %v1094_v4 = vsel %vm1093_vm2, %v1733_v46, %v1090_v26 }
 0x45d   :  { %v1099_v25 = vsel %vm1096_vm3, %v1098_v47, %v1094_v4  ;;  %v2525_v4 = vld [vmem:[#allocation13_spill] sm:$0xff] }
 0x45e   :  { %v1109_v60 = vmul.f32 %v1735_v38, %v1108_v62  ;;  %v1121_v50 = vmul.f32 %v1099_v25, %v1078_v0 }
 0x460   :  { %v1110_v33 = vadd.f32 %v1735_v38, %v1109_v60  ;;  %v1122_v18 = vadd.f32 %v1121_v50, %v2522_v16  ;;  %v2466_v16 = vpop.permute.xlu1 %1674 }
 0x462   :  { %v1114_v29 = vsel %vm1113_vm6, %v1735_v38, %v1110_v33  ;;  %1736 = vtanh.f32 %v1122_v18 }
 0x463   :  { %v1119_v51 = vsel %vm1116_vm7, %v1118_v49, %v1114_v29  ;;  %v1594_v29 = vld [vmem:[%s2497_s0 + $0x30] sm:$0xff] }
 0x464   :  { %v1124_v13 = vsub.f32 1.0, %v1119_v51  ;;  %v1126_v63 = vmul.f32 %v1119_v51, %v2418_v37  ;;  %v1676_v51 = vunpack.i.l.bf16 %v2466_v16 }
 0x468   :  { %v1737_v61 = vpop.eup %1736 }
 0x469   :  { %v1125_v48 = vmul.f32 %v1737_v61, %v1124_v13 }
 0x46b   :  { %v2451_v27 = vadd.f32 %v1126_v63, %v1125_v48 }
 0x46d   :  { %v1135_v2 = vadd.f32 %v1588_v6, %v2451_v27  ;;  %v1148_v19 = vpack.c.bf16 %v2451_v27, %v2451_v27 }
 0x46f   :  { %v1141_v7 = vmul.f32 %v1672_v59, %v1135_v2  ;;  %1157 = vmatmul.bf16.vlgmr.msrb.gmra.mxu0 %v1148_v19  ;;  %1170 = vmatmul.bf16.vlgmr.msrb.gmra.mxu1 %v1148_v19  ;;  %v2526_v59 = vld [vmem:[#allocation16_spill] sm:$0xff] }
 0x470   :  { %1183 = vmatmul.bf16.vlgmr.msrb.gmra.mxu2 %v1148_v19 }
 0x471   :  { %1589 = vst [vmem:[%s2503_s6 + $0x28] sm:$0xff] %v1141_v7 }
 0x4ec   :  { %v1158_v37 = vpop.f32.mrf.mxu0  ;;  %v1171_v11 = vpop.f32.mrf.mxu1 }
 0x4ed   :  { %v1159_v12 = vadd.f32 %v1158_v37, %v2170_v3  ;;  %v1172_v17 = vadd.f32 %v1171_v11, %v2183_v39 }
 0x4ef   :  { %v1188_v34 = vadd.f32 %v1159_v12, %v2524_v23  ;;  %v1208_v45 = vadd.f32 %v1172_v17, %v278_v53  ;;  %v2527_v12 = vld [vmem:[#allocation10_spill] sm:$0xff] }
 0x4f1   :  { %v1590_v28 = vmul.f32 -1.442695, %v1188_v34  ;;  %v1591_v43 = vmul.f32 -1.442695, %v1208_v45 }
 0x4f3   :  { %1738 = vpow2.f32 %v1590_v28  ;;  %v1184_v56 = vpop.f32.mrf.mxu2 }
 0x4f4   :  { %1740 = vpow2.f32 %v1591_v43  ;;  %v1160_v5 = vpop.f32.mrf.mxu0  ;;  %v1173_v58 = vpop.f32.mrf.mxu1  ;;  %v1185_v40 = vadd.f32 %v1184_v56, %v2201_v54 }
 0x4f9   :  { %v1739_v22 = vpop.eup %1738 }
 0x4fa   :  { %v1741_v15 = vpop.eup %1740  ;;  %v1192_v35 = vadd.f32 1.0, %v1739_v22 }
 0x4fb   :  { %v1212_v42 = vadd.f32 1.0, %v1741_v15  ;;  %v1186_v30 = vpop.f32.mrf.mxu2 }
 0x4fc   :  { %1742 = vrcp.f32 %v1192_v35  ;;  %v1204_v46 = vand.u32 2147483648, %v1192_v35  ;;  %v1202_v52 = vand.u32 2147483647, %v1192_v35  ;;  %vm1198_vm9 = vweird.f32 %v1192_v35 }
 0x4fd   :  { %1744 = vrcp.f32 %v1212_v42  ;;  %v1224_v62 = vand.u32 2147483648, %v1212_v42  ;;  %vm1218_vm13 = vweird.f32 %v1212_v42  ;;  %v1222_v0 = vand.u32 2147483647, %v1212_v42 }
 0x4fe   :  { %v1205_v41 = vor.u32 1.1754944e-38, %v1204_v46  ;;  %vm1203_vm11 = vcmp.eq.f32.partialorder %v1202_v52, 8.507059e+37  ;;  %v2529_v52 = vld [vmem:[#allocation17_spill] sm:$0xff] }
 0x4ff   :  { %v1225_v21 = vor.u32 1.1754944e-38, %v1224_v62  ;;  %vm1223_vm15 = vcmp.eq.f32.partialorder %v1222_v0, 8.507059e+37 }
 0x502   :  { %v1743_v44 = vpop.eup %1742 }
 0x503   :  { %v1745_v57 = vpop.eup %1744  ;;  %v1194_v10 = vmul.f32 %v1743_v44, %v1192_v35  ;;  %vm1199_vm8 = vweird.f32 %v1743_v44 }
 0x504   :  { %v1214_v9 = vmul.f32 %v1745_v57, %v1212_v42  ;;  %vm1200_vm10 = vmor %vm1198_vm9, %vm1199_vm8  ;;  %vm1219_vm12 = vweird.f32 %v1745_v57 }
 0x505   :  { %v1195_v24 = vsub.f32 1.0, %v1194_v10  ;;  %vm1220_vm14 = vmor %vm1218_vm13, %vm1219_vm12 }
 0x506   :  { %v1215_v36 = vsub.f32 1.0, %v1214_v9 }
 0x507   :  { %v1196_v55 = vmul.f32 %v1743_v44, %v1195_v24 }
 0x508   :  { %v1216_v14 = vmul.f32 %v1745_v57, %v1215_v36 }
 0x509   :  { %v1197_v1 = vadd.f32 %v1743_v44, %v1196_v55  ;;  %v2528_v55 = vld [vmem:[#allocation7_spill] sm:$0xff] }
 0x50a   :  { %v1217_v26 = vadd.f32 %v1745_v57, %v1216_v14  ;;  %v309_v14 = vadd.f32 %v2529_v52, %v2528_v55 }
 0x50b   :  { %v1201_v38 = vsel %vm1200_vm10, %v1743_v44, %v1197_v1 }
 0x50c   :  { %v1206_v20 = vsel %vm1203_vm11, %v1205_v41, %v1201_v38  ;;  %v1221_v60 = vsel %vm1220_vm14, %v1745_v57, %v1217_v26 }
 0x50d   :  { %v1228_v47 = vmul.f32 %v1206_v20, %v1185_v40  ;;  %v1226_v50 = vsel %vm1223_vm15, %v1225_v21, %v1221_v60  ;;  %v1677_v21 = vunpack.i.h.bf16 %v2466_v16 }
 0x50e   :  { %v1231_v8 = vsub.f32 1.0, %v1226_v50  ;;  %v1233_v49 = vmul.f32 %v1226_v50, %v2451_v27  ;;  %v280_v27 = vadd.f32 %v2526_v59, %v2179_v32 }
 0x50f   :  { %v1229_v25 = vadd.f32 %v1228_v47, %v2525_v4 }
 0x511   :  { %1746 = vtanh.f32 %v1229_v25  ;;  %v1600_v25 = vld [vmem:[%s2497_s0 + $0x38] sm:$0xff] }
 0x517   :  { %v1747_v33 = vpop.eup %1746 }
 0x518   :  { %v1232_v18 = vmul.f32 %v1747_v33, %v1231_v8 }
 0x51a   :  { %v2473_v13 = vadd.f32 %v1233_v49, %v1232_v18 }
 0x51c   :  { %v1242_v61 = vadd.f32 %v1594_v29, %v2473_v13  ;;  %v1255_v48 = vpack.c.bf16 %v2473_v13, %v2473_v13 }
 0x51e   :  { %v1248_v63 = vmul.f32 %v1676_v51, %v1242_v61  ;;  %1264 = vmatmul.bf16.vlgmr.msra.gmra.mxu3 %v1255_v48  ;;  %1277 = vmatmul.bf16.vlgmr.msra.gmra.mxu0 %v1255_v48 }
 0x51f   :  { %1290 = vmatmul.bf16.vlgmr.msra.gmra.mxu1 %v1255_v48 }
 0x520   :  { %1595 = vst [vmem:[%s2503_s6 + $0x30] sm:$0xff] %v1248_v63 }
 0x59b   :  { %v1278_v6 = vpop.f32.mrf.mxu0 }
 0x59c   :  { %v1279_v2 = vadd.f32 %v1278_v6, %v2183_v39  ;;  %v1291_v19 = vpop.f32.mrf.mxu1 }
 0x59d   :  { %v1292_v9 = vadd.f32 %v1291_v19, %v2201_v54 }
 0x59e   :  { %v1315_v7 = vadd.f32 %v1279_v2, %v280_v27 }
 0x5a0   :  { %v1597_v37 = vmul.f32 -1.442695, %v1315_v7 }
 0x5a1   :  { %v1265_v11 = vpop.f32.mrf.mxu3 }
 0x5a2   :  { %1748 = vpow2.f32 %v1597_v37  ;;  %v1266_v31 = vadd.f32 %v1265_v11, %v2170_v3 }
 0x5a3   :  { %v1280_v53 = vpop.f32.mrf.mxu0 }
 0x5a4   :  { %v1295_v17 = vadd.f32 %v1266_v31, %v2527_v12  ;;  %v1293_v23 = vpop.f32.mrf.mxu1 }
 0x5a6   :  { %v1596_v34 = vmul.f32 -1.442695, %v1295_v17 }
 0x5a8   :  { %v1749_v45 = vpop.eup %1748  ;;  %1750 = vpow2.f32 %v1596_v34 }
 0x5a9   :  { %v1319_v28 = vadd.f32 1.0, %v1749_v45  ;;  %v1267_v43 = vpop.f32.mrf.mxu3 }
 0x5ab   :  { %1752 = vrcp.f32 %v1319_v28  ;;  %v1331_v1 = vand.u32 2147483648, %v1319_v28  ;;  %vm1325_vm5 = vweird.f32 %v1319_v28  ;;  %v1329_v40 = vand.u32 2147483647, %v1319_v28 }
 0x5ad   :  { %v1332_v26 = vor.u32 1.1754944e-38, %v1331_v1  ;;  %vm1330_vm7 = vcmp.eq.f32.partialorder %v1329_v40, 8.507059e+37 }
 0x5ae   :  { %v1751_v32 = vpop.eup %1750 }
 0x5af   :  { %v1299_v56 = vadd.f32 1.0, %v1751_v32 }
 0x5b1   :  { %1754 = vrcp.f32 %v1299_v56  ;;  %v1753_v39 = vpop.eup %1752  ;;  %v1311_v3 = vand.u32 2147483648, %v1299_v56  ;;  %v1309_v30 = vand.u32 2147483647, %v1299_v56  ;;  %vm1305_vm1 = vweird.f32 %v1299_v56 }
 0x5b2   :  { %v1321_v5 = vmul.f32 %v1753_v39, %v1319_v28  ;;  %vm1326_vm4 = vweird.f32 %v1753_v39 }
 0x5b3   :  { %v1312_v10 = vor.u32 1.1754944e-38, %v1311_v3  ;;  %vm1310_vm3 = vcmp.eq.f32.partialorder %v1309_v30, 8.507059e+37  ;;  %vm1327_vm6 = vmor %vm1325_vm5, %vm1326_vm4 }
 0x5b4   :  { %v1322_v15 = vsub.f32 1.0, %v1321_v5 }
 0x5b6   :  { %v1323_v44 = vmul.f32 %v1753_v39, %v1322_v15 }
 0x5b7   :  { %v1755_v58 = vpop.eup %1754 }
 0x5b8   :  { %v1301_v22 = vmul.f32 %v1755_v58, %v1299_v56  ;;  %vm1306_vm0 = vweird.f32 %v1755_v58  ;;  %v1324_v36 = vadd.f32 %v1753_v39, %v1323_v44 }
 0x5b9   :  { %vm1307_vm2 = vmor %vm1305_vm1, %vm1306_vm0 }
 0x5ba   :  { %v1302_v35 = vsub.f32 1.0, %v1301_v22  ;;  %v1328_v20 = vsel %vm1327_vm6, %v1753_v39, %v1324_v36 }
 0x5bb   :  { %v1333_v47 = vsel %vm1330_vm7, %v1332_v26, %v1328_v20 }
 0x5bc   :  { %v1303_v42 = vmul.f32 %v1755_v58, %v1302_v35  ;;  %v1338_v54 = vsub.f32 1.0, %v1333_v47  ;;  %v1340_v0 = vmul.f32 %v1333_v47, %v2473_v13 }
 0x5be   :  { %v1304_v57 = vadd.f32 %v1755_v58, %v1303_v42 }
 0x5c0   :  { %v1308_v24 = vsel %vm1307_vm2, %v1755_v58, %v1304_v57 }
 0x5c1   :  { %v1313_v46 = vsel %vm1310_vm3, %v1312_v10, %v1308_v24 }
 0x5c2   :  { %v1335_v41 = vmul.f32 %v1313_v46, %v1292_v9 }
 0x5c4   :  { %v1336_v38 = vadd.f32 %v1335_v41, %v309_v14 }
 0x5c6   :  { %1756 = vtanh.f32 %v1336_v38 }
 0x5cc   :  { %v1757_v62 = vpop.eup %1756 }
 0x5cd   :  { %v1339_v4 = vmul.f32 %v1757_v62, %v1338_v54 }
 0x5cf   :  { %v1341_v60 = vadd.f32 %v1340_v0, %v1339_v4 }
 0x5d1   :  { %v1349_v50 = vadd.f32 %v1600_v25, %v1341_v60 }
 0x5d3   :  { %v1355_v8 = vmul.f32 %v1677_v21, %v1349_v50 }
 0x5d5   :  { %1601 = vst [vmem:[%s2503_s6 + $0x38] sm:$0xff] %v1355_v8 }
 0x5d6   :  { %1363 = vsyncpa [#allocation5], 1 }

// kernel: apc_forward.11
= control target key start
LH: loop header
LB: loop body
LE: loop exit
PB: predicated region body
PF: predicated region fallthrough
CT: control target
= control target key end

     0   :  { %s295_s1 = inlined_call_operand.vmem [shape: bf16[128,128], index: 1, kind: input, shape index: {}]   ;;  %s296_s2 = inlined_call_operand.vmem [shape: f32[1,128], index: 2, kind: input, shape index: {}]   ;;  %s297_s0 = inlined_call_operand.vmem [shape: f32[64,128], index: 0, kind: input, shape index: {}]   ;;  %s298_s3 = inlined_call_operand.vmem [shape: f32[64,128], index: 3, kind: output, shape index: {}]  }
   0x1   :  { %v174_v0 = vld [vmem:[%s295_s1 + $0x38] sm:$0xff]  ;;  %v173_v1 = vld [vmem:[%s295_s1 + $0x30] sm:$0xff]  ;;  %v172_v2 = vld [vmem:[%s295_s1 + $0x28] sm:$0xff] }
   0x2   :  { %94 = vmatpush.bf16.msra.mxu0 %v174_v0  ;;  %175 = vmatpush.bf16.msra.mxu1 %v174_v0  ;;  %v171_v3 = vld [vmem:[%s295_s1 + $0x20] sm:$0xff]  ;;  %v170_v4 = vld [vmem:[%s295_s1 + $0x18] sm:$0xff]  ;;  %v169_v5 = vld [vmem:[%s295_s1 + $0x10] sm:$0xff] }
   0x3   :  { %176 = vmatpush.bf16.msra.mxu2 %v174_v0  ;;  %177 = vmatpush.bf16.msra.mxu3 %v174_v0  ;;  %v168_v6 = vld [vmem:[%s295_s1 + $0x8] sm:$0xff]  ;;  %v167_v7 = vld [vmem:[%s295_s1] sm:$0xff]  ;;  %v16_v10 = vld [vmem:[%s297_s0 + $0x10] sm:$0xff] }
   0x4   :  { %v14_v8 = vld [vmem:[%s297_s0] sm:$0xff]  ;;  %v15_v9 = vld [vmem:[%s297_s0 + $0x8] sm:$0xff]  ;;  %v17_v11 = vld [vmem:[%s297_s0 + $0x18] sm:$0xff] }
   0x5   :  { %v18_v12 = vld [vmem:[%s297_s0 + $0x20] sm:$0xff]  ;;  %v19_v13 = vld [vmem:[%s297_s0 + $0x28] sm:$0xff]  ;;  %v20_v14 = vld [vmem:[%s297_s0 + $0x30] sm:$0xff]  ;;  %v22_v16 = vpack.c.bf16 %v15_v9, %v14_v8  ;;  %v23_v17 = vpack.c.bf16 %v17_v11, %v16_v10 }
   0x6   :  { %95 = vmatpush.bf16.msra.mxu0 %v173_v1  ;;  %178 = vmatpush.bf16.msra.mxu1 %v173_v1  ;;  %v21_v15 = vld [vmem:[%s297_s0 + $0x38] sm:$0xff]  ;;  %v24_v18 = vpack.c.bf16 %v19_v13, %v18_v12  ;;  %v199_v20 = vld [vmem:[%s296_s2] ss:$0 sm:$0xff] }
   0x7   :  { %179 = vmatpush.bf16.msra.mxu2 %v173_v1  ;;  %180 = vmatpush.bf16.msra.mxu3 %v173_v1  ;;  %v25_v19 = vpack.c.bf16 %v21_v15, %v20_v14 }
   0xa   :  { %96 = vmatpush.bf16.msra.mxu0 %v172_v2  ;;  %181 = vmatpush.bf16.msra.mxu1 %v172_v2 }
   0xb   :  { %182 = vmatpush.bf16.msra.mxu2 %v172_v2  ;;  %183 = vmatpush.bf16.msra.mxu3 %v172_v2 }
   0xe   :  { %97 = vmatpush.bf16.msra.mxu0 %v171_v3  ;;  %184 = vmatpush.bf16.msra.mxu1 %v171_v3 }
   0xf   :  { %185 = vmatpush.bf16.msra.mxu2 %v171_v3  ;;  %186 = vmatpush.bf16.msra.mxu3 %v171_v3 }
  0x12   :  { %98 = vmatpush.bf16.msra.mxu0 %v170_v4  ;;  %187 = vmatpush.bf16.msra.mxu1 %v170_v4 }
  0x13   :  { %188 = vmatpush.bf16.msra.mxu2 %v170_v4  ;;  %189 = vmatpush.bf16.msra.mxu3 %v170_v4 }
  0x16   :  { %99 = vmatpush.bf16.msra.mxu0 %v169_v5  ;;  %190 = vmatpush.bf16.msra.mxu1 %v169_v5 }
  0x17   :  { %191 = vmatpush.bf16.msra.mxu2 %v169_v5  ;;  %192 = vmatpush.bf16.msra.mxu3 %v169_v5 }
  0x1a   :  { %100 = vmatpush.bf16.msra.mxu0 %v168_v6  ;;  %193 = vmatpush.bf16.msra.mxu1 %v168_v6 }
  0x1b   :  { %194 = vmatpush.bf16.msra.mxu2 %v168_v6  ;;  %195 = vmatpush.bf16.msra.mxu3 %v168_v6 }
  0x1e   :  { %101 = vmatpush.bf16.msra.mxu0 %v167_v7  ;;  %196 = vmatpush.bf16.msra.mxu1 %v167_v7 }
  0x1f   :  { %197 = vmatpush.bf16.msra.mxu2 %v167_v7  ;;  %198 = vmatpush.bf16.msra.mxu3 %v167_v7 }
  0x21   :  { %102 = vmatmul.bf16.vlgmr.msra.gmra.mxu0 %v22_v16  ;;  %107 = vmatmul.bf16.vlgmr.msra.gmra.mxu1 %v23_v17 }
  0x22   :  { %112 = vmatmul.bf16.vlgmr.msra.gmra.mxu2 %v24_v18  ;;  %117 = vmatmul.bf16.vlgmr.msra.gmra.mxu3 %v25_v19 }
  0x9e   :  { %v103_v21 = vpop.f32.mrf.mxu0  ;;  %v108_v22 = vpop.f32.mrf.mxu1 }
  0x9f   :  { %v104_v23 = vadd.f32 %v199_v20, %v103_v21  ;;  %v109_v24 = vadd.f32 %v199_v20, %v108_v22 }
  0xa1   :  { %123 = vst [vmem:[%s298_s3] sm:$0xff] %v104_v23 }
  0xa2   :  { %125 = vst [vmem:[%s298_s3 + $0x10] sm:$0xff] %v109_v24 }
  0xa5   :  { %v113_v25 = vpop.f32.mrf.mxu2  ;;  %v118_v26 = vpop.f32.mrf.mxu3 }
  0xa6   :  { %v114_v27 = vadd.f32 %v199_v20, %v113_v25  ;;  %v119_v28 = vadd.f32 %v199_v20, %v118_v26  ;;  %v105_v29 = vpop.f32.mrf.mxu0  ;;  %v110_v30 = vpop.f32.mrf.mxu1 }
  0xa7   :  { %v106_v31 = vadd.f32 %v199_v20, %v105_v29  ;;  %v111_v32 = vadd.f32 %v199_v20, %v110_v30 }
  0xa8   :  { %127 = vst [vmem:[%s298_s3 + $0x20] sm:$0xff] %v114_v27 }
  0xa9   :  { %129 = vst [vmem:[%s298_s3 + $0x30] sm:$0xff] %v119_v28 }
  0xaa   :  { %124 = vst [vmem:[%s298_s3 + $0x8] sm:$0xff] %v106_v31 }
  0xab   :  { %126 = vst [vmem:[%s298_s3 + $0x18] sm:$0xff] %v111_v32 }
  0xad   :  { %v115_v33 = vpop.f32.mrf.mxu2  ;;  %v120_v34 = vpop.f32.mrf.mxu3 }
  0xae   :  { %v116_v35 = vadd.f32 %v199_v20, %v115_v33  ;;  %v121_v36 = vadd.f32 %v199_v20, %v120_v34 }
  0xb0   :  { %128 = vst [vmem:[%s298_s3 + $0x28] sm:$0xff] %v116_v35 }
  0xb1   :  { %130 = vst [vmem:[%s298_s3 + $0x38] sm:$0xff] %v121_v36 }

// kernel: apc_forward.9
= control target key start
LH: loop header
LB: loop body
LE: loop exit
PB: predicated region body
PF: predicated region fallthrough
CT: control target
= control target key end

     0   :  { %11 = vsyncpa [#allocation5], 0  ;;  %s2401_s0 = inlined_call_operand.vmem [shape: f32[8,8,128], index: 0, kind: input, shape index: {}]   ;;  %s2402_s1 = inlined_call_operand.vmem [shape: s32[8,1], index: 1, kind: input, shape index: {}]   ;;  %s2403_s2 = inlined_call_operand.hbm [shape: bf16[128,384], index: 2, kind: input, shape index: {}]   ;;  %s2404_s3 = inlined_call_operand.vmem [shape: f32[1,384], index: 3, kind: input, shape index: {}]   ;;  %s2405_s4 = inlined_call_operand.hbm [shape: bf16[128,384], index: 4, kind: input, shape index: {}]   ;;  %s2406_s5 = inlined_call_operand.vmem [shape: f32[1,384], index: 5, kind: input, shape index: {}]   ;;  %s2407_s6 = inlined_call_operand.vmem [shape: f32[8,8,128], index: 6, kind: output, shape index: {}]  }
   0x1   :  { %s21_s23 = sshll.u32 %s2403_s2, 4  ;;  %s22_s23 = int_to_ptr.hbm [resolvable:$true] %s21_s23 }
   0x2   :  { %12 = vsyncpa [#allocation7], 0  ;;  %s1829_s24 = smov [#allocation4]   ;;  %s36_s28 = sshll.u32 %s2405_s4, 4  ;;  %s37_s28 = int_to_ptr.hbm [resolvable:$true] %s36_s28 }
   0x3   :  { %s23_s25 = sshll.u32 %s1829_s24, 4  ;;  %s1830_s29 = smov 192   ;;  %s24_s25 = int_to_ptr.vmem [resolvable:$true] %s23_s25 }
   0x4   :  { %s1831_s30 = smov 12   ;;  %s1832_s7 = smov [#allocation6]  }
   0x5   :  { %29 = dma.hbm_to_vmem [thread:$0]  %s22_s23, 3072, %s24_s25, [#allocation5], %s1830_s29, %s1830_s29, %s1831_s30  }
   0x6   :  { %s38_s8 = sshll.u32 %s1832_s7, 4  ;;  %s39_s8 = int_to_ptr.vmem [resolvable:$true] %s38_s8 }
   0x7   :  { %44 = dma.hbm_to_vmem [thread:$0]  %s37_s28, 3072, %s39_s8, [#allocation7], %s1830_s29, %s1830_s29, %s1831_s30  }
   0x8   :  { %1825 = dma.done.wait [#allocation5], 3072  }
   0x9   :  { %1826 = vsyncadd [#allocation5], 4294964224 }
   0xa   :  { %1827 = dma.done.wait [#allocation7], 3072  }
   0xb   :  { %1828 = vsyncadd [#allocation7], 4294964224  ;;  %v1467_v0 = vld [vmem:[#allocation4 + $0xa8] sm:$0xf]  ;;  %v1641_v1 = vld [vmem:[#allocation4 + $0xb0] sm:$0xf0] }
   0xc   :  { %v1563_v2 = vld [vmem:[#allocation6 + $0xa8] sm:$0xf]  ;;  %v1468_v3 = vor.u32 %v1641_v1, %v1467_v0  ;;  %v1665_v4 = vld [vmem:[#allocation6 + $0xb0] sm:$0xf0]  ;;  %v1455_v5 = vld [vmem:[#allocation4 + $0x90] sm:$0xf] }
   0xd   :  { %v1638_v6 = vld [vmem:[#allocation4 + $0x98] sm:$0xf0]  ;;  %v1877_v7 = vor.u32 %v1665_v4, %v1563_v2  ;;  %v1551_v8 = vld [vmem:[#allocation6 + $0x90] sm:$0xf]  ;;  %v1443_v12 = vld [vmem:[#allocation4 + $0x78] sm:$0xf] }
   0xe   :  { %v1662_v9 = vld [vmem:[#allocation6 + $0x98] sm:$0xf0]  ;;  %240 = vmatpush.bf16.msra.mxu0 %v1468_v3  ;;  %v1456_v10 = vor.u32 %v1638_v6, %v1455_v5  ;;  %v1635_v13 = vld [vmem:[#allocation4 + $0x80] sm:$0xf0]  ;;  %v1539_v14 = vld [vmem:[#allocation6 + $0x78] sm:$0xf] }
   0xf   :  { %526 = vmatpush.bf16.msra.mxu3 %v1877_v7  ;;  %v1880_v11 = vor.u32 %v1662_v9, %v1551_v8  ;;  %v1659_v15 = vld [vmem:[#allocation6 + $0x80] sm:$0xf0]  ;;  %v1444_v16 = vor.u32 %v1635_v13, %v1443_v12  ;;  %v1431_v18 = vld [vmem:[#allocation4 + $0x60] sm:$0xf]  ;;  %v1632_v19 = vld [vmem:[#allocation4 + $0x68] sm:$0xf0] }
  0x10   :  { %v1883_v17 = vor.u32 %v1659_v15, %v1539_v14  ;;  %v1527_v20 = vld [vmem:[#allocation6 + $0x60] sm:$0xf]  ;;  %v1656_v21 = vld [vmem:[#allocation6 + $0x68] sm:$0xf0]  ;;  %v1432_v22 = vor.u32 %v1632_v19, %v1431_v18  ;;  %v1419_v24 = vld [vmem:[#allocation4 + $0x48] sm:$0xf] }
  0x11   :  { %v1886_v23 = vor.u32 %v1656_v21, %v1527_v20  ;;  %v1629_v25 = vld [vmem:[#allocation4 + $0x50] sm:$0xf0]  ;;  %v1515_v26 = vld [vmem:[#allocation6 + $0x48] sm:$0xf]  ;;  %v1640_v28 = vld [vmem:[#allocation4 + $0xac] sm:$0xf] }
  0x12   :  { %241 = vmatpush.bf16.msra.mxu0 %v1456_v10  ;;  %v1653_v27 = vld [vmem:[#allocation6 + $0x50] sm:$0xf0]  ;;  %v1469_v29 = vld [vmem:[#allocation4 + $0xb4] sm:$0xf0]  ;;  %v1420_v32 = vor.u32 %v1629_v25, %v1419_v24  ;;  %v1457_v33 = vld [vmem:[#allocation4 + $0x9c] sm:$0xf0] }
  0x13   :  { %527 = vmatpush.bf16.msra.mxu3 %v1880_v11  ;;  %v1472_v30 = vor.u32 %v1640_v28, %v1469_v29  ;;  %v1637_v31 = vld [vmem:[#allocation4 + $0x94] sm:$0xf]  ;;  %v1889_v34 = vor.u32 %v1653_v27, %v1515_v26  ;;  %v1407_v35 = vld [vmem:[#allocation4 + $0x30] sm:$0xf]  ;;  %v1626_v36 = vld [vmem:[#allocation4 + $0x38] sm:$0xf0] }
  0x14   :  { %v1503_v37 = vld [vmem:[#allocation6 + $0x30] sm:$0xf]  ;;  %v1460_v38 = vor.u32 %v1637_v31, %v1457_v33  ;;  %v1650_v39 = vld [vmem:[#allocation6 + $0x38] sm:$0xf0]  ;;  %v1445_v41 = vld [vmem:[#allocation4 + $0x84] sm:$0xf0]  ;;  %v1408_v42 = vor.u32 %v1626_v36, %v1407_v35 }
  0x15   :  { %269 = vmatpush.bf16.msra.mxu1 %v1472_v30  ;;  %v1634_v40 = vld [vmem:[#allocation4 + $0x7c] sm:$0xf]  ;;  %v1395_v43 = vld [vmem:[#allocation4 + $0x18] sm:$0xf]  ;;  %v1623_v44 = vld [vmem:[#allocation4 + $0x20] sm:$0xf0]  ;;  %v1892_v45 = vor.u32 %v1650_v39, %v1503_v37 }
  0x16   :  { %242 = vmatpush.bf16.msra.mxu0 %v1444_v16  ;;  %v1491_v46 = vld [vmem:[#allocation6 + $0x18] sm:$0xf]  ;;  %v1647_v47 = vld [vmem:[#allocation6 + $0x20] sm:$0xf0]  ;;  %v1448_v48 = vor.u32 %v1634_v40, %v1445_v41  ;;  %v1433_v50 = vld [vmem:[#allocation4 + $0x6c] sm:$0xf0]  ;;  %v1396_v54 = vor.u32 %v1623_v44, %v1395_v43 }
  0x17   :  { %528 = vmatpush.bf16.msra.mxu3 %v1883_v17  ;;  %v1631_v49 = vld [vmem:[#allocation4 + $0x64] sm:$0xf]  ;;  %v1475_v51 = vld [vmem:[#allocation4 + $0xb0] sm:$0xf]  ;;  %v1642_v52 = vld [vmem:[#allocation4 + $0xb8] sm:$0xf0]  ;;  %v1895_v58 = vor.u32 %v1647_v47, %v1491_v46 }
  0x18   :  { %v1476_v53 = vor.u32 %v1642_v52, %v1475_v51  ;;  %v1383_v55 = vld [vmem:[#allocation4] sm:$0xf]  ;;  %v1620_v56 = vld [vmem:[#allocation4 + $0x8] sm:$0xf0]  ;;  %v1565_v61 = vld [vmem:[#allocation6 + $0xb4] sm:$0xf0]  ;;  %v1436_v62 = vor.u32 %v1631_v49, %v1433_v50 }
  0x19   :  { %270 = vmatpush.bf16.msra.mxu1 %v1460_v38  ;;  %v1479_v57 = vld [vmem:[#allocation6] sm:$0xf]  ;;  %v1644_v59 = vld [vmem:[#allocation6 + $0x8] sm:$0xf0]  ;;  %v1571_v63 = vld [vmem:[#allocation6 + $0xb0] sm:$0xf]  ;;  %v1384_v5 = vor.u32 %v1620_v56, %v1383_v55 }
  0x1a   :  { %243 = vmatpush.bf16.msra.mxu0 %v1432_v22  ;;  %v1664_v60 = vld [vmem:[#allocation6 + $0xac] sm:$0xf]  ;;  %v1666_v0 = vld [vmem:[#allocation6 + $0xb8] sm:$0xf0]  ;;  %298 = vmatpush.bf16.msra.mxu2 %v1476_v53  ;;  %v1463_v1 = vld [vmem:[#allocation4 + $0x98] sm:$0xf]  ;;  %v1908_v10 = vor.u32 %v1644_v59, %v1479_v57 }
  0x1b   :  { %529 = vmatpush.bf16.msra.mxu3 %v1886_v23  ;;  %v1628_v2 = vld [vmem:[#allocation4 + $0x4c] sm:$0xf]  ;;  %v1421_v3 = vld [vmem:[#allocation4 + $0x54] sm:$0xf0]  ;;  %v1639_v4 = vld [vmem:[#allocation4 + $0xa0] sm:$0xf0]  ;;  %v1910_v12 = vor.u32 %v1666_v0, %v1571_v63  ;;  %v1912_v15 = vor.u32 %v1664_v60, %v1565_v61 }
  0x1c   :  { %v1900_v6 = vld [vmem:[%s2401_s0] sm:$0xff]  ;;  %v1905_v8 = vld [vmem:[%s2401_s0 + $0x8] sm:$0xff]  ;;  %v1464_v9 = vor.u32 %v1639_v4, %v1463_v1  ;;  %v1661_v13 = vld [vmem:[#allocation6 + $0x94] sm:$0xf]  ;;  %v1424_v18 = vor.u32 %v1628_v2, %v1421_v3  ;;  %v1833_v40 = vmov 0.0|0.0  }
  0x1d   :  { %271 = vmatpush.bf16.msra.mxu1 %v1448_v48  ;;  %v1559_v14 = vld [vmem:[#allocation6 + $0x98] sm:$0xf]  ;;  %v1663_v16 = vld [vmem:[#allocation6 + $0xa0] sm:$0xf0]  ;;  %v1451_v19 = vld [vmem:[#allocation4 + $0x80] sm:$0xf]  ;;  %v1916_v21 = vpack.c.bf16 %v1905_v8, %v1900_v6 }
  0x1e   :  { %244 = vmatpush.bf16.msra.mxu0 %v1420_v32  ;;  %299 = vmatpush.bf16.msra.mxu2 %v1464_v9  ;;  %v1636_v20 = vld [vmem:[#allocation4 + $0x88] sm:$0xf0]  ;;  %v1553_v22 = vld [vmem:[#allocation6 + $0x9c] sm:$0xf0]  ;;  %v1625_v24 = vld [vmem:[#allocation4 + $0x34] sm:$0xf]  ;;  %v1920_v28 = vor.u32 %v1663_v16, %v1559_v14 }
  0x1f   :  { %530 = vmatpush.bf16.msra.mxu3 %v1889_v34  ;;  %v1409_v25 = vld [vmem:[#allocation4 + $0x3c] sm:$0xf0]  ;;  %v1452_v26 = vor.u32 %v1636_v20, %v1451_v19  ;;  %v1658_v27 = vld [vmem:[#allocation6 + $0x7c] sm:$0xf]  ;;  %v1923_v30 = vor.u32 %v1661_v13, %v1553_v22  ;;  %v1660_v31 = vld [vmem:[#allocation6 + $0x88] sm:$0xf0] }
  0x20   :  { %v1547_v29 = vld [vmem:[#allocation6 + $0x80] sm:$0xf]  ;;  %v1412_v32 = vor.u32 %v1625_v24, %v1409_v25  ;;  %v1439_v33 = vld [vmem:[#allocation4 + $0x68] sm:$0xf]  ;;  %v1633_v35 = vld [vmem:[#allocation4 + $0x70] sm:$0xf0] }
  0x21   :  { %272 = vmatpush.bf16.msra.mxu1 %v1436_v62  ;;  %v1541_v36 = vld [vmem:[#allocation6 + $0x84] sm:$0xf0]  ;;  %v1622_v37 = vld [vmem:[#allocation4 + $0x1c] sm:$0xf]  ;;  %v1440_v39 = vor.u32 %v1633_v35, %v1439_v33  ;;  %v1427_v41 = vld [vmem:[#allocation4 + $0x50] sm:$0xf]  ;;  %v1928_v43 = vor.u32 %v1660_v31, %v1547_v29 }
  0x22   :  { %245 = vmatpush.bf16.msra.mxu0 %v1408_v42  ;;  %v1397_v38 = vld [vmem:[#allocation4 + $0x24] sm:$0xf0]  ;;  %300 = vmatpush.bf16.msra.mxu2 %v1452_v26  ;;  %v1630_v42 = vld [vmem:[#allocation4 + $0x58] sm:$0xf0]  ;;  %v1931_v44 = vor.u32 %v1658_v27, %v1541_v36  ;;  %v1655_v46 = vld [vmem:[#allocation6 + $0x64] sm:$0xf] }
  0x23   :  { %531 = vmatpush.bf16.msra.mxu3 %v1892_v45  ;;  %v1535_v47 = vld [vmem:[#allocation6 + $0x68] sm:$0xf]  ;;  %v1657_v48 = vld [vmem:[#allocation6 + $0x70] sm:$0xf0]  ;;  %v1400_v49 = vor.u32 %v1622_v37, %v1397_v38  ;;  %v1529_v50 = vld [vmem:[#allocation6 + $0x6c] sm:$0xf0]  ;;  %v1428_v53 = vor.u32 %v1630_v42, %v1427_v41 }
  0x24   :  { %v1619_v51 = vld [vmem:[#allocation4 + $0x4] sm:$0xf]  ;;  %v1385_v52 = vld [vmem:[#allocation4 + $0xc] sm:$0xf0]  ;;  %v1934_v56 = vor.u32 %v1657_v48, %v1535_v47  ;;  %v1937_v57 = vor.u32 %v1655_v46, %v1529_v50  ;;  %v1654_v61 = vld [vmem:[#allocation6 + $0x58] sm:$0xf0] }
  0x25   :  { %273 = vmatpush.bf16.msra.mxu1 %v1424_v18  ;;  %v1627_v55 = vld [vmem:[#allocation4 + $0x40] sm:$0xf0]  ;;  %v1388_v59 = vor.u32 %v1619_v51, %v1385_v52  ;;  %v1523_v60 = vld [vmem:[#allocation6 + $0x50] sm:$0xf]  ;;  %v1652_v62 = vld [vmem:[#allocation6 + $0x4c] sm:$0xf] }
  0x26   :  { %246 = vmatpush.bf16.msra.mxu0 %v1396_v54  ;;  %301 = vmatpush.bf16.msra.mxu2 %v1440_v39  ;;  %v1415_v54 = vld [vmem:[#allocation4 + $0x38] sm:$0xf]  ;;  %v1942_v0 = vld [vmem:[%s2401_s0 + $0x10] sm:$0xff]  ;;  %v1403_v3 = vld [vmem:[#allocation4 + $0x20] sm:$0xf]  ;;  %v1834_v50 = vmov 0  }
  0x27   :  { %532 = vmatpush.bf16.msra.mxu3 %v1895_v58  ;;  %v1517_v63 = vld [vmem:[#allocation6 + $0x54] sm:$0xf0]  ;;  %v1416_v1 = vor.u32 %v1627_v55, %v1415_v54  ;;  %v1624_v4 = vld [vmem:[#allocation4 + $0x28] sm:$0xf0]  ;;  %v1651_v14 = vld [vmem:[#allocation6 + $0x40] sm:$0xf0]  ;;  %1674 = vset.pattern.permute.xlu0 %v1834_v50 }
  0x28   :  { %v63_v2 = vld [vmem:[%s2401_s0 + $0x18] sm:$0xff]  ;;  %v1951_v9 = vor.u32 %v1652_v62, %v1517_v63  ;;  %v1649_v18 = vld [vmem:[#allocation6 + $0x34] sm:$0xf]  ;;  %v1505_v19 = vld [vmem:[#allocation6 + $0x3c] sm:$0xf0]  ;;  %v1404_v20 = vor.u32 %v1624_v4, %v1403_v3  ;;  %v2408_v51 = vmov 0.0   ;;  %1685 = vset.pattern.permute.xlu1 %v1834_v50 }
  0x29   :  { %274 = vmatpush.bf16.msra.mxu1 %v1412_v32  ;;  %v1511_v13 = vld [vmem:[#allocation6 + $0x38] sm:$0xf]  ;;  %v1954_v16 = vpack.c.bf16 %v63_v2, %v1942_v0  ;;  %v1962_v24 = vor.u32 %v1649_v18, %v1505_v19  ;;  %v1646_v25 = vld [vmem:[#allocation6 + $0x1c] sm:$0xf]  ;;  %v1391_v26 = vld [vmem:[#allocation4 + $0x8] sm:$0xf] }
  0x2a   :  { %247 = vmatpush.bf16.msra.mxu0 %v1384_v5  ;;  %302 = vmatpush.bf16.msra.mxu2 %v1428_v53  ;;  %v1948_v5 = vor.u32 %v1654_v61, %v1523_v60  ;;  %v1959_v22 = vor.u32 %v1651_v14, %v1511_v13  ;;  %v1621_v27 = vld [vmem:[#allocation4 + $0x10] sm:$0xf0]  ;;  %v1493_v29 = vld [vmem:[#allocation6 + $0x24] sm:$0xf0]  ;;  %v1499_v31 = vld [vmem:[#allocation6 + $0x20] sm:$0xf] }
  0x2b   :  { %533 = vmatpush.bf16.msra.mxu3 %v1908_v10  ;;  %v1648_v32 = vld [vmem:[#allocation6 + $0x28] sm:$0xf0]  ;;  %v1392_v33 = vor.u32 %v1621_v27, %v1391_v26  ;;  %v1970_v36 = vor.u32 %v1646_v25, %v1493_v29  ;;  %v1487_v37 = vld [vmem:[#allocation6 + $0x8] sm:$0xf]  ;;  %v1645_v38 = vld [vmem:[#allocation6 + $0x10] sm:$0xf0] }
  0x2c   :  { %v1967_v35 = vor.u32 %v1648_v32, %v1499_v31  ;;  %v1643_v39 = vld [vmem:[#allocation6 + $0x4] sm:$0xf]  ;;  %v1481_v41 = vld [vmem:[#allocation6 + $0xc] sm:$0xf0]  ;;  %v1975_v42 = vor.u32 %v1645_v38, %v1487_v37  ;;  %v65_v48 = vld [vmem:[%s2401_s0 + $0x28] sm:$0xff] }
  0x2d   :  { %248 = vmatmul.bf16.vlgmr.msra.gmra.mxu0 %v1916_v21  ;;  %275 = vmatpush.bf16.msra.mxu1 %v1400_v49  ;;  %v1978_v46 = vor.u32 %v1643_v39, %v1481_v41  ;;  %v64_v47 = vld [vmem:[%s2401_s0 + $0x20] sm:$0xff]  ;;  %v66_v55 = vld [vmem:[%s2401_s0 + $0x30] sm:$0xff] }
  0x2e   :  { %552 = vmatpush.bf16.msrb.mxu0 %v1910_v12  ;;  %534 = vmatmul.bf16.vlgmr.msra.gmra.mxu3 %v1833_v40  ;;  %v70_v49 = vpack.c.bf16 %v65_v48, %v64_v47  ;;  %v104_v61 = vld [vmem:[%s2404_s3] sm:$0x7] }
  0x2f   :  { %539 = vmatpush.bf16.msrb.mxu3 %v1912_v15  ;;  %303 = vmatpush.bf16.msra.mxu2 %v1416_v1  ;;  %v383_v62 = vld [vmem:[%s2406_s5] sm:$0x7]  ;;  %v106_v63 = vperm.slane %v104_v61, 0  ;;  %v2083_v32 = vperm.slane %v104_v61, 1  ;;  %v2089_v47 = vperm.slane %v104_v61, 2 }
  0x30   :  { %v2074_v3 = vperm.slane %v383_v62, 0  ;;  %v2087_v39 = vperm.slane %v383_v62, 1 }
  0x31   :  { %276 = vmatpush.bf16.msra.mxu1 %v1388_v59  ;;  %v67_v59 = vld [vmem:[%s2401_s0 + $0x38] sm:$0xff]  ;;  %2411 = vst [vmem:[#allocation10_spill] sm:$0xff] %v2089_v47 }
  0x32   :  { %553 = vmatpush.bf16.msrb.mxu0 %v1920_v28  ;;  %v71_v60 = vpack.c.bf16 %v67_v59, %v66_v55 }
  0x33   :  { %540 = vmatpush.bf16.msrb.mxu3 %v1923_v30  ;;  %304 = vmatpush.bf16.msra.mxu2 %v1404_v20 }
  0x34   :  { %277 = vmatmul.bf16.vlgmr.msra.gmra.mxu1 %v1916_v21 }
  0x35   :  { %630 = vmatpush.bf16.msrb.mxu1 %v1877_v7 }
  0x36   :  { %554 = vmatpush.bf16.msrb.mxu0 %v1928_v43 }
  0x37   :  { %541 = vmatpush.bf16.msrb.mxu3 %v1931_v44  ;;  %305 = vmatpush.bf16.msra.mxu2 %v1392_v33 }
  0x39   :  { %631 = vmatpush.bf16.msrb.mxu1 %v1880_v11 }
  0x3a   :  { %555 = vmatpush.bf16.msrb.mxu0 %v1934_v56  ;;  %306 = vmatmul.bf16.vlgmr.msra.gmra.mxu2 %v1916_v21  ;;  %v2001_v21 = vld [vmem:[%s2402_s1] sm:$0xff] }
  0x3b   :  { %542 = vmatpush.bf16.msrb.mxu3 %v1937_v57  ;;  %643 = vmatpush.bf16.msrb.mxu2 %v1912_v15  ;;  %vm1575_vm0 = vcmp.gt.s32.totalorder %v2001_v21, 0  ;;  %vm1579_vm1 = vcmp.gt.s32.totalorder %v2001_v21, 1  ;;  %vm1585_vm10 = vcmp.gt.s32.totalorder %v2001_v21, 2  ;;  %vm1591_vm11 = vcmp.gt.s32.totalorder %v2001_v21, 3 }
  0x3c   :  { %v1576_v52 = vsel %vm1575_vm0, 1.0, %v2408_v51  ;;  %v1580_v53 = vsel %vm1579_vm1, 1.0, %v2408_v51 }
  0x3d   :  { %253 = vmatmul.bf16.gmra.mxu0 %v1954_v16  ;;  %632 = vmatpush.bf16.msrb.mxu1 %v1883_v17  ;;  %v1675_v54 = vpack.i.bf16 %v1580_v53, %v1576_v52 }
  0x3e   :  { %556 = vmatpush.bf16.msrb.mxu0 %v1948_v5 }
  0x3f   :  { %543 = vmatpush.bf16.msrb.mxu3 %v1951_v9  ;;  %644 = vmatpush.bf16.msrb.mxu2 %v1923_v30 }
  0x40   :  { %1676 = vperm.xlu0 %1674, %v1675_v54  }
  0x41   :  { %633 = vmatpush.bf16.msrb.mxu1 %v1886_v23 }
  0x42   :  { %557 = vmatpush.bf16.msrb.mxu0 %v1959_v22 }
  0x43   :  { %544 = vmatpush.bf16.msrb.mxu3 %v1962_v24  ;;  %645 = vmatpush.bf16.msrb.mxu2 %v1931_v44 }
  0x44   :  { %282 = vmatmul.bf16.gmra.mxu1 %v1954_v16 }
  0x45   :  { %634 = vmatpush.bf16.msrb.mxu1 %v1889_v34 }
  0x46   :  { %558 = vmatpush.bf16.msrb.mxu0 %v1967_v35 }
  0x47   :  { %545 = vmatpush.bf16.msrb.mxu3 %v1970_v36  ;;  %646 = vmatpush.bf16.msrb.mxu2 %v1937_v57 }
  0x49   :  { %635 = vmatpush.bf16.msrb.mxu1 %v1892_v45 }
  0x4a   :  { %559 = vmatpush.bf16.msrb.mxu0 %v1975_v42  ;;  %311 = vmatmul.bf16.gmra.mxu2 %v1954_v16 }
  0x4b   :  { %546 = vmatpush.bf16.msrb.mxu3 %v1978_v46  ;;  %647 = vmatpush.bf16.msrb.mxu2 %v1951_v9 }
  0x4d   :  { %258 = vmatmul.bf16.gmra.mxu0 %v70_v49  ;;  %636 = vmatpush.bf16.msrb.mxu1 %v1895_v58 }
  0x4e   :  { %737 = vmatpush.bf16.msra.mxu0 %v1877_v7  ;;  %547 = vmatmul.bf16.vlgmr.msrb.gmra.mxu3 %v1833_v40 }
  0x4f   :  { %656 = vmatpush.bf16.msra.mxu3 %v1910_v12  ;;  %648 = vmatpush.bf16.msrb.mxu2 %v1962_v24 }
  0x51   :  { %637 = vmatpush.bf16.msrb.mxu1 %v1908_v10 }
  0x52   :  { %738 = vmatpush.bf16.msra.mxu0 %v1880_v11 }
  0x53   :  { %657 = vmatpush.bf16.msra.mxu3 %v1920_v28  ;;  %649 = vmatpush.bf16.msrb.mxu2 %v1970_v36 }
  0x54   :  { %287 = vmatmul.bf16.gmra.mxu1 %v70_v49 }
  0x55   :  { %750 = vmatpush.bf16.msra.mxu1 %v1912_v15 }
  0x56   :  { %739 = vmatpush.bf16.msra.mxu0 %v1883_v17 }
  0x57   :  { %658 = vmatpush.bf16.msra.mxu3 %v1928_v43  ;;  %650 = vmatpush.bf16.msrb.mxu2 %v1978_v46 }
  0x59   :  { %751 = vmatpush.bf16.msra.mxu1 %v1923_v30 }
  0x5a   :  { %740 = vmatpush.bf16.msra.mxu0 %v1886_v23  ;;  %316 = vmatmul.bf16.gmra.mxu2 %v70_v49 }
  0x5b   :  { %659 = vmatpush.bf16.msra.mxu3 %v1934_v56  ;;  %763 = vmatpush.bf16.msra.mxu2 %v1910_v12 }
  0x5d   :  { %263 = vmatmul.bf16.gmra.mxu0 %v71_v60  ;;  %752 = vmatpush.bf16.msra.mxu1 %v1931_v44 }
  0x5e   :  { %741 = vmatpush.bf16.msra.mxu0 %v1889_v34 }
  0x5f   :  { %660 = vmatpush.bf16.msra.mxu3 %v1948_v5  ;;  %764 = vmatpush.bf16.msra.mxu2 %v1920_v28 }
  0x61   :  { %753 = vmatpush.bf16.msra.mxu1 %v1937_v57 }
  0x62   :  { %742 = vmatpush.bf16.msra.mxu0 %v1892_v45 }
  0x63   :  { %661 = vmatpush.bf16.msra.mxu3 %v1959_v22  ;;  %765 = vmatpush.bf16.msra.mxu2 %v1928_v43 }
  0x64   :  { %292 = vmatmul.bf16.gmra.mxu1 %v71_v60 }
  0x65   :  { %754 = vmatpush.bf16.msra.mxu1 %v1951_v9 }
  0x66   :  { %743 = vmatpush.bf16.msra.mxu0 %v1895_v58 }
  0x67   :  { %662 = vmatpush.bf16.msra.mxu3 %v1967_v35  ;;  %766 = vmatpush.bf16.msra.mxu2 %v1934_v56 }
  0x69   :  { %755 = vmatpush.bf16.msra.mxu1 %v1962_v24 }
  0x6a   :  { %744 = vmatpush.bf16.msra.mxu0 %v1908_v10  ;;  %321 = vmatmul.bf16.gmra.mxu2 %v71_v60 }
  0x6b   :  { %663 = vmatpush.bf16.msra.mxu3 %v1975_v42  ;;  %767 = vmatpush.bf16.msra.mxu2 %v1948_v5 }
  0x6d   :  { %560 = vmatmul.bf16.vlgmr.msrb.gmra.mxu0 %v1833_v40  ;;  %756 = vmatpush.bf16.msra.mxu1 %v1970_v36 }
  0x6e   :  { %857 = vmatpush.bf16.msrb.mxu0 %v1912_v15 }
  0x6f   :  { %844 = vmatpush.bf16.msrb.mxu3 %v1877_v7  ;;  %768 = vmatpush.bf16.msra.mxu2 %v1959_v22 }
  0x71   :  { %757 = vmatpush.bf16.msra.mxu1 %v1978_v46 }
  0x72   :  { %858 = vmatpush.bf16.msrb.mxu0 %v1923_v30 }
  0x73   :  { %845 = vmatpush.bf16.msrb.mxu3 %v1880_v11  ;;  %769 = vmatpush.bf16.msra.mxu2 %v1967_v35 }
  0x76   :  { %859 = vmatpush.bf16.msrb.mxu0 %v1931_v44 }
  0x77   :  { %846 = vmatpush.bf16.msrb.mxu3 %v1883_v17  ;;  %770 = vmatpush.bf16.msra.mxu2 %v1975_v42 }
  0x7a   :  { %860 = vmatpush.bf16.msrb.mxu0 %v1937_v57 }
  0x7b   :  { %847 = vmatpush.bf16.msrb.mxu3 %v1886_v23 }
  0x7e   :  { %861 = vmatpush.bf16.msrb.mxu0 %v1951_v9 }
  0x7f   :  { %848 = vmatpush.bf16.msrb.mxu3 %v1889_v34 }
  0x82   :  { %862 = vmatpush.bf16.msrb.mxu0 %v1962_v24 }
  0x83   :  { %849 = vmatpush.bf16.msrb.mxu3 %v1892_v45 }
  0x86   :  { %863 = vmatpush.bf16.msrb.mxu0 %v1970_v36 }
  0x87   :  { %850 = vmatpush.bf16.msrb.mxu3 %v1895_v58 }
  0x8a   :  { %864 = vmatpush.bf16.msrb.mxu0 %v1978_v46 }
  0x8b   :  { %851 = vmatpush.bf16.msrb.mxu3 %v1908_v10 }
  0xaa   :  { %v249_v40 = vpop.f32.mrf.mxu0 }
  0xab   :  { %v250_v14 = vadd.f32 %v249_v40, %v106_v63 }
  0xb1   :  { %v535_v1 = vpop.f32.mrf.mxu3  ;;  %v278_v37 = vpop.f32.mrf.mxu1 }
  0xb2   :  { %v251_v2 = vpop.f32.mrf.mxu0  ;;  %v536_v13 = vadd.f32 %v535_v1, %v2074_v3  ;;  %v279_v48 = vadd.f32 %v278_v37, %v2083_v32 }
  0xb3   :  { %v2076_v4 = vadd.f32 %v251_v2, %v106_v63 }
  0xb4   :  { %v565_v19 = vadd.f32 %v536_v13, %v250_v14 }
  0xb6   :  { %v1573_v25 = vmul.f32 -1.442695, %v565_v19 }
  0xb8   :  { %1696 = vpow2.f32 %v1573_v25 }
  0xb9   :  { %v537_v16 = vpop.f32.mrf.mxu3 }
  0xba   :  { %v254_v18 = vpop.f32.mrf.mxu0 }
  0xbb   :  { %v2079_v20 = vadd.f32 %v254_v18, %v106_v63 }
  0xbd   :  { %v307_v29 = vpop.f32.mrf.mxu2 }
  0xbe   :  { %v1697_v31 = vpop.eup %1696 }
  0xbf   :  { %v569_v41 = vadd.f32 1.0, %v1697_v31 }
  0xc1   :  { %1698 = vrcp.f32 %v569_v41  ;;  %vm575_vm3 = vweird.f32 %v569_v41 }
  0xc2   :  { %v256_v26 = vpop.f32.mrf.mxu0 }
  0xc3   :  { %v2081_v27 = vadd.f32 %v256_v26, %v106_v63 }
  0xc5   :  { %v309_v52 = vpop.f32.mrf.mxu2 }
  0xc6   :  { %v2094_v53 = vadd.f32 %v309_v52, %v2089_v47 }
  0xc7   :  { %v1699_v40 = vpop.eup %1698 }
  0xc8   :  { %v571_v61 = vmul.f32 %v1699_v40, %v569_v41  ;;  %vm576_vm2 = vweird.f32 %v1699_v40 }
  0xc9   :  { %vm577_vm4 = vmor %vm575_vm3, %vm576_vm2 }
  0xca   :  { %v259_v33 = vpop.f32.mrf.mxu0  ;;  %v572_v18 = vsub.f32 1.0, %v571_v61 }
  0xcb   :  { %v2085_v38 = vadd.f32 %v259_v33, %v106_v63 }
  0xcc   :  { %v573_v25 = vmul.f32 %v1699_v40, %v572_v18  ;;  %v308_v18 = vadd.f32 %v307_v29, %v2089_v47 }
  0xcd   :  { %v312_v19 = vpop.f32.mrf.mxu2 }
  0xce   :  { %v2101_v26 = vadd.f32 %v312_v19, %v2089_v47 }
  0xd1   :  { %v548_v49 = vpop.f32.mrf.mxu3 }
  0xd2   :  { %v549_v50 = vadd.f32 %v548_v49, %v2087_v39  ;;  %v261_v55 = vpop.f32.mrf.mxu0  ;;  %v574_v49 = vadd.f32 %v1699_v40, %v573_v25 }
  0xd3   :  { %v2096_v60 = vadd.f32 %v261_v55, %v106_v63  ;;  %v579_v55 = vand.u32 2147483647, %v569_v41 }
  0xd4   :  { %v585_v54 = vadd.f32 %v549_v50, %v279_v48  ;;  %v581_v50 = vand.u32 2147483648, %v569_v41  ;;  %v578_v61 = vsel %vm577_vm4, %v1699_v40, %v574_v49 }
  0xd5   :  { %2412 = vst [vmem:[#allocation11_spill] sm:$0xff] %v2096_v60  ;;  %vm580_vm5 = vcmp.eq.f32.partialorder %v579_v55, 8.507059e+37 }
  0xd6   :  { %v1574_v59 = vmul.f32 -1.442695, %v585_v54  ;;  %v2105_v54 = vperm.slane %v383_v62, 2 }
  0xd8   :  { %1700 = vpow2.f32 %v1574_v59  ;;  %v314_v59 = vpop.f32.mrf.mxu2 }
  0xd9   :  { %v550_v1 = vpop.f32.mrf.mxu3 }
  0xda   :  { %v264_v2 = vpop.f32.mrf.mxu0 }
  0xdb   :  { %v2098_v14 = vadd.f32 %v264_v2, %v106_v63  ;;  %v2108_v2 = vadd.f32 %v314_v59, %v2089_v47 }
  0xdd   :  { %2413 = vst [vmem:[#allocation12_spill] sm:$0xff] %v2098_v14 }
  0xde   :  { %v1701_v13 = vpop.eup %1700 }
  0xdf   :  { %v589_v16 = vadd.f32 1.0, %v1701_v13 }
  0xe0   :  { %v317_v49 = vpop.f32.mrf.mxu2 }
  0xe1   :  { %1702 = vrcp.f32 %v589_v16  ;;  %vm595_vm6 = vweird.f32 %v589_v16 }
  0xe2   :  { %v266_v31 = vpop.f32.mrf.mxu0 }
  0xe3   :  { %v2103_v33 = vadd.f32 %v266_v31, %v106_v63  ;;  %v582_v63 = vor.u32 1.1754944e-38, %v581_v50  ;;  %v601_v31 = vand.u32 2147483648, %v589_v16  ;;  %v2113_v50 = vadd.f32 %v317_v49, %v2089_v47 }
  0xe5   :  { %2414 = vst [vmem:[#allocation13_spill] sm:$0xff] %v2103_v33  ;;  %v583_v62 = vsel %vm580_vm5, %v582_v63, %v578_v61  ;;  %v602_v59 = vor.u32 1.1754944e-38, %v601_v31  ;;  %v2115_v33 = vpop.permute.xlu0 %1676  ;;  %v280_v31 = vpop.f32.mrf.mxu1 }
  0xe6   :  { %2415 = vst [vmem:[#allocation14_spill] sm:$0xff] %v2113_v50 }
  0xe7   :  { %v1703_v37 = vpop.eup %1702 }
  0xe8   :  { %v591_v48 = vmul.f32 %v1703_v37, %v589_v16  ;;  %vm596_vm7 = vweird.f32 %v1703_v37  ;;  %v319_v63 = vpop.f32.mrf.mxu2 }
  0xe9   :  { %vm597_vm8 = vmor %vm595_vm6, %vm596_vm7 }
  0xea   :  { %v592_v52 = vsub.f32 1.0, %v591_v48  ;;  %v561_v13 = vpop.f32.mrf.mxu0  ;;  %v599_v48 = vand.u32 2147483647, %v589_v16  ;;  %v2118_v16 = vadd.f32 %v319_v63, %v2089_v47 }
  0xeb   :  { %v562_v19 = vadd.f32 %v561_v13, %v2105_v54 }
  0xec   :  { %v593_v1 = vmul.f32 %v1703_v37, %v592_v52  ;;  %vm600_vm9 = vcmp.eq.f32.partialorder %v599_v48, 8.507059e+37  ;;  %2416 = vst [vmem:[#allocation15_spill] sm:$0xff] %v2118_v16 }
  0xed   :  { %v605_v41 = vmul.f32 %v583_v62, %v562_v19 }
  0xee   :  { %v594_v25 = vadd.f32 %v1703_v37, %v593_v1 }
  0xef   :  { %v606_v52 = vadd.f32 %v605_v41, %v308_v18  ;;  %v2157_v41 = vpop.f32.mrf.mxu1 }
  0xf0   :  { %v598_v40 = vsel %vm597_vm8, %v1703_v37, %v594_v25  ;;  %v1678_v37 = vunpack.i.l.bf16 %v2115_v33 }
  0xf1   :  { %1704 = vtanh.f32 %v606_v52  ;;  %v603_v13 = vsel %vm600_vm9, %v602_v59, %v598_v40 }
  0xf2   :  { %v563_v29 = vpop.f32.mrf.mxu0  ;;  %v608_v55 = vsub.f32 1.0, %v603_v13  ;;  %v610_v61 = vmul.f32 0.0, %v603_v13 }
  0xf7   :  { %v1705_v51 = vpop.eup %1704  ;;  %v2159_v48 = vpop.f32.mrf.mxu1 }
  0xf8   :  { %v609_v1 = vmul.f32 %v1705_v51, %v608_v55  ;;  %v322_v51 = vpop.f32.mrf.mxu2 }
  0xfa   :  { %v2121_v18 = vadd.f32 %v610_v61, %v609_v1 }
  0xfc   :  { %v617_v19 = vadd.f32 %v2121_v18, %v1900_v6  ;;  %v629_v62 = vpack.c.bf16 %v2121_v18, %v2121_v18  ;;  %v2134_v6 = vadd.f32 %v322_v51, %v2089_v47 }
  0xfe   :  { %v623_v25 = vmul.f32 %v1678_v37, %v617_v19  ;;  %638 = vmatmul.bf16.vlgmr.msrb.gmra.mxu1 %v629_v62  ;;  %651 = vmatmul.bf16.vlgmr.msrb.gmra.mxu2 %v629_v62  ;;  %2417 = vst [vmem:[#allocation16_spill] sm:$0xff] %v2134_v6  ;;  %v281_v37 = vadd.f32 %v280_v31, %v2083_v32 }
  0xff   :  { %664 = vmatmul.bf16.vlgmr.msra.gmra.mxu3 %v629_v62  ;;  %870 = vmatpush.bf16.msrb.mxu1 %v1910_v12  ;;  %v2161_v52 = vpop.f32.mrf.mxu1 }
 0x100   :  { %624 = vst [vmem:[%s2407_s6] sm:$0xff] %v623_v25  ;;  %951 = vmatpush.bf16.msrb.mxu2 %v1877_v7  ;;  %964 = vmatpush.bf16.msra.mxu3 %v1912_v15  ;;  %v2169_v29 = vpop.f32.mrf.mxu2 }
 0x101   :  { %2421 = vst [vmem:[#allocation20_spill] sm:$0xff] %v2169_v29 }
 0x103   :  { %871 = vmatpush.bf16.msrb.mxu1 %v1920_v28 }
 0x104   :  { %952 = vmatpush.bf16.msrb.mxu2 %v1880_v11  ;;  %965 = vmatpush.bf16.msra.mxu3 %v1923_v30 }
 0x107   :  { %872 = vmatpush.bf16.msrb.mxu1 %v1928_v43  ;;  %v2163_v40 = vpop.f32.mrf.mxu1 }
 0x108   :  { %953 = vmatpush.bf16.msrb.mxu2 %v1883_v17  ;;  %966 = vmatpush.bf16.msra.mxu3 %v1931_v44  ;;  %2418 = vst [vmem:[#allocation17_spill] sm:$0xff] %v2163_v40 }
 0x10b   :  { %873 = vmatpush.bf16.msrb.mxu1 %v1934_v56 }
 0x10c   :  { %954 = vmatpush.bf16.msrb.mxu2 %v1886_v23  ;;  %967 = vmatpush.bf16.msra.mxu3 %v1937_v57 }
 0x10f   :  { %874 = vmatpush.bf16.msrb.mxu1 %v1948_v5  ;;  %v2165_v49 = vpop.f32.mrf.mxu1 }
 0x110   :  { %955 = vmatpush.bf16.msrb.mxu2 %v1889_v34  ;;  %968 = vmatpush.bf16.msra.mxu3 %v1951_v9  ;;  %2419 = vst [vmem:[#allocation18_spill] sm:$0xff] %v2165_v49 }
 0x113   :  { %875 = vmatpush.bf16.msrb.mxu1 %v1959_v22 }
 0x114   :  { %956 = vmatpush.bf16.msrb.mxu2 %v1892_v45  ;;  %969 = vmatpush.bf16.msra.mxu3 %v1962_v24 }
 0x117   :  { %876 = vmatpush.bf16.msrb.mxu1 %v1967_v35  ;;  %v2167_v59 = vpop.f32.mrf.mxu1 }
 0x118   :  { %957 = vmatpush.bf16.msrb.mxu2 %v1895_v58  ;;  %970 = vmatpush.bf16.msra.mxu3 %v1970_v36  ;;  %2420 = vst [vmem:[#allocation19_spill] sm:$0xff] %v2167_v59 }
 0x11b   :  { %877 = vmatpush.bf16.msrb.mxu1 %v1975_v42 }
 0x11c   :  { %958 = vmatpush.bf16.msrb.mxu2 %v1908_v10  ;;  %971 = vmatpush.bf16.msra.mxu3 %v1978_v46 }
 0x17b   :  { %v639_v13 = vpop.f32.mrf.mxu1 }
 0x17c   :  { %v640_v55 = vadd.f32 %v639_v13, %v2074_v3 }
 0x17e   :  { %v669_v1 = vadd.f32 %v640_v55, %v2076_v4  ;;  %v2422_v4 = vmov 0.0  }
 0x17f   :  { %v1586_v31 = vsel %vm1585_vm10, 1.0, %v2422_v4  ;;  %v1592_v55 = vsel %vm1591_vm11, 1.0, %v2422_v4 }
 0x180   :  { %v1577_v61 = vmul.f32 -1.442695, %v669_v1 }
 0x181   :  { %v652_v63 = vpop.f32.mrf.mxu2 }
 0x182   :  { %1706 = vpow2.f32 %v1577_v61  ;;  %v653_v19 = vadd.f32 %v652_v63, %v2087_v39  ;;  %v665_v62 = vpop.f32.mrf.mxu3  ;;  %v1680_v63 = vpack.i.bf16 %v1592_v55, %v1586_v31 }
 0x183   :  { %v641_v25 = vpop.f32.mrf.mxu1  ;;  %v666_v16 = vadd.f32 %v665_v62, %v2105_v54 }
 0x184   :  { %v689_v51 = vadd.f32 %v653_v19, %v281_v37  ;;  %1681 = vperm.xlu0 %1674, %v1680_v63  }
 0x186   :  { %v1578_v47 = vmul.f32 -1.442695, %v689_v51 }
 0x188   :  { %v1707_v6 = vpop.eup %1706  ;;  %1708 = vpow2.f32 %v1578_v47 }
 0x189   :  { %v673_v59 = vadd.f32 1.0, %v1707_v6  ;;  %v654_v29 = vpop.f32.mrf.mxu2 }
 0x18a   :  { %v667_v14 = vpop.f32.mrf.mxu3 }
 0x18b   :  { %1710 = vrcp.f32 %v673_v59  ;;  %v685_v47 = vand.u32 2147483648, %v673_v59  ;;  %v683_v14 = vand.u32 2147483647, %v673_v59  ;;  %vm679_vm13 = vweird.f32 %v673_v59 }
 0x18d   :  { %v686_v51 = vor.u32 1.1754944e-38, %v685_v47  ;;  %vm684_vm15 = vcmp.eq.f32.partialorder %v683_v14, 8.507059e+37  ;;  %v1679_v14 = vunpack.i.h.bf16 %v2115_v33 }
 0x18e   :  { %v1709_v13 = vpop.eup %1708 }
 0x18f   :  { %v693_v49 = vadd.f32 1.0, %v1709_v13 }
 0x191   :  { %v1711_v1 = vpop.eup %1710  ;;  %1712 = vrcp.f32 %v693_v49  ;;  %v705_v31 = vand.u32 2147483648, %v693_v49  ;;  %vm699_vm1 = vweird.f32 %v693_v49 }
 0x192   :  { %v675_v61 = vmul.f32 %v1711_v1, %v673_v59  ;;  %vm680_vm12 = vweird.f32 %v1711_v1 }
 0x193   :  { %vm681_vm14 = vmor %vm679_vm13, %vm680_vm12  ;;  %vm1597_vm12 = vcmp.gt.s32.totalorder %v2001_v21, 4  ;;  %vm1603_vm13 = vcmp.gt.s32.totalorder %v2001_v21, 5 }
 0x194   :  { %v676_v37 = vsub.f32 1.0, %v675_v61  ;;  %v703_v61 = vand.u32 2147483647, %v693_v49 }
 0x196   :  { %v677_v6 = vmul.f32 %v1711_v1, %v676_v37  ;;  %vm704_vm3 = vcmp.eq.f32.partialorder %v703_v61, 8.507059e+37 }
 0x197   :  { %v1713_v29 = vpop.eup %1712 }
 0x198   :  { %v695_v19 = vmul.f32 %v1713_v29, %v693_v49  ;;  %v678_v25 = vadd.f32 %v1711_v1, %v677_v6  ;;  %vm700_vm0 = vweird.f32 %v1713_v29  ;;  %v706_v6 = vor.u32 1.1754944e-38, %v705_v31 }
 0x199   :  { %vm701_vm2 = vmor %vm699_vm1, %vm700_vm0 }
 0x19a   :  { %v696_v13 = vsub.f32 1.0, %v695_v19  ;;  %v682_v40 = vsel %vm681_vm14, %v1711_v1, %v678_v25 }
 0x19b   :  { %v687_v60 = vsel %vm684_vm15, %v686_v51, %v682_v40 }
 0x19c   :  { %v697_v50 = vmul.f32 %v1713_v29, %v696_v13  ;;  %v709_v55 = vmul.f32 %v687_v60, %v666_v16  ;;  %v284_v16 = vadd.f32 %v2157_v41, %v2083_v32 }
 0x19e   :  { %v698_v63 = vadd.f32 %v1713_v29, %v697_v50  ;;  %v710_v37 = vadd.f32 %v709_v55, %v2094_v53 }
 0x1a0   :  { %v702_v59 = vsel %vm701_vm2, %v1713_v29, %v698_v63  ;;  %1714 = vtanh.f32 %v710_v37 }
 0x1a1   :  { %v707_v47 = vsel %vm704_vm3, %v706_v6, %v702_v59 }
 0x1a2   :  { %v712_v19 = vsub.f32 1.0, %v707_v47  ;;  %v714_v40 = vmul.f32 %v707_v47, %v2121_v18 }
 0x1a6   :  { %v1715_v62 = vpop.eup %1714 }
 0x1a7   :  { %v713_v1 = vmul.f32 %v1715_v62, %v712_v19 }
 0x1a9   :  { %v2183_v25 = vadd.f32 %v714_v40, %v713_v1 }
 0x1ab   :  { %v723_v60 = vadd.f32 %v2183_v25, %v1905_v8  ;;  %v736_v53 = vpack.c.bf16 %v2183_v25, %v2183_v25 }
 0x1ad   :  { %v729_v50 = vmul.f32 %v1679_v14, %v723_v60  ;;  %745 = vmatmul.bf16.vlgmr.msra.gmra.mxu0 %v736_v53  ;;  %758 = vmatmul.bf16.vlgmr.msra.gmra.mxu1 %v736_v53 }
 0x1ae   :  { %771 = vmatmul.bf16.vlgmr.msra.gmra.mxu2 %v736_v53  ;;  %977 = vmatpush.bf16.msra.mxu0 %v1910_v12 }
 0x1af   :  { %1582 = vst [vmem:[%s2407_s6 + $0x8] sm:$0xff] %v729_v50  ;;  %1058 = vmatpush.bf16.msra.mxu1 %v1877_v7  ;;  %1071 = vmatpush.bf16.msra.mxu2 %v1912_v15 }
 0x1b2   :  { %978 = vmatpush.bf16.msra.mxu0 %v1920_v28 }
 0x1b3   :  { %1059 = vmatpush.bf16.msra.mxu1 %v1880_v11  ;;  %1072 = vmatpush.bf16.msra.mxu2 %v1923_v30 }
 0x1b6   :  { %979 = vmatpush.bf16.msra.mxu0 %v1928_v43 }
 0x1b7   :  { %1060 = vmatpush.bf16.msra.mxu1 %v1883_v17  ;;  %1073 = vmatpush.bf16.msra.mxu2 %v1931_v44 }
 0x1ba   :  { %980 = vmatpush.bf16.msra.mxu0 %v1934_v56 }
 0x1bb   :  { %1061 = vmatpush.bf16.msra.mxu1 %v1886_v23  ;;  %1074 = vmatpush.bf16.msra.mxu2 %v1937_v57 }
 0x1be   :  { %981 = vmatpush.bf16.msra.mxu0 %v1948_v5 }
 0x1bf   :  { %1062 = vmatpush.bf16.msra.mxu1 %v1889_v34  ;;  %1075 = vmatpush.bf16.msra.mxu2 %v1951_v9 }
 0x1c2   :  { %982 = vmatpush.bf16.msra.mxu0 %v1959_v22 }
 0x1c3   :  { %1063 = vmatpush.bf16.msra.mxu1 %v1892_v45  ;;  %1076 = vmatpush.bf16.msra.mxu2 %v1962_v24 }
 0x1c6   :  { %983 = vmatpush.bf16.msra.mxu0 %v1967_v35 }
 0x1c7   :  { %1064 = vmatpush.bf16.msra.mxu1 %v1895_v58  ;;  %1077 = vmatpush.bf16.msra.mxu2 %v1970_v36 }
 0x1ca   :  { %984 = vmatpush.bf16.msra.mxu0 %v1975_v42 }
 0x1cb   :  { %1065 = vmatpush.bf16.msra.mxu1 %v1908_v10  ;;  %1078 = vmatpush.bf16.msra.mxu2 %v1978_v46 }
 0x22a   :  { %v746_v8 = vpop.f32.mrf.mxu0  ;;  %v759_v33 = vpop.f32.mrf.mxu1 }
 0x22b   :  { %v747_v18 = vadd.f32 %v746_v8, %v2074_v3  ;;  %v760_v49 = vadd.f32 %v759_v33, %v2087_v39 }
 0x22d   :  { %v776_v29 = vadd.f32 %v747_v18, %v2079_v20  ;;  %v796_v51 = vadd.f32 %v760_v49, %v284_v16 }
 0x22f   :  { %v1583_v13 = vmul.f32 -1.442695, %v776_v29  ;;  %v1584_v31 = vmul.f32 -1.442695, %v796_v51 }
 0x231   :  { %1716 = vpow2.f32 %v1583_v13  ;;  %v772_v55 = vpop.f32.mrf.mxu2 }
 0x232   :  { %1718 = vpow2.f32 %v1584_v31  ;;  %v748_v61 = vpop.f32.mrf.mxu0  ;;  %v761_v63 = vpop.f32.mrf.mxu1  ;;  %v773_v18 = vadd.f32 %v772_v55, %v2105_v54 }
 0x233   :  { %v2223_v55 = vpop.permute.xlu0 %1681 }
 0x237   :  { %v1717_v37 = vpop.eup %1716 }
 0x238   :  { %v1719_v6 = vpop.eup %1718  ;;  %v780_v59 = vadd.f32 1.0, %v1717_v37 }
 0x239   :  { %v800_v47 = vadd.f32 1.0, %v1719_v6  ;;  %v774_v19 = vpop.f32.mrf.mxu2 }
 0x23a   :  { %1720 = vrcp.f32 %v780_v59  ;;  %v792_v60 = vand.u32 2147483648, %v780_v59  ;;  %v790_v50 = vand.u32 2147483647, %v780_v59  ;;  %vm786_vm5 = vweird.f32 %v780_v59 }
 0x23b   :  { %1722 = vrcp.f32 %v800_v47  ;;  %v812_v31 = vand.u32 2147483648, %v800_v47  ;;  %vm806_vm9 = vweird.f32 %v800_v47  ;;  %v810_v61 = vand.u32 2147483647, %v800_v47 }
 0x23c   :  { %v793_v16 = vor.u32 1.1754944e-38, %v792_v60  ;;  %vm791_vm7 = vcmp.eq.f32.partialorder %v790_v50, 8.507059e+37 }
 0x23d   :  { %v813_v6 = vor.u32 1.1754944e-38, %v812_v31  ;;  %vm811_vm11 = vcmp.eq.f32.partialorder %v810_v61, 8.507059e+37 }
 0x240   :  { %v1721_v41 = vpop.eup %1720 }
 0x241   :  { %v1723_v62 = vpop.eup %1722  ;;  %v782_v1 = vmul.f32 %v1721_v41, %v780_v59  ;;  %vm787_vm4 = vweird.f32 %v1721_v41 }
 0x242   :  { %v802_v40 = vmul.f32 %v1723_v62, %v800_v47  ;;  %vm788_vm6 = vmor %vm786_vm5, %vm787_vm4  ;;  %vm807_vm8 = vweird.f32 %v1723_v62 }
 0x243   :  { %v783_v20 = vsub.f32 1.0, %v782_v1  ;;  %vm808_vm10 = vmor %vm806_vm9, %vm807_vm8 }
 0x244   :  { %v803_v14 = vsub.f32 1.0, %v802_v40 }
 0x245   :  { %v784_v53 = vmul.f32 %v1721_v41, %v783_v20  ;;  %v1683_v20 = vunpack.i.l.bf16 %v2223_v55 }
 0x246   :  { %v804_v8 = vmul.f32 %v1723_v62, %v803_v14 }
 0x247   :  { %v785_v33 = vadd.f32 %v1721_v41, %v784_v53 }
 0x248   :  { %v805_v51 = vadd.f32 %v1723_v62, %v804_v8 }
 0x249   :  { %v789_v49 = vsel %vm788_vm6, %v1721_v41, %v785_v33 }
 0x24a   :  { %v794_v29 = vsel %vm791_vm7, %v793_v16, %v789_v49  ;;  %v809_v37 = vsel %vm808_vm10, %v1723_v62, %v805_v51 }
 0x24b   :  { %v816_v13 = vmul.f32 %v794_v29, %v773_v18  ;;  %v814_v59 = vsel %vm811_vm11, %v813_v6, %v809_v37 }
 0x24c   :  { %v819_v19 = vsub.f32 1.0, %v814_v59  ;;  %v821_v40 = vmul.f32 %v814_v59, %v2183_v25  ;;  %v286_v25 = vadd.f32 %v2159_v48, %v2083_v32  ;;  %v1598_v59 = vsel %vm1597_vm12, 1.0, %v2422_v4 }
 0x24d   :  { %v817_v63 = vadd.f32 %v816_v13, %v2101_v26 }
 0x24f   :  { %1724 = vtanh.f32 %v817_v63 }
 0x255   :  { %v1725_v1 = vpop.eup %1724 }
 0x256   :  { %v820_v41 = vmul.f32 %v1725_v1, %v819_v19 }
 0x258   :  { %v2227_v14 = vadd.f32 %v821_v40, %v820_v41 }
 0x25a   :  { %v830_v26 = vadd.f32 %v2227_v14, %v1942_v0  ;;  %v843_v47 = vpack.c.bf16 %v2227_v14, %v2227_v14 }
 0x25c   :  { %v836_v62 = vmul.f32 %v1683_v20, %v830_v26  ;;  %852 = vmatmul.bf16.vlgmr.msrb.gmra.mxu3 %v843_v47  ;;  %865 = vmatmul.bf16.vlgmr.msrb.gmra.mxu0 %v843_v47 }
 0x25d   :  { %878 = vmatmul.bf16.vlgmr.msrb.gmra.mxu1 %v843_v47  ;;  %1084 = vmatpush.bf16.msrb.mxu3 %v1910_v12 }
 0x25e   :  { %1588 = vst [vmem:[%s2407_s6 + $0x10] sm:$0xff] %v836_v62  ;;  %1165 = vmatpush.bf16.msrb.mxu0 %v1877_v7  ;;  %1178 = vmatpush.bf16.msrb.mxu1 %v1912_v15 }
 0x261   :  { %1085 = vmatpush.bf16.msrb.mxu3 %v1920_v28 }
 0x262   :  { %1166 = vmatpush.bf16.msrb.mxu0 %v1880_v11  ;;  %1179 = vmatpush.bf16.msrb.mxu1 %v1923_v30 }
 0x265   :  { %1086 = vmatpush.bf16.msrb.mxu3 %v1928_v43 }
 0x266   :  { %1167 = vmatpush.bf16.msrb.mxu0 %v1883_v17  ;;  %1180 = vmatpush.bf16.msrb.mxu1 %v1931_v44 }
 0x269   :  { %1087 = vmatpush.bf16.msrb.mxu3 %v1934_v56 }
 0x26a   :  { %1168 = vmatpush.bf16.msrb.mxu0 %v1886_v23  ;;  %1181 = vmatpush.bf16.msrb.mxu1 %v1937_v57 }
 0x26d   :  { %1088 = vmatpush.bf16.msrb.mxu3 %v1948_v5 }
 0x26e   :  { %1169 = vmatpush.bf16.msrb.mxu0 %v1889_v34  ;;  %1182 = vmatpush.bf16.msrb.mxu1 %v1951_v9 }
 0x271   :  { %1089 = vmatpush.bf16.msrb.mxu3 %v1959_v22 }
 0x272   :  { %1170 = vmatpush.bf16.msrb.mxu0 %v1892_v45  ;;  %1183 = vmatpush.bf16.msrb.mxu1 %v1962_v24 }
 0x275   :  { %1090 = vmatpush.bf16.msrb.mxu3 %v1967_v35 }
 0x276   :  { %1171 = vmatpush.bf16.msrb.mxu0 %v1895_v58  ;;  %1184 = vmatpush.bf16.msrb.mxu1 %v1970_v36 }
 0x279   :  { %1091 = vmatpush.bf16.msrb.mxu3 %v1975_v42 }
 0x27a   :  { %1172 = vmatpush.bf16.msrb.mxu0 %v1908_v10  ;;  %1185 = vmatpush.bf16.msrb.mxu1 %v1978_v46 }
 0x2d9   :  { %v866_v0 = vpop.f32.mrf.mxu0 }
 0x2da   :  { %v867_v60 = vadd.f32 %v866_v0, %v2087_v39  ;;  %v879_v53 = vpop.f32.mrf.mxu1 }
 0x2db   :  { %v880_v21 = vadd.f32 %v879_v53, %v2105_v54 }
 0x2dc   :  { %v903_v50 = vadd.f32 %v867_v60, %v286_v25 }
 0x2de   :  { %v1590_v8 = vmul.f32 -1.442695, %v903_v50 }
 0x2df   :  { %v853_v33 = vpop.f32.mrf.mxu3 }
 0x2e0   :  { %1726 = vpow2.f32 %v1590_v8  ;;  %v854_v16 = vadd.f32 %v853_v33, %v2074_v3 }
 0x2e1   :  { %v868_v18 = vpop.f32.mrf.mxu0 }
 0x2e2   :  { %v883_v49 = vadd.f32 %v854_v16, %v2081_v27  ;;  %v881_v29 = vpop.f32.mrf.mxu1  ;;  %v1604_v27 = vsel %vm1603_vm13, 1.0, %v2422_v4 }
 0x2e3   :  { %v1686_v1 = vpack.i.bf16 %v1604_v27, %v1598_v59  ;;  %v1593_v59 = vld [vmem:[%s2401_s0 + $0x18] sm:$0xff]  ;;  %v1684_v27 = vunpack.i.h.bf16 %v2223_v55 }
 0x2e4   :  { %v1589_v51 = vmul.f32 -1.442695, %v883_v49 }
 0x2e5   :  { %1687 = vperm.xlu1 %1685, %v1686_v1  }
 0x2e6   :  { %v1727_v13 = vpop.eup %1726  ;;  %1728 = vpow2.f32 %v1589_v51 }
 0x2e7   :  { %v907_v31 = vadd.f32 1.0, %v1727_v13  ;;  %v855_v61 = vpop.f32.mrf.mxu3 }
 0x2e9   :  { %1730 = vrcp.f32 %v907_v31  ;;  %v919_v16 = vand.u32 2147483648, %v907_v31  ;;  %vm913_vm3 = vweird.f32 %v907_v31  ;;  %v917_v49 = vand.u32 2147483647, %v907_v31 }
 0x2eb   :  { %v920_v13 = vor.u32 1.1754944e-38, %v919_v16  ;;  %vm918_vm5 = vcmp.eq.f32.partialorder %v917_v49, 8.507059e+37  ;;  %v2423_v49 = vld [vmem:[#allocation14_spill] sm:$0xff] }
 0x2ec   :  { %v1729_v48 = vpop.eup %1728 }
 0x2ed   :  { %v887_v63 = vadd.f32 1.0, %v1729_v48 }
 0x2ef   :  { %1732 = vrcp.f32 %v887_v63  ;;  %v1731_v37 = vpop.eup %1730  ;;  %v899_v26 = vand.u32 2147483648, %v887_v63  ;;  %v897_v62 = vand.u32 2147483647, %v887_v63  ;;  %vm893_vm15 = vweird.f32 %v887_v63 }
 0x2f0   :  { %v909_v6 = vmul.f32 %v1731_v37, %v907_v31  ;;  %vm914_vm2 = vweird.f32 %v1731_v37 }
 0x2f1   :  { %v900_v60 = vor.u32 1.1754944e-38, %v899_v26  ;;  %vm898_vm1 = vcmp.eq.f32.partialorder %v897_v62, 8.507059e+37  ;;  %vm915_vm4 = vmor %vm913_vm3, %vm914_vm2 }
 0x2f2   :  { %v910_v40 = vsub.f32 1.0, %v909_v6 }
 0x2f4   :  { %v911_v0 = vmul.f32 %v1731_v37, %v910_v40 }
 0x2f5   :  { %v1733_v19 = vpop.eup %1732 }
 0x2f6   :  { %v889_v41 = vmul.f32 %v1733_v19, %v887_v63  ;;  %vm894_vm14 = vweird.f32 %v1733_v19  ;;  %v912_v33 = vadd.f32 %v1731_v37, %v911_v0 }
 0x2f7   :  { %vm895_vm0 = vmor %vm893_vm15, %vm894_vm14 }
 0x2f8   :  { %v890_v20 = vsub.f32 1.0, %v889_v41  ;;  %v916_v51 = vsel %vm915_vm4, %v1731_v37, %v912_v33 }
 0x2f9   :  { %v921_v61 = vsel %vm918_vm5, %v920_v13, %v916_v51 }
 0x2fa   :  { %v891_v47 = vmul.f32 %v1733_v19, %v890_v20  ;;  %v926_v48 = vsub.f32 1.0, %v921_v61  ;;  %v928_v6 = vmul.f32 %v921_v61, %v2227_v14 }
 0x2fc   :  { %v892_v25 = vadd.f32 %v1733_v19, %v891_v47 }
 0x2fe   :  { %v896_v50 = vsel %vm895_vm0, %v1733_v19, %v892_v25 }
 0x2ff   :  { %v901_v8 = vsel %vm898_vm1, %v900_v60, %v896_v50 }
 0x300   :  { %v923_v18 = vmul.f32 %v901_v8, %v880_v21 }
 0x302   :  { %v924_v29 = vadd.f32 %v923_v18, %v2108_v2 }
 0x304   :  { %1734 = vtanh.f32 %v924_v29 }
 0x30a   :  { %v1735_v63 = vpop.eup %1734 }
 0x30b   :  { %v927_v53 = vmul.f32 %v1735_v63, %v926_v48 }
 0x30d   :  { %v2276_v31 = vadd.f32 %v928_v6, %v927_v53 }
 0x30f   :  { %v937_v2 = vadd.f32 %v1593_v59, %v2276_v31  ;;  %v950_v37 = vpack.c.bf16 %v2276_v31, %v2276_v31 }
 0x311   :  { %v943_v19 = vmul.f32 %v1684_v27, %v937_v2  ;;  %959 = vmatmul.bf16.vlgmr.msrb.gmra.mxu2 %v950_v37  ;;  %972 = vmatmul.bf16.vlgmr.msra.gmra.mxu3 %v950_v37  ;;  %v1599_v27 = vld [vmem:[%s2401_s0 + $0x20] sm:$0xff] }
 0x312   :  { %985 = vmatmul.bf16.vlgmr.msra.gmra.mxu0 %v950_v37  ;;  %1191 = vmatpush.bf16.msrb.mxu2 %v1910_v12 }
 0x313   :  { %1594 = vst [vmem:[%s2407_s6 + $0x18] sm:$0xff] %v943_v19  ;;  %1272 = vmatpush.bf16.msra.mxu3 %v1877_v7  ;;  %1285 = vmatpush.bf16.msra.mxu0 %v1912_v15 }
 0x316   :  { %1192 = vmatpush.bf16.msrb.mxu2 %v1920_v28 }
 0x317   :  { %1273 = vmatpush.bf16.msra.mxu3 %v1880_v11  ;;  %1286 = vmatpush.bf16.msra.mxu0 %v1923_v30 }
 0x31a   :  { %1193 = vmatpush.bf16.msrb.mxu2 %v1928_v43 }
 0x31b   :  { %1274 = vmatpush.bf16.msra.mxu3 %v1883_v17  ;;  %1287 = vmatpush.bf16.msra.mxu0 %v1931_v44 }
 0x31e   :  { %1194 = vmatpush.bf16.msrb.mxu2 %v1934_v56 }
 0x31f   :  { %1275 = vmatpush.bf16.msra.mxu3 %v1886_v23  ;;  %1288 = vmatpush.bf16.msra.mxu0 %v1937_v57  ;;  %v289_v23 = vadd.f32 %v2161_v52, %v2083_v32 }
 0x322   :  { %1195 = vmatpush.bf16.msrb.mxu2 %v1948_v5 }
 0x323   :  { %1276 = vmatpush.bf16.msra.mxu3 %v1889_v34  ;;  %1289 = vmatpush.bf16.msra.mxu0 %v1951_v9 }
 0x326   :  { %1196 = vmatpush.bf16.msrb.mxu2 %v1959_v22 }
 0x327   :  { %1277 = vmatpush.bf16.msra.mxu3 %v1892_v45  ;;  %1290 = vmatpush.bf16.msra.mxu0 %v1962_v24 }
 0x32a   :  { %1197 = vmatpush.bf16.msrb.mxu2 %v1967_v35 }
 0x32b   :  { %1278 = vmatpush.bf16.msra.mxu3 %v1895_v58  ;;  %1291 = vmatpush.bf16.msra.mxu0 %v1970_v36 }
 0x32e   :  { %1198 = vmatpush.bf16.msrb.mxu2 %v1975_v42 }
 0x32f   :  { %1279 = vmatpush.bf16.msra.mxu3 %v1908_v10  ;;  %1292 = vmatpush.bf16.msra.mxu0 %v1978_v46 }
 0x357   :  { %v2315_v53 = vpop.permute.xlu1 %1687 }
 0x358   :  { %v1689_v2 = vunpack.i.l.bf16 %v2315_v53 }
 0x38f   :  { %v986_v7 = vpop.f32.mrf.mxu0 }
 0x390   :  { %v987_v60 = vadd.f32 %v986_v7, %v2105_v54 }
 0x394   :  { %v960_v11 = vpop.f32.mrf.mxu2  ;;  %v973_v17 = vpop.f32.mrf.mxu3 }
 0x395   :  { %v961_v34 = vadd.f32 %v960_v11, %v2074_v3  ;;  %v974_v45 = vadd.f32 %v973_v17, %v2087_v39  ;;  %v2424_v17 = vld [vmem:[#allocation11_spill] sm:$0xff] }
 0x397   :  { %v990_v58 = vadd.f32 %v961_v34, %v2085_v38  ;;  %v1010_v15 = vadd.f32 %v974_v45, %v289_v23  ;;  %v988_v30 = vpop.f32.mrf.mxu0 }
 0x399   :  { %v1595_v44 = vmul.f32 -1.442695, %v990_v58  ;;  %v1596_v57 = vmul.f32 -1.442695, %v1010_v15 }
 0x39b   :  { %1736 = vpow2.f32 %v1595_v44 }
 0x39c   :  { %1738 = vpow2.f32 %v1596_v57  ;;  %v962_v10 = vpop.f32.mrf.mxu2  ;;  %v975_v9 = vpop.f32.mrf.mxu3 }
 0x39d   :  { %v1776_v9 = vld [vmem:[%s2402_s1] sm:$0xff] }
 0x39e   :  { %vm1609_vm14 = vcmp.gt.s32.totalorder %v1776_v9, 6  ;;  %vm1615_vm15 = vcmp.gt.s32.totalorder %v1776_v9, 7 }
 0x3a1   :  { %v1737_v24 = vpop.eup %1736 }
 0x3a2   :  { %v1739_v36 = vpop.eup %1738  ;;  %v994_v46 = vadd.f32 1.0, %v1737_v24  ;;  %v1610_v24 = vsel %vm1609_vm14, 1.0, %v2422_v4 }
 0x3a3   :  { %v1014_v55 = vadd.f32 1.0, %v1739_v36  ;;  %v1616_v36 = vsel %vm1615_vm15, 1.0, %v2422_v4 }
 0x3a4   :  { %1740 = vrcp.f32 %v994_v46  ;;  %v1006_v38 = vand.u32 2147483648, %v994_v46  ;;  %v1004_v47 = vand.u32 2147483647, %v994_v46  ;;  %vm1000_vm7 = vweird.f32 %v994_v46 }
 0x3a5   :  { %1742 = vrcp.f32 %v1014_v55  ;;  %v1026_v16 = vand.u32 2147483648, %v1014_v55  ;;  %vm1020_vm11 = vweird.f32 %v1014_v55  ;;  %v1024_v18 = vand.u32 2147483647, %v1014_v55 }
 0x3a6   :  { %v1007_v25 = vor.u32 1.1754944e-38, %v1006_v38  ;;  %vm1005_vm9 = vcmp.eq.f32.partialorder %v1004_v47, 8.507059e+37 }
 0x3a7   :  { %v1027_v13 = vor.u32 1.1754944e-38, %v1026_v16  ;;  %vm1025_vm13 = vcmp.eq.f32.partialorder %v1024_v18, 8.507059e+37  ;;  %v2426_v16 = vld [vmem:[#allocation15_spill] sm:$0xff] }
 0x3aa   :  { %v1741_v52 = vpop.eup %1740 }
 0x3ab   :  { %v1743_v14 = vpop.eup %1742  ;;  %v996_v1 = vmul.f32 %v1741_v52, %v994_v46  ;;  %vm1001_vm6 = vweird.f32 %v1741_v52 }
 0x3ac   :  { %v1016_v41 = vmul.f32 %v1743_v14, %v1014_v55  ;;  %vm1002_vm8 = vmor %vm1000_vm7, %vm1001_vm6  ;;  %vm1021_vm10 = vweird.f32 %v1743_v14 }
 0x3ad   :  { %v997_v40 = vsub.f32 1.0, %v996_v1  ;;  %vm1022_vm12 = vmor %vm1020_vm11, %vm1021_vm10 }
 0x3ae   :  { %v1017_v20 = vsub.f32 1.0, %v1016_v41 }
 0x3af   :  { %v998_v26 = vmul.f32 %v1741_v52, %v997_v40 }
 0x3b0   :  { %v1018_v62 = vmul.f32 %v1743_v14, %v1017_v20 }
 0x3b1   :  { %v999_v0 = vadd.f32 %v1741_v52, %v998_v26 }
 0x3b2   :  { %v1019_v8 = vadd.f32 %v1743_v14, %v1018_v62 }
 0x3b3   :  { %v1003_v21 = vsel %vm1002_vm8, %v1741_v52, %v999_v0  ;;  %v1691_v52 = vpack.i.bf16 %v1616_v36, %v1610_v24 }
 0x3b4   :  { %v1008_v50 = vsel %vm1005_vm9, %v1007_v25, %v1003_v21  ;;  %v1023_v51 = vsel %vm1022_vm12, %v1743_v14, %v1019_v8 }
 0x3b5   :  { %v1030_v33 = vmul.f32 %v1008_v50, %v987_v60  ;;  %v1028_v61 = vsel %vm1025_vm13, %v1027_v13, %v1023_v51  ;;  %1692 = vperm.xlu1 %1685, %v1691_v52  }
 0x3b6   :  { %v1033_v48 = vsub.f32 1.0, %v1028_v61  ;;  %v1035_v59 = vmul.f32 %v1028_v61, %v2276_v31 }
 0x3b7   :  { %v1031_v29 = vadd.f32 %v1030_v33, %v2423_v49 }
 0x3b9   :  { %1744 = vtanh.f32 %v1031_v29 }
 0x3bf   :  { %v1745_v63 = vpop.eup %1744 }
 0x3c0   :  { %v1034_v6 = vmul.f32 %v1745_v63, %v1033_v48 }
 0x3c2   :  { %v2322_v37 = vadd.f32 %v1035_v59, %v1034_v6  ;;  %v1605_v6 = vld [vmem:[%s2401_s0 + $0x28] sm:$0xff]  ;;  %v1690_v59 = vunpack.i.h.bf16 %v2315_v53 }
 0x3c4   :  { %v1044_v19 = vadd.f32 %v1599_v27, %v2322_v37  ;;  %v1057_v7 = vpack.c.bf16 %v2322_v37, %v2322_v37 }
 0x3c6   :  { %v1050_v11 = vmul.f32 %v1689_v2, %v1044_v19  ;;  %1066 = vmatmul.bf16.vlgmr.msra.gmra.mxu1 %v1057_v7  ;;  %1079 = vmatmul.bf16.vlgmr.msra.gmra.mxu2 %v1057_v7 }
 0x3c7   :  { %1092 = vmatmul.bf16.vlgmr.msrb.gmra.mxu3 %v1057_v7  ;;  %1298 = vmatpush.bf16.msra.mxu1 %v1910_v12 }
 0x3c8   :  { %1600 = vst [vmem:[%s2407_s6 + $0x20] sm:$0xff] %v1050_v11 }
 0x3cb   :  { %1299 = vmatpush.bf16.msra.mxu1 %v1920_v28  ;;  %v2425_v28 = vld [vmem:[#allocation17_spill] sm:$0xff] }
 0x3cf   :  { %1300 = vmatpush.bf16.msra.mxu1 %v1928_v43  ;;  %v291_v43 = vadd.f32 %v2425_v28, %v2083_v32 }
 0x3d3   :  { %1301 = vmatpush.bf16.msra.mxu1 %v1934_v56 }
 0x3d7   :  { %1302 = vmatpush.bf16.msra.mxu1 %v1948_v5 }
 0x3db   :  { %1303 = vmatpush.bf16.msra.mxu1 %v1959_v22 }
 0x3df   :  { %1304 = vmatpush.bf16.msra.mxu1 %v1967_v35 }
 0x3e3   :  { %1305 = vmatpush.bf16.msra.mxu1 %v1975_v42 }
 0x443   :  { %v1067_v31 = vpop.f32.mrf.mxu1 }
 0x444   :  { %v1068_v12 = vadd.f32 %v1067_v31, %v2074_v3  ;;  %v2427_v31 = vld [vmem:[#allocation18_spill] sm:$0xff] }
 0x445   :  { %v294_v53 = vadd.f32 %v2427_v31, %v2083_v32 }
 0x446   :  { %v1097_v23 = vadd.f32 %v1068_v12, %v2424_v17 }
 0x448   :  { %v1601_v34 = vmul.f32 -1.442695, %v1097_v23  ;;  %v2428_v23 = vld [vmem:[#allocation12_spill] sm:$0xff] }
 0x449   :  { %v1080_v45 = vpop.f32.mrf.mxu2 }
 0x44a   :  { %1746 = vpow2.f32 %v1601_v34  ;;  %v1081_v56 = vadd.f32 %v1080_v45, %v2087_v39  ;;  %v1093_v5 = vpop.f32.mrf.mxu3 }
 0x44b   :  { %v1069_v58 = vpop.f32.mrf.mxu1  ;;  %v1094_v0 = vadd.f32 %v1093_v5, %v2105_v54 }
 0x44c   :  { %v1117_v22 = vadd.f32 %v1081_v56, %v291_v43 }
 0x44e   :  { %v1602_v15 = vmul.f32 -1.442695, %v1117_v22 }
 0x450   :  { %v1747_v35 = vpop.eup %1746  ;;  %1748 = vpow2.f32 %v1602_v15 }
 0x451   :  { %v1101_v42 = vadd.f32 1.0, %v1747_v35  ;;  %v1082_v30 = vpop.f32.mrf.mxu2 }
 0x452   :  { %v1095_v44 = vpop.f32.mrf.mxu3 }
 0x453   :  { %1750 = vrcp.f32 %v1101_v42  ;;  %v1113_v1 = vand.u32 2147483648, %v1101_v42  ;;  %v1111_v40 = vand.u32 2147483647, %v1101_v42  ;;  %vm1107_vm1 = vweird.f32 %v1101_v42 }
 0x455   :  { %v1114_v47 = vor.u32 1.1754944e-38, %v1113_v1  ;;  %vm1112_vm3 = vcmp.eq.f32.partialorder %v1111_v40, 8.507059e+37 }
 0x456   :  { %v1749_v57 = vpop.eup %1748 }
 0x457   :  { %v1121_v10 = vadd.f32 1.0, %v1749_v57 }
 0x459   :  { %v1751_v46 = vpop.eup %1750  ;;  %1752 = vrcp.f32 %v1121_v10  ;;  %v1133_v21 = vand.u32 2147483648, %v1121_v10  ;;  %v1131_v8 = vand.u32 2147483647, %v1121_v10  ;;  %vm1127_vm5 = vweird.f32 %v1121_v10 }
 0x45a   :  { %v1103_v55 = vmul.f32 %v1751_v46, %v1101_v42  ;;  %vm1108_vm0 = vweird.f32 %v1751_v46 }
 0x45b   :  { %vm1109_vm2 = vmor %vm1107_vm1, %vm1108_vm0  ;;  %v1134_v49 = vor.u32 1.1754944e-38, %v1133_v21  ;;  %vm1132_vm7 = vcmp.eq.f32.partialorder %v1131_v8, 8.507059e+37 }
 0x45c   :  { %v1104_v14 = vsub.f32 1.0, %v1103_v55 }
 0x45e   :  { %v1105_v41 = vmul.f32 %v1751_v46, %v1104_v14 }
 0x45f   :  { %v1753_v38 = vpop.eup %1752 }
 0x460   :  { %v1123_v20 = vmul.f32 %v1753_v38, %v1121_v10  ;;  %v1106_v26 = vadd.f32 %v1751_v46, %v1105_v41  ;;  %vm1128_vm4 = vweird.f32 %v1753_v38 }
 0x461   :  { %vm1129_vm6 = vmor %vm1127_vm5, %vm1128_vm4 }
 0x462   :  { %v1124_v62 = vsub.f32 1.0, %v1123_v20  ;;  %v1110_v4 = vsel %vm1109_vm2, %v1751_v46, %v1106_v26 }
 0x463   :  { %v1115_v25 = vsel %vm1112_vm3, %v1114_v47, %v1110_v4  ;;  %v2429_v4 = vld [vmem:[#allocation16_spill] sm:$0xff] }
 0x464   :  { %v1125_v60 = vmul.f32 %v1753_v38, %v1124_v62  ;;  %v1137_v50 = vmul.f32 %v1115_v25, %v1094_v0 }
 0x466   :  { %v1126_v33 = vadd.f32 %v1753_v38, %v1125_v60  ;;  %v1138_v18 = vadd.f32 %v1137_v50, %v2426_v16  ;;  %v2370_v16 = vpop.permute.xlu1 %1692 }
 0x468   :  { %v1130_v29 = vsel %vm1129_vm6, %v1753_v38, %v1126_v33  ;;  %1754 = vtanh.f32 %v1138_v18 }
 0x469   :  { %v1135_v51 = vsel %vm1132_vm7, %v1134_v49, %v1130_v29  ;;  %v1611_v29 = vld [vmem:[%s2401_s0 + $0x30] sm:$0xff] }
 0x46a   :  { %v1140_v13 = vsub.f32 1.0, %v1135_v51  ;;  %v1142_v63 = vmul.f32 %v1135_v51, %v2322_v37  ;;  %v1694_v51 = vunpack.i.l.bf16 %v2370_v16 }
 0x46e   :  { %v1755_v61 = vpop.eup %1754 }
 0x46f   :  { %v1141_v48 = vmul.f32 %v1755_v61, %v1140_v13 }
 0x471   :  { %v2355_v27 = vadd.f32 %v1142_v63, %v1141_v48 }
 0x473   :  { %v1151_v2 = vadd.f32 %v1605_v6, %v2355_v27  ;;  %v1164_v19 = vpack.c.bf16 %v2355_v27, %v2355_v27 }
 0x475   :  { %v1157_v7 = vmul.f32 %v1690_v59, %v1151_v2  ;;  %1173 = vmatmul.bf16.vlgmr.msrb.gmra.mxu0 %v1164_v19  ;;  %1186 = vmatmul.bf16.vlgmr.msrb.gmra.mxu1 %v1164_v19  ;;  %v2430_v59 = vld [vmem:[#allocation19_spill] sm:$0xff] }
 0x476   :  { %1199 = vmatmul.bf16.vlgmr.msrb.gmra.mxu2 %v1164_v19 }
 0x477   :  { %1606 = vst [vmem:[%s2407_s6 + $0x28] sm:$0xff] %v1157_v7 }
 0x4f2   :  { %v1174_v37 = vpop.f32.mrf.mxu0  ;;  %v1187_v11 = vpop.f32.mrf.mxu1 }
 0x4f3   :  { %v1175_v12 = vadd.f32 %v1174_v37, %v2074_v3  ;;  %v1188_v17 = vadd.f32 %v1187_v11, %v2087_v39 }
 0x4f5   :  { %v1204_v34 = vadd.f32 %v1175_v12, %v2428_v23  ;;  %v1224_v45 = vadd.f32 %v1188_v17, %v294_v53  ;;  %v2431_v12 = vld [vmem:[#allocation13_spill] sm:$0xff] }
 0x4f7   :  { %v1607_v28 = vmul.f32 -1.442695, %v1204_v34  ;;  %v1608_v43 = vmul.f32 -1.442695, %v1224_v45 }
 0x4f9   :  { %1756 = vpow2.f32 %v1607_v28  ;;  %v1200_v56 = vpop.f32.mrf.mxu2 }
 0x4fa   :  { %1758 = vpow2.f32 %v1608_v43  ;;  %v1176_v5 = vpop.f32.mrf.mxu0  ;;  %v1189_v58 = vpop.f32.mrf.mxu1  ;;  %v1201_v40 = vadd.f32 %v1200_v56, %v2105_v54 }
 0x4ff   :  { %v1757_v22 = vpop.eup %1756 }
 0x500   :  { %v1759_v15 = vpop.eup %1758  ;;  %v1208_v35 = vadd.f32 1.0, %v1757_v22 }
 0x501   :  { %v1228_v42 = vadd.f32 1.0, %v1759_v15  ;;  %v1202_v30 = vpop.f32.mrf.mxu2 }
 0x502   :  { %1760 = vrcp.f32 %v1208_v35  ;;  %v1220_v46 = vand.u32 2147483648, %v1208_v35  ;;  %v1218_v52 = vand.u32 2147483647, %v1208_v35  ;;  %vm1214_vm9 = vweird.f32 %v1208_v35 }
 0x503   :  { %1762 = vrcp.f32 %v1228_v42  ;;  %v1240_v62 = vand.u32 2147483648, %v1228_v42  ;;  %vm1234_vm13 = vweird.f32 %v1228_v42  ;;  %v1238_v0 = vand.u32 2147483647, %v1228_v42 }
 0x504   :  { %v1221_v41 = vor.u32 1.1754944e-38, %v1220_v46  ;;  %vm1219_vm11 = vcmp.eq.f32.partialorder %v1218_v52, 8.507059e+37  ;;  %v2433_v52 = vld [vmem:[#allocation20_spill] sm:$0xff] }
 0x505   :  { %v1241_v21 = vor.u32 1.1754944e-38, %v1240_v62  ;;  %vm1239_vm15 = vcmp.eq.f32.partialorder %v1238_v0, 8.507059e+37 }
 0x508   :  { %v1761_v44 = vpop.eup %1760 }
 0x509   :  { %v1763_v57 = vpop.eup %1762  ;;  %v1210_v10 = vmul.f32 %v1761_v44, %v1208_v35  ;;  %vm1215_vm8 = vweird.f32 %v1761_v44 }
 0x50a   :  { %v1230_v9 = vmul.f32 %v1763_v57, %v1228_v42  ;;  %vm1216_vm10 = vmor %vm1214_vm9, %vm1215_vm8  ;;  %vm1235_vm12 = vweird.f32 %v1763_v57 }
 0x50b   :  { %v1211_v24 = vsub.f32 1.0, %v1210_v10  ;;  %vm1236_vm14 = vmor %vm1234_vm13, %vm1235_vm12 }
 0x50c   :  { %v1231_v36 = vsub.f32 1.0, %v1230_v9 }
 0x50d   :  { %v1212_v55 = vmul.f32 %v1761_v44, %v1211_v24 }
 0x50e   :  { %v1232_v14 = vmul.f32 %v1763_v57, %v1231_v36 }
 0x50f   :  { %v1213_v1 = vadd.f32 %v1761_v44, %v1212_v55  ;;  %v2432_v55 = vld [vmem:[#allocation10_spill] sm:$0xff] }
 0x510   :  { %v1233_v26 = vadd.f32 %v1763_v57, %v1232_v14  ;;  %v325_v14 = vadd.f32 %v2433_v52, %v2432_v55 }
 0x511   :  { %v1217_v38 = vsel %vm1216_vm10, %v1761_v44, %v1213_v1 }
 0x512   :  { %v1222_v20 = vsel %vm1219_vm11, %v1221_v41, %v1217_v38  ;;  %v1237_v60 = vsel %vm1236_vm14, %v1763_v57, %v1233_v26 }
 0x513   :  { %v1244_v47 = vmul.f32 %v1222_v20, %v1201_v40  ;;  %v1242_v50 = vsel %vm1239_vm15, %v1241_v21, %v1237_v60  ;;  %v1695_v21 = vunpack.i.h.bf16 %v2370_v16 }
 0x514   :  { %v1247_v8 = vsub.f32 1.0, %v1242_v50  ;;  %v1249_v49 = vmul.f32 %v1242_v50, %v2355_v27  ;;  %v296_v27 = vadd.f32 %v2430_v59, %v2083_v32 }
 0x515   :  { %v1245_v25 = vadd.f32 %v1244_v47, %v2429_v4 }
 0x517   :  { %1764 = vtanh.f32 %v1245_v25  ;;  %v1617_v25 = vld [vmem:[%s2401_s0 + $0x38] sm:$0xff] }
 0x51d   :  { %v1765_v33 = vpop.eup %1764 }
 0x51e   :  { %v1248_v18 = vmul.f32 %v1765_v33, %v1247_v8 }
 0x520   :  { %v2377_v13 = vadd.f32 %v1249_v49, %v1248_v18 }
 0x522   :  { %v1258_v61 = vadd.f32 %v1611_v29, %v2377_v13  ;;  %v1271_v48 = vpack.c.bf16 %v2377_v13, %v2377_v13 }
 0x524   :  { %v1264_v63 = vmul.f32 %v1694_v51, %v1258_v61  ;;  %1280 = vmatmul.bf16.vlgmr.msra.gmra.mxu3 %v1271_v48  ;;  %1293 = vmatmul.bf16.vlgmr.msra.gmra.mxu0 %v1271_v48 }
 0x525   :  { %1306 = vmatmul.bf16.vlgmr.msra.gmra.mxu1 %v1271_v48 }
 0x526   :  { %1612 = vst [vmem:[%s2407_s6 + $0x30] sm:$0xff] %v1264_v63 }
 0x5a1   :  { %v1294_v6 = vpop.f32.mrf.mxu0 }
 0x5a2   :  { %v1295_v2 = vadd.f32 %v1294_v6, %v2087_v39  ;;  %v1307_v19 = vpop.f32.mrf.mxu1 }
 0x5a3   :  { %v1308_v9 = vadd.f32 %v1307_v19, %v2105_v54 }
 0x5a4   :  { %v1331_v7 = vadd.f32 %v1295_v2, %v296_v27 }
 0x5a6   :  { %v1614_v37 = vmul.f32 -1.442695, %v1331_v7 }
 0x5a7   :  { %v1281_v11 = vpop.f32.mrf.mxu3 }
 0x5a8   :  { %1766 = vpow2.f32 %v1614_v37  ;;  %v1282_v31 = vadd.f32 %v1281_v11, %v2074_v3 }
 0x5a9   :  { %v1296_v53 = vpop.f32.mrf.mxu0 }
 0x5aa   :  { %v1311_v17 = vadd.f32 %v1282_v31, %v2431_v12  ;;  %v1309_v23 = vpop.f32.mrf.mxu1 }
 0x5ac   :  { %v1613_v34 = vmul.f32 -1.442695, %v1311_v17 }
 0x5ae   :  { %v1767_v45 = vpop.eup %1766  ;;  %1768 = vpow2.f32 %v1613_v34 }
 0x5af   :  { %v1335_v28 = vadd.f32 1.0, %v1767_v45  ;;  %v1283_v43 = vpop.f32.mrf.mxu3 }
 0x5b1   :  { %1770 = vrcp.f32 %v1335_v28  ;;  %v1347_v1 = vand.u32 2147483648, %v1335_v28  ;;  %vm1341_vm5 = vweird.f32 %v1335_v28  ;;  %v1345_v40 = vand.u32 2147483647, %v1335_v28 }
 0x5b3   :  { %v1348_v26 = vor.u32 1.1754944e-38, %v1347_v1  ;;  %vm1346_vm7 = vcmp.eq.f32.partialorder %v1345_v40, 8.507059e+37 }
 0x5b4   :  { %v1769_v32 = vpop.eup %1768 }
 0x5b5   :  { %v1315_v56 = vadd.f32 1.0, %v1769_v32 }
 0x5b7   :  { %1772 = vrcp.f32 %v1315_v56  ;;  %v1771_v39 = vpop.eup %1770  ;;  %v1327_v3 = vand.u32 2147483648, %v1315_v56  ;;  %v1325_v30 = vand.u32 2147483647, %v1315_v56  ;;  %vm1321_vm1 = vweird.f32 %v1315_v56 }
 0x5b8   :  { %v1337_v5 = vmul.f32 %v1771_v39, %v1335_v28  ;;  %vm1342_vm4 = vweird.f32 %v1771_v39 }
 0x5b9   :  { %v1328_v10 = vor.u32 1.1754944e-38, %v1327_v3  ;;  %vm1326_vm3 = vcmp.eq.f32.partialorder %v1325_v30, 8.507059e+37  ;;  %vm1343_vm6 = vmor %vm1341_vm5, %vm1342_vm4 }
 0x5ba   :  { %v1338_v15 = vsub.f32 1.0, %v1337_v5 }
 0x5bc   :  { %v1339_v44 = vmul.f32 %v1771_v39, %v1338_v15 }
 0x5bd   :  { %v1773_v58 = vpop.eup %1772 }
 0x5be   :  { %v1317_v22 = vmul.f32 %v1773_v58, %v1315_v56  ;;  %vm1322_vm0 = vweird.f32 %v1773_v58  ;;  %v1340_v36 = vadd.f32 %v1771_v39, %v1339_v44 }
 0x5bf   :  { %vm1323_vm2 = vmor %vm1321_vm1, %vm1322_vm0 }
 0x5c0   :  { %v1318_v35 = vsub.f32 1.0, %v1317_v22  ;;  %v1344_v20 = vsel %vm1343_vm6, %v1771_v39, %v1340_v36 }
 0x5c1   :  { %v1349_v47 = vsel %vm1346_vm7, %v1348_v26, %v1344_v20 }
 0x5c2   :  { %v1319_v42 = vmul.f32 %v1773_v58, %v1318_v35  ;;  %v1354_v54 = vsub.f32 1.0, %v1349_v47  ;;  %v1356_v0 = vmul.f32 %v1349_v47, %v2377_v13 }
 0x5c4   :  { %v1320_v57 = vadd.f32 %v1773_v58, %v1319_v42 }
 0x5c6   :  { %v1324_v24 = vsel %vm1323_vm2, %v1773_v58, %v1320_v57 }
 0x5c7   :  { %v1329_v46 = vsel %vm1326_vm3, %v1328_v10, %v1324_v24 }
 0x5c8   :  { %v1351_v41 = vmul.f32 %v1329_v46, %v1308_v9 }
 0x5ca   :  { %v1352_v38 = vadd.f32 %v1351_v41, %v325_v14 }
 0x5cc   :  { %1774 = vtanh.f32 %v1352_v38 }
 0x5d2   :  { %v1775_v62 = vpop.eup %1774 }
 0x5d3   :  { %v1355_v4 = vmul.f32 %v1775_v62, %v1354_v54 }
 0x5d5   :  { %v1357_v60 = vadd.f32 %v1356_v0, %v1355_v4 }
 0x5d7   :  { %v1365_v50 = vadd.f32 %v1617_v25, %v1357_v60 }
 0x5d9   :  { %v1371_v8 = vmul.f32 %v1695_v21, %v1365_v50 }
 0x5db   :  { %1618 = vst [vmem:[%s2407_s6 + $0x38] sm:$0xff] %v1371_v8 }
 0x5dc   :  { %1379 = vsyncpa [#allocation5], 1 }
 0x5dd   :  { %1380 = vsyncpa [#allocation7], 1 }

</bundles_post_ra>
